<compile_context>
chip_gen: v7x
topology: tpu7x:2x2x1
jax: 0.10.0
libtpu: 0.0.40
codegen_flags: <defaults>
</compile_context>

<pallas_src>
import functools
import math

import jax
import jax.numpy as jnp
from jax import lax
from jax.experimental import pallas as pl
from jax.experimental.pallas import tpu as pltpu


# ----------------------------------------------------------------------------
# Pallas tiled matmul kernel: C = relu(A @ B + bias), bf16 in, f32 out.
# ----------------------------------------------------------------------------
def _matmul_kernel(*refs, apply_relu, has_bias):
    if has_bias:
        a_ref, b_ref, bias_ref, o_ref, acc_ref = refs
    else:
        a_ref, b_ref, o_ref, acc_ref = refs
        bias_ref = None

    @pl.when(pl.program_id(2) == 0)
    def _init():
        acc_ref[...] = jnp.zeros_like(acc_ref)

    acc_ref[...] += jnp.dot(a_ref[...], b_ref[...],
                            preferred_element_type=jnp.float32)

    @pl.when(pl.program_id(2) == pl.num_programs(2) - 1)
    def _finish():
        r = acc_ref[...]
        if has_bias:
            r = r + bias_ref[...]
        if apply_relu:
            r = jnp.maximum(r, 0.0)
        o_ref[...] = r.astype(o_ref.dtype)


_VMEM_BUDGET_BYTES = 14 * 1024 * 1024  # safe under every generation's default scoped VMEM


def _pick_tile(dim, cap, align):
    """Largest divisor of `dim` that is <= cap and a multiple of `align`.
    Falls back to the full dimension (always a legal TPU block); the VMEM
    guard in pallas_matmul turns an oversized fallback into a loud error
    instead of a silent VMEM blow-up."""
    if dim <= cap:
        return dim
    t = (cap // align) * align
    while t >= align:
        if dim % t == 0:
            return t
        t -= align
    return dim


def pallas_matmul(a, b, bias=None, *, apply_relu=False,
                  m_cap=256, n_cap=384, k_cap=2048):
    M, K = a.shape
    K2, N = b.shape
    assert K == K2, (a.shape, b.shape)
    a = a.astype(jnp.bfloat16)
    b = b.astype(jnp.bfloat16)

    tm = _pick_tile(M, m_cap, 8)
    tn = _pick_tile(N, n_cap, 128)
    tk = _pick_tile(K, k_cap, 128)
    grid = (M // tm, N // tn, K // tk)

    # Explicit VMEM budget: double-buffered bf16 A/B + f32 out + f32 acc + bias.
    est = 2 * (tm * tk * 2 + tk * tn * 2 + tm * tn * 4) + tm * tn * 4 + 2 * tn * 4
    if est > _VMEM_BUDGET_BYTES:
        raise ValueError(
            f"matmul tiles ({tm},{tn},{tk}) need ~{est} bytes of VMEM; "
            "lower m_cap/n_cap/k_cap")

    has_bias = bias is not None
    operands = [a, b]
    in_specs = [pl.BlockSpec((tm, tk), lambda i, j, k: (i, k)),
                pl.BlockSpec((tk, tn), lambda i, j, k: (k, j))]
    if has_bias:
        operands.append(bias.reshape(1, N).astype(jnp.float32))
        in_specs.append(pl.BlockSpec((1, tn), lambda i, j, k: (0, j)))

    kernel = functools.partial(_matmul_kernel, apply_relu=apply_relu,
                               has_bias=has_bias)
    return pl.pallas_call(
        kernel,
        out_shape=jax.ShapeDtypeStruct((M, N), jnp.float32),
        grid_spec=pltpu.PrefetchScalarGridSpec(
            num_scalar_prefetch=0,
            grid=grid,
            in_specs=in_specs,
            out_specs=pl.BlockSpec((tm, tn), lambda i, j, k: (i, j)),
            scratch_shapes=[pltpu.VMEM((tm, tn), jnp.float32)]),
        compiler_params=pltpu.CompilerParams(
            dimension_semantics=("parallel", "parallel", "arbitrary")),
    )(*operands)


# ----------------------------------------------------------------------------
# Small JAX glue: BN statistics, depthwise 3x3, im2col, pools.
# ----------------------------------------------------------------------------
def _bn_stats(x, eps=1e-5):
    """Training-mode BatchNorm2d(affine=False) stats: per-channel mean and
    rsqrt(biased_var + eps) over (N, H, W) of an NHWC activation."""
    mean = jnp.mean(x, axis=(0, 1, 2))
    var = jnp.maximum(jnp.mean(jnp.square(x), axis=(0, 1, 2)) - jnp.square(mean), 0.0)
    return mean, lax.rsqrt(var + eps)


def depthwise3x3(x, w):
    """Depthwise 3x3 conv, padding=1, on NHWC x with weights w:(C,3,3).
    Tiny per-channel VPU work -> 9 shifted multiply-adds in plain JAX."""
    N, H, W, C = x.shape
    xp = jnp.pad(x, ((0, 0), (1, 1), (1, 1), (0, 0)))
    out = jnp.zeros_like(x)
    for di in range(3):
        for dj in range(3):
            out = out + xp[:, di:di + H, dj:dj + W, :] * w[:, di, dj]
    return out


def im2col(x, kh, kw, pad):
    """x: NHWC (already mean-subtracted, bf16). Returns (N*H*W, kh*kw*C) with
    tap-major (di, dj, c) column order (matches the prepared conv1 weight)."""
    N, H, W, C = x.shape
    xp = jnp.pad(x, ((0, 0), (pad, pad), (pad, pad), (0, 0)))
    cols = jnp.stack([xp[:, di:di + H, dj:dj + W, :]
                      for di in range(kh) for dj in range(kw)], axis=3)
    return cols.reshape(N * H * W, kh * kw * C)


def maxpool_nhwc(x, k, s, p):
    return lax.reduce_window(
        x, -jnp.inf, lax.max,
        window_dimensions=(1, k, k, 1),
        window_strides=(1, s, s, 1),
        padding=((0, 0), (p, p), (p, p), (0, 0)))


def avgpool_nhwc(x, k, s):
    summed = lax.reduce_window(
        x, 0.0, lax.add,
        window_dimensions=(1, k, k, 1),
        window_strides=(1, s, s, 1),
        padding=((0, 0), (0, 0), (0, 0), (0, 0)))
    return summed / float(k * k)


# ----------------------------------------------------------------------------
# Parameters (same init distributions as the PyTorch module, TPU-friendly layout).
# ----------------------------------------------------------------------------
C1P = 128  # conv1 out channels padded 96 -> 128 (lane-dense stores, aligned K for conv_point2)


def init_params(key):
    ks = jax.random.split(key, 7)

    # conv1: custom_pointwise_conv_init -> 25/sqrt(3*5*5) * randn(96,3,5,5)
    w1 = (25.0 / math.sqrt(3 * 5 * 5)) * jax.random.normal(ks[0], (96, 3, 5, 5), jnp.float32)
    # -> (kh, kw, cin, out) -> (75, 96); pad K 75->128 and out 96->128 with zeros.
    w1 = jnp.transpose(w1, (2, 3, 1, 0)).reshape(75, 96)
    w1 = jnp.pad(w1, ((0, 128 - 75), (0, C1P - 96)))

    # conv2 (depthwise 3x3, groups=96): 25/sqrt(96*9) * randn(96,1,3,3)
    w2_dw = (25.0 / math.sqrt(96 * 9)) * jax.random.normal(ks[1], (96, 3, 3), jnp.float32)
    w2_dw = jnp.pad(w2_dw, ((0, C1P - 96), (0, 0), (0, 0)))          # (128,3,3)

    # conv_point2 (1x1, 96->384): 25/sqrt(96) * randn(384,96,1,1) stored as (Cin, Cout)
    w_pt2 = (25.0 / math.sqrt(96)) * jax.random.normal(ks[2], (96, 384), jnp.float32)
    w_pt2 = jnp.pad(w_pt2, ((0, C1P - 96), (0, 0)))                  # (128,384)

    # conv3 (depthwise 3x3, groups=384): 25/sqrt(384*9) * randn(384,1,3,3)
    w3_dw = (25.0 / math.sqrt(384 * 9)) * jax.random.normal(ks[3], (384, 3, 3), jnp.float32)

    # conv_point3 (1x1, 384->1536): 25/sqrt(384) * randn(1536,384,1,1) stored as (Cin, Cout)
    w_pt3 = (25.0 / math.sqrt(384)) * jax.random.normal(ks[4], (384, 1536), jnp.float32)

    # fc1: weight = 0.11048543456039805 * rand(10, 24576), stored pre-transposed
    # in bf16; bias = default nn.Linear init, uniform(-1/sqrt(24576), 1/sqrt(24576)).
    fc1_w = (0.11048543456039805
             * jax.random.uniform(ks[5], (24576, 10), jnp.float32)).astype(jnp.bfloat16)
    b = 1.0 / math.sqrt(24576.0)
    fc1_b = jax.random.uniform(ks[6], (10,), jnp.float32, -b, b)

    return {"w1": w1, "w2_dw": w2_dw, "w_pt2": w_pt2,
            "w3_dw": w3_dw, "w_pt3": w_pt3, "fc1_w": fc1_w, "fc1_b": fc1_b}


# ----------------------------------------------------------------------------
# Forward pass.
# ----------------------------------------------------------------------------
@jax.jit
def net_backpropagation_depth_forward(x_nchw, params):
    x = jnp.transpose(x_nchw.astype(jnp.float32), (0, 2, 3, 1))      # NHWC (N,32,32,3)
    n = x.shape[0]

    # --- block 1: pool1(relu(conv1(bn1(x)))) -------------------------------
    m1, s1 = _bn_stats(x)
    t = (x - m1).astype(jnp.bfloat16)          # bn shift; scale folded into weights
    a = im2col(t, 5, 5, pad=2)                                       # (N*1024, 75)
    a = jnp.pad(a, ((0, 0), (0, 128 - 75)))                          # K -> 128
    scale_k = jnp.pad(jnp.tile(s1, 25), (0, 128 - 75))               # per-(tap,cin) scale
    w1s = params["w1"] * scale_k[:, None]                            # (128, 128)
    y = pallas_matmul(a, w1s, apply_relu=True)                       # (N*1024, 128)
    y = y.reshape(n, 32, 32, C1P)
    y = maxpool_nhwc(y, 4, 2, 1)                                     # (N,16,16,128)

    # --- block 2: pool2(relu(conv_point2(bn_point2(conv2(bn2(x)))))) -------
    m2, s2 = _bn_stats(y)
    dw = depthwise3x3(y - m2, params["w2_dw"] * s2[:, None, None])   # (N,16,16,128)
    mp2, sp2 = _bn_stats(dw)
    wpt2s = params["w_pt2"] * sp2[:, None]                           # (128, 384)
    bias2 = -jnp.dot(mp2, wpt2s)                                     # folded bn_point2 shift
    y = pallas_matmul(dw.reshape(-1, C1P), wpt2s, bias2, apply_relu=True)
    y = y.reshape(n, 16, 16, 384)
    y = maxpool_nhwc(y, 4, 2, 1)                                     # (N,8,8,384)

    # --- block 3: pool3(relu(conv_point3(bn_point3(conv3(bn3(x)))))) -------
    m3, s3 = _bn_stats(y)
    dw = depthwise3x3(y - m3, params["w3_dw"] * s3[:, None, None])   # (N,8,8,384)
    mp3, sp3 = _bn_stats(dw)
    wpt3s = params["w_pt3"] * sp3[:, None]                           # (384, 1536)
    bias3 = -jnp.dot(mp3, wpt3s)
    y = pallas_matmul(dw.reshape(-1, 384), wpt3s, bias3, apply_relu=True)
    y = y.reshape(n, 8, 8, 1536)
    y = avgpool_nhwc(y, 2, 2)                                        # (N,4,4,1536)

    # --- flatten in PyTorch NCHW order, dropout=identity (eval), fc1 -------
    feat = jnp.transpose(y, (0, 3, 1, 2)).reshape(n, -1)             # (N, 24576)
    # TODO(synk): nn.Dropout(0.5) train-mode mask not reproduced (identity here).
    logits = pallas_matmul(feat, params["fc1_w"], params["fc1_b"],
                           apply_relu=False, k_cap=8192)             # (N, 10)
    return logits


if __name__ == "__main__":
    key = jax.random.PRNGKey(0)
    pkey, xkey = jax.random.split(key)
    params = init_params(pkey)
    # fc1 expects 24576 = 1536 * 4 * 4 features -> 32x32 spatial input (CIFAR-like).
    x = jax.random.normal(xkey, (2, 3, 32, 32), dtype=jnp.float32)

    out = net_backpropagation_depth_forward(x, params)
    out = jax.block_until_ready(out)
    assert out.shape == (2, 10), out.shape
    assert bool(jnp.all(jnp.isfinite(out)))
    print("KERNEL_OK")
</pallas_src>

<mosaic_0001>
module attributes {stable_mosaic.version = 11 : i64} {
  func.func @_matmul_kernel(%arg0: i32, %arg1: i32, %arg2: i32, %arg3: memref<256x128xbf16, #tpu.memory_space<vmem>>, %arg4: memref<128x128xbf16, #tpu.memory_space<vmem>>, %arg5: memref<256x128xf32, #tpu.memory_space<vmem>>, %arg6: memref<256x128xf32, #tpu.memory_space<vmem>>) attributes {dimension_semantics = [#tpu.dimension_semantics<parallel>, #tpu.dimension_semantics<parallel>, #tpu.dimension_semantics<arbitrary>], iteration_bounds = array<i64: 8, 1, 1>, scalar_prefetch = 0 : i64, scratch_operands = 1 : i64, tpu.core_type = #tpu.core_type<tc>, window_params = [{transform_indices = @transform_0, window_bounds = array<i64: 256, 128>}, {transform_indices = @transform_1, window_bounds = array<i64: 128, 128>}, {transform_indices = @transform_2, window_bounds = array<i64: 256, 128>}]} {
    %c0_i32 = arith.constant 0 : i32
    %0 = arith.cmpi eq, %arg2, %c0_i32 : i32
    %1 = arith.extui %0 : i1 to i32
    %c0_i32_0 = arith.constant 0 : i32
    %2 = arith.cmpi ne, %1, %c0_i32_0 : i32
    scf.if %2 {
      %cst_10 = arith.constant 0.000000e+00 : f32
      %12 = vector.broadcast %cst_10 : f32 to vector<256x128xf32>
      %c0_11 = arith.constant 0 : index
      %c0_12 = arith.constant 0 : index
      %13 = vector.load %arg6[%c0_11, %c0_12] : memref<256x128xf32, #tpu.memory_space<vmem>>, vector<256x128xf32>
      tpu.vector_store %arg6[%c0_11, %c0_12], %12 {strides = array<i32>} : memref<256x128xf32, #tpu.memory_space<vmem>>, vector<256x128xf32>,
    } else {
    }
    %c0 = arith.constant 0 : index
    %c0_1 = arith.constant 0 : index
    %3 = vector.load %arg6[%c0, %c0_1] : memref<256x128xf32, #tpu.memory_space<vmem>>, vector<256x128xf32>
    %c0_2 = arith.constant 0 : index
    %c0_3 = arith.constant 0 : index
    %4 = vector.load %arg3[%c0_2, %c0_3] : memref<256x128xbf16, #tpu.memory_space<vmem>>, vector<256x128xbf16>
    %c0_4 = arith.constant 0 : index
    %c0_5 = arith.constant 0 : index
    %5 = vector.load %arg4[%c0_4, %c0_5] : memref<128x128xbf16, #tpu.memory_space<vmem>>, vector<128x128xbf16>
    %cst = arith.constant dense<0.000000e+00> : vector<256x128xf32>
    %6 = tpu.matmul %4, %5, %cst {dimension_numbers = #tpu.dot_dimension_numbers<[1], [0], [0], [1], [0, 0, 1, 1], [], []>} : vector<256x128xbf16>, vector<128x128xbf16>, vector<256x128xf32> -> vector<256x128xf32>
    %7 = arith.addf %3, %6 : vector<256x128xf32>
    %c0_6 = arith.constant 0 : index
    %c0_7 = arith.constant 0 : index
    %8 = vector.load %arg6[%c0_6, %c0_7] : memref<256x128xf32, #tpu.memory_space<vmem>>, vector<256x128xf32>
    tpu.vector_store %arg6[%c0_6, %c0_7], %7 {strides = array<i32>} : memref<256x128xf32, #tpu.memory_space<vmem>>, vector<256x128xf32>,
    %c0_i32_8 = arith.constant 0 : i32
    %9 = arith.cmpi eq, %arg2, %c0_i32_8 : i32
    %10 = arith.extui %9 : i1 to i32
    %c0_i32_9 = arith.constant 0 : i32
    %11 = arith.cmpi ne, %10, %c0_i32_9 : i32
    scf.if %11 {
      %c0_10 = arith.constant 0 : index
      %c0_11 = arith.constant 0 : index
      %12 = vector.load %arg6[%c0_10, %c0_11] : memref<256x128xf32, #tpu.memory_space<vmem>>, vector<256x128xf32>
      %cst_12 = arith.constant 0.000000e+00 : f32
      %13 = vector.broadcast %cst_12 : f32 to vector<256x128xf32>
      %14 = arith.maximumf %12, %13 : vector<256x128xf32>
      %c0_13 = arith.constant 0 : index
      %c0_14 = arith.constant 0 : index
      %15 = vector.load %arg5[%c0_13, %c0_14] : memref<256x128xf32, #tpu.memory_space<vmem>>, vector<256x128xf32>
      tpu.vector_store %arg5[%c0_13, %c0_14], %14 {strides = array<i32>} : memref<256x128xf32, #tpu.memory_space<vmem>>, vector<256x128xf32>,
    } else {
    }
    return
  }
  func.func @transform_0(%arg0: i32, %arg1: i32, %arg2: i32) -> (i32, i32) {
    %c0_i32 = arith.constant 0 : i32
    return %arg0, %arg2 : i32, i32
  }
  func.func @transform_1(%arg0: i32, %arg1: i32, %arg2: i32) -> (i32, i32) {
    %c0_i32 = arith.constant 0 : i32
    return %arg2, %arg1 : i32, i32
  }
  func.func @transform_2(%arg0: i32, %arg1: i32, %arg2: i32) -> (i32, i32) {
    %c0_i32 = arith.constant 0 : i32
    return %arg0, %arg1 : i32, i32
  }
}

module attributes {stable_mosaic.version = 11 : i64} {
  func.func @_matmul_kernel(%arg0: i32, %arg1: i32, %arg2: i32, %arg3: memref<256x128xbf16, #tpu.memory_space<vmem>>, %arg4: memref<128x384xbf16, #tpu.memory_space<vmem>>, %arg5: memref<1x384xf32, #tpu.memory_space<vmem>>, %arg6: memref<256x384xf32, #tpu.memory_space<vmem>>, %arg7: memref<256x384xf32, #tpu.memory_space<vmem>>) attributes {dimension_semantics = [#tpu.dimension_semantics<parallel>, #tpu.dimension_semantics<parallel>, #tpu.dimension_semantics<arbitrary>], iteration_bounds = array<i64: 2, 1, 1>, scalar_prefetch = 0 : i64, scratch_operands = 1 : i64, tpu.core_type = #tpu.core_type<tc>, window_params = [{transform_indices = @transform_0, window_bounds = array<i64: 256, 128>}, {transform_indices = @transform_1, window_bounds = array<i64: 128, 384>}, {transform_indices = @transform_2, window_bounds = array<i64: 1, 384>}, {transform_indices = @transform_3, window_bounds = array<i64: 256, 384>}]} {
    %c0_i32 = arith.constant 0 : i32
    %0 = arith.cmpi eq, %arg2, %c0_i32 : i32
    %1 = arith.extui %0 : i1 to i32
    %c0_i32_0 = arith.constant 0 : i32
    %2 = arith.cmpi ne, %1, %c0_i32_0 : i32
    scf.if %2 {
      %cst_10 = arith.constant 0.000000e+00 : f32
      %12 = vector.broadcast %cst_10 : f32 to vector<256x384xf32>
      %c0_11 = arith.constant 0 : index
      %c0_12 = arith.constant 0 : index
      %13 = vector.load %arg7[%c0_11, %c0_12] : memref<256x384xf32, #tpu.memory_space<vmem>>, vector<256x384xf32>
      tpu.vector_store %arg7[%c0_11, %c0_12], %12 {strides = array<i32>} : memref<256x384xf32, #tpu.memory_space<vmem>>, vector<256x384xf32>,
    } else {
    }
    %c0 = arith.constant 0 : index
    %c0_1 = arith.constant 0 : index
    %3 = vector.load %arg7[%c0, %c0_1] : memref<256x384xf32, #tpu.memory_space<vmem>>, vector<256x384xf32>
    %c0_2 = arith.constant 0 : index
    %c0_3 = arith.constant 0 : index
    %4 = vector.load %arg3[%c0_2, %c0_3] : memref<256x128xbf16, #tpu.memory_space<vmem>>, vector<256x128xbf16>
    %c0_4 = arith.constant 0 : index
    %c0_5 = arith.constant 0 : index
    %5 = vector.load %arg4[%c0_4, %c0_5] : memref<128x384xbf16, #tpu.memory_space<vmem>>, vector<128x384xbf16>
    %cst = arith.constant dense<0.000000e+00> : vector<256x384xf32>
    %6 = tpu.matmul %4, %5, %cst {dimension_numbers = #tpu.dot_dimension_numbers<[1], [0], [0], [1], [0, 0, 1, 1], [], []>} : vector<256x128xbf16>, vector<128x384xbf16>, vector<256x384xf32> -> vector<256x384xf32>
    %7 = arith.addf %3, %6 : vector<256x384xf32>
    %c0_6 = arith.constant 0 : index
    %c0_7 = arith.constant 0 : index
    %8 = vector.load %arg7[%c0_6, %c0_7] : memref<256x384xf32, #tpu.memory_space<vmem>>, vector<256x384xf32>
    tpu.vector_store %arg7[%c0_6, %c0_7], %7 {strides = array<i32>} : memref<256x384xf32, #tpu.memory_space<vmem>>, vector<256x384xf32>,
    %c0_i32_8 = arith.constant 0 : i32
    %9 = arith.cmpi eq, %arg2, %c0_i32_8 : i32
    %10 = arith.extui %9 : i1 to i32
    %c0_i32_9 = arith.constant 0 : i32
    %11 = arith.cmpi ne, %10, %c0_i32_9 : i32
    scf.if %11 {
      %c0_10 = arith.constant 0 : index
      %c0_11 = arith.constant 0 : index
      %12 = vector.load %arg7[%c0_10, %c0_11] : memref<256x384xf32, #tpu.memory_space<vmem>>, vector<256x384xf32>
      %c0_12 = arith.constant 0 : index
      %c0_13 = arith.constant 0 : index
      %13 = vector.load %arg5[%c0_12, %c0_13] : memref<1x384xf32, #tpu.memory_space<vmem>>, vector<1x384xf32>
      %14 = vector.broadcast %13 : vector<1x384xf32> to vector<256x384xf32>
      %15 = arith.addf %12, %14 : vector<256x384xf32>
      %cst_14 = arith.constant 0.000000e+00 : f32
      %16 = vector.broadcast %cst_14 : f32 to vector<256x384xf32>
      %17 = arith.maximumf %15, %16 : vector<256x384xf32>
      %c0_15 = arith.constant 0 : index
      %c0_16 = arith.constant 0 : index
      %18 = vector.load %arg6[%c0_15, %c0_16] : memref<256x384xf32, #tpu.memory_space<vmem>>, vector<256x384xf32>
      tpu.vector_store %arg6[%c0_15, %c0_16], %17 {strides = array<i32>} : memref<256x384xf32, #tpu.memory_space<vmem>>, vector<256x384xf32>,
    } else {
    }
    return
  }
  func.func @transform_0(%arg0: i32, %arg1: i32, %arg2: i32) -> (i32, i32) {
    %c0_i32 = arith.constant 0 : i32
    return %arg0, %arg2 : i32, i32
  }
  func.func @transform_1(%arg0: i32, %arg1: i32, %arg2: i32) -> (i32, i32) {
    %c0_i32 = arith.constant 0 : i32
    return %arg2, %arg1 : i32, i32
  }
  func.func @transform_2(%arg0: i32, %arg1: i32, %arg2: i32) -> (i32, i32) {
    %c0_i32 = arith.constant 0 : i32
    %c0_i32_0 = arith.constant 0 : i32
    return %c0_i32, %arg1 : i32, i32
  }
  func.func @transform_3(%arg0: i32, %arg1: i32, %arg2: i32) -> (i32, i32) {
    %c0_i32 = arith.constant 0 : i32
    return %arg0, %arg1 : i32, i32
  }
}

module attributes {stable_mosaic.version = 11 : i64} {
  func.func @_matmul_kernel(%arg0: i32, %arg1: i32, %arg2: i32, %arg3: memref<128x384xbf16, #tpu.memory_space<vmem>>, %arg4: memref<384x384xbf16, #tpu.memory_space<vmem>>, %arg5: memref<1x384xf32, #tpu.memory_space<vmem>>, %arg6: memref<128x384xf32, #tpu.memory_space<vmem>>, %arg7: memref<128x384xf32, #tpu.memory_space<vmem>>) attributes {dimension_semantics = [#tpu.dimension_semantics<parallel>, #tpu.dimension_semantics<parallel>, #tpu.dimension_semantics<arbitrary>], iteration_bounds = array<i64: 1, 4, 1>, scalar_prefetch = 0 : i64, scratch_operands = 1 : i64, tpu.core_type = #tpu.core_type<tc>, window_params = [{transform_indices = @transform_0, window_bounds = array<i64: 128, 384>}, {transform_indices = @transform_1, window_bounds = array<i64: 384, 384>}, {transform_indices = @transform_2, window_bounds = array<i64: 1, 384>}, {transform_indices = @transform_3, window_bounds = array<i64: 128, 384>}]} {
    %c0_i32 = arith.constant 0 : i32
    %0 = arith.cmpi eq, %arg2, %c0_i32 : i32
    %1 = arith.extui %0 : i1 to i32
    %c0_i32_0 = arith.constant 0 : i32
    %2 = arith.cmpi ne, %1, %c0_i32_0 : i32
    scf.if %2 {
      %cst_10 = arith.constant 0.000000e+00 : f32
      %12 = vector.broadcast %cst_10 : f32 to vector<128x384xf32>
      %c0_11 = arith.constant 0 : index
      %c0_12 = arith.constant 0 : index
      %13 = vector.load %arg7[%c0_11, %c0_12] : memref<128x384xf32, #tpu.memory_space<vmem>>, vector<128x384xf32>
      tpu.vector_store %arg7[%c0_11, %c0_12], %12 {strides = array<i32>} : memref<128x384xf32, #tpu.memory_space<vmem>>, vector<128x384xf32>,
    } else {
    }
    %c0 = arith.constant 0 : index
    %c0_1 = arith.constant 0 : index
    %3 = vector.load %arg7[%c0, %c0_1] : memref<128x384xf32, #tpu.memory_space<vmem>>, vector<128x384xf32>
    %c0_2 = arith.constant 0 : index
    %c0_3 = arith.constant 0 : index
    %4 = vector.load %arg3[%c0_2, %c0_3] : memref<128x384xbf16, #tpu.memory_space<vmem>>, vector<128x384xbf16>
    %c0_4 = arith.constant 0 : index
    %c0_5 = arith.constant 0 : index
    %5 = vector.load %arg4[%c0_4, %c0_5] : memref<384x384xbf16, #tpu.memory_space<vmem>>, vector<384x384xbf16>
    %cst = arith.constant dense<0.000000e+00> : vector<128x384xf32>
    %6 = tpu.matmul %4, %5, %cst {dimension_numbers = #tpu.dot_dimension_numbers<[1], [0], [0], [1], [0, 0, 1, 1], [], []>} : vector<128x384xbf16>, vector<384x384xbf16>, vector<128x384xf32> -> vector<128x384xf32>
    %7 = arith.addf %3, %6 : vector<128x384xf32>
    %c0_6 = arith.constant 0 : index
    %c0_7 = arith.constant 0 : index
    %8 = vector.load %arg7[%c0_6, %c0_7] : memref<128x384xf32, #tpu.memory_space<vmem>>, vector<128x384xf32>
    tpu.vector_store %arg7[%c0_6, %c0_7], %7 {strides = array<i32>} : memref<128x384xf32, #tpu.memory_space<vmem>>, vector<128x384xf32>,
    %c0_i32_8 = arith.constant 0 : i32
    %9 = arith.cmpi eq, %arg2, %c0_i32_8 : i32
    %10 = arith.extui %9 : i1 to i32
    %c0_i32_9 = arith.constant 0 : i32
    %11 = arith.cmpi ne, %10, %c0_i32_9 : i32
    scf.if %11 {
      %c0_10 = arith.constant 0 : index
      %c0_11 = arith.constant 0 : index
      %12 = vector.load %arg7[%c0_10, %c0_11] : memref<128x384xf32, #tpu.memory_space<vmem>>, vector<128x384xf32>
      %c0_12 = arith.constant 0 : index
      %c0_13 = arith.constant 0 : index
      %13 = vector.load %arg5[%c0_12, %c0_13] : memref<1x384xf32, #tpu.memory_space<vmem>>, vector<1x384xf32>
      %14 = vector.broadcast %13 : vector<1x384xf32> to vector<128x384xf32>
      %15 = arith.addf %12, %14 : vector<128x384xf32>
      %cst_14 = arith.constant 0.000000e+00 : f32
      %16 = vector.broadcast %cst_14 : f32 to vector<128x384xf32>
      %17 = arith.maximumf %15, %16 : vector<128x384xf32>
      %c0_15 = arith.constant 0 : index
      %c0_16 = arith.constant 0 : index
      %18 = vector.load %arg6[%c0_15, %c0_16] : memref<128x384xf32, #tpu.memory_space<vmem>>, vector<128x384xf32>
      tpu.vector_store %arg6[%c0_15, %c0_16], %17 {strides = array<i32>} : memref<128x384xf32, #tpu.memory_space<vmem>>, vector<128x384xf32>,
    } else {
    }
    return
  }
  func.func @transform_0(%arg0: i32, %arg1: i32, %arg2: i32) -> (i32, i32) {
    %c0_i32 = arith.constant 0 : i32
    return %arg0, %arg2 : i32, i32
  }
  func.func @transform_1(%arg0: i32, %arg1: i32, %arg2: i32) -> (i32, i32) {
    %c0_i32 = arith.constant 0 : i32
    return %arg2, %arg1 : i32, i32
  }
  func.func @transform_2(%arg0: i32, %arg1: i32, %arg2: i32) -> (i32, i32) {
    %c0_i32 = arith.constant 0 : i32
    %c0_i32_0 = arith.constant 0 : i32
    return %c0_i32, %arg1 : i32, i32
  }
  func.func @transform_3(%arg0: i32, %arg1: i32, %arg2: i32) -> (i32, i32) {
    %c0_i32 = arith.constant 0 : i32
    return %arg0, %arg1 : i32, i32
  }
}

module attributes {stable_mosaic.version = 11 : i64} {
  func.func @_matmul_kernel(%arg0: i32, %arg1: i32, %arg2: i32, %arg3: memref<2x8192xbf16, #tpu.memory_space<vmem>>, %arg4: memref<8192x10xbf16, #tpu.memory_space<vmem>>, %arg5: memref<1x10xf32, #tpu.memory_space<vmem>>, %arg6: memref<2x10xf32, #tpu.memory_space<vmem>>, %arg7: memref<2x10xf32, #tpu.memory_space<vmem>>) attributes {dimension_semantics = [#tpu.dimension_semantics<parallel>, #tpu.dimension_semantics<parallel>, #tpu.dimension_semantics<arbitrary>], iteration_bounds = array<i64: 1, 1, 3>, scalar_prefetch = 0 : i64, scratch_operands = 1 : i64, tpu.core_type = #tpu.core_type<tc>, window_params = [{transform_indices = @transform_0, window_bounds = array<i64: 2, 8192>}, {transform_indices = @transform_1, window_bounds = array<i64: 8192, 10>}, {transform_indices = @transform_2, window_bounds = array<i64: 1, 10>}, {transform_indices = @transform_3, window_bounds = array<i64: 2, 10>}]} {
    %c0_i32 = arith.constant 0 : i32
    %0 = arith.cmpi eq, %arg2, %c0_i32 : i32
    %1 = arith.extui %0 : i1 to i32
    %c0_i32_0 = arith.constant 0 : i32
    %2 = arith.cmpi ne, %1, %c0_i32_0 : i32
    scf.if %2 {
      %cst_9 = arith.constant 0.000000e+00 : f32
      %12 = vector.broadcast %cst_9 : f32 to vector<2x10xf32>
      %c0_10 = arith.constant 0 : index
      %c0_11 = arith.constant 0 : index
      %13 = vector.load %arg7[%c0_10, %c0_11] : memref<2x10xf32, #tpu.memory_space<vmem>>, vector<2x10xf32>
      tpu.vector_store %arg7[%c0_10, %c0_11], %12 {strides = array<i32>} : memref<2x10xf32, #tpu.memory_space<vmem>>, vector<2x10xf32>,
    } else {
    }
    %c0 = arith.constant 0 : index
    %c0_1 = arith.constant 0 : index
    %3 = vector.load %arg7[%c0, %c0_1] : memref<2x10xf32, #tpu.memory_space<vmem>>, vector<2x10xf32>
    %c0_2 = arith.constant 0 : index
    %c0_3 = arith.constant 0 : index
    %4 = vector.load %arg3[%c0_2, %c0_3] : memref<2x8192xbf16, #tpu.memory_space<vmem>>, vector<2x8192xbf16>
    %c0_4 = arith.constant 0 : index
    %c0_5 = arith.constant 0 : index
    %5 = vector.load %arg4[%c0_4, %c0_5] : memref<8192x10xbf16, #tpu.memory_space<vmem>>, vector<8192x10xbf16>
    %cst = arith.constant dense<0.000000e+00> : vector<2x10xf32>
    %6 = tpu.matmul %4, %5, %cst {dimension_numbers = #tpu.dot_dimension_numbers<[1], [0], [0], [1], [0, 0, 1, 1], [], []>} : vector<2x8192xbf16>, vector<8192x10xbf16>, vector<2x10xf32> -> vector<2x10xf32>
    %7 = arith.addf %3, %6 : vector<2x10xf32>
    %c0_6 = arith.constant 0 : index
    %c0_7 = arith.constant 0 : index
    %8 = vector.load %arg7[%c0_6, %c0_7] : memref<2x10xf32, #tpu.memory_space<vmem>>, vector<2x10xf32>
    tpu.vector_store %arg7[%c0_6, %c0_7], %7 {strides = array<i32>} : memref<2x10xf32, #tpu.memory_space<vmem>>, vector<2x10xf32>,
    %c2_i32 = arith.constant 2 : i32
    %9 = arith.cmpi eq, %arg2, %c2_i32 : i32
    %10 = arith.extui %9 : i1 to i32
    %c0_i32_8 = arith.constant 0 : i32
    %11 = arith.cmpi ne, %10, %c0_i32_8 : i32
    scf.if %11 {
      %c0_9 = arith.constant 0 : index
      %c0_10 = arith.constant 0 : index
      %12 = vector.load %arg7[%c0_9, %c0_10] : memref<2x10xf32, #tpu.memory_space<vmem>>, vector<2x10xf32>
      %c0_11 = arith.constant 0 : index
      %c0_12 = arith.constant 0 : index
      %13 = vector.load %arg5[%c0_11, %c0_12] : memref<1x10xf32, #tpu.memory_space<vmem>>, vector<1x10xf32>
      %14 = vector.broadcast %13 : vector<1x10xf32> to vector<2x10xf32>
      %15 = arith.addf %12, %14 : vector<2x10xf32>
      %c0_13 = arith.constant 0 : index
      %c0_14 = arith.constant 0 : index
      %16 = vector.load %arg6[%c0_13, %c0_14] : memref<2x10xf32, #tpu.memory_space<vmem>>, vector<2x10xf32>
      tpu.vector_store %arg6[%c0_13, %c0_14], %15 {strides = array<i32>} : memref<2x10xf32, #tpu.memory_space<vmem>>, vector<2x10xf32>,
    } else {
    }
    return
  }
  func.func @transform_0(%arg0: i32, %arg1: i32, %arg2: i32) -> (i32, i32) {
    %c0_i32 = arith.constant 0 : i32
    return %arg0, %arg2 : i32, i32
  }
  func.func @transform_1(%arg0: i32, %arg1: i32, %arg2: i32) -> (i32, i32) {
    %c0_i32 = arith.constant 0 : i32
    return %arg2, %arg1 : i32, i32
  }
  func.func @transform_2(%arg0: i32, %arg1: i32, %arg2: i32) -> (i32, i32) {
    %c0_i32 = arith.constant 0 : i32
    %c0_i32_0 = arith.constant 0 : i32
    return %c0_i32, %arg1 : i32, i32
  }
  func.func @transform_3(%arg0: i32, %arg1: i32, %arg2: i32) -> (i32, i32) {
    %c0_i32 = arith.constant 0 : i32
    return %arg0, %arg1 : i32, i32
  }
}

</mosaic_0001>

<bundles_post_ra>
// kernel: tile.8
= control target key start
LH: loop header
LB: loop body
LE: loop exit
PB: predicated region body
PF: predicated region fallthrough
CT: control target
= control target key end

     0   :  { %s40_s0 = inlined_call_operand.vmem [shape: f32[3], index: 0, kind: input, shape index: {}]   ;;  %s41_s1 = inlined_call_operand.vmem [shape: f32[25,3], index: 1, kind: output, shape index: {}]  }
   0x1   :  { %v4_v0 = vld [vmem:[%s40_s0] ss:$0 sm:$0xff] }
   0x2   :  { %5 = vst [vmem:[%s41_s1] sm:$0xff] %v4_v0  ;;  %12 = vst [vmem:[%s41_s1 + $0x8] sm:$0xff] %v4_v0 }
   0x3   :  { %13 = vst [vmem:[%s41_s1 + $0x10] sm:$0xff] %v4_v0  ;;  %14 = vst [vmem:[%s41_s1 + $0x18] sm:$0xff] %v4_v0 }

// kernel: tile.9
= control target key start
LH: loop header
LB: loop body
LE: loop exit
PB: predicated region body
PF: predicated region fallthrough
CT: control target
= control target key end

     0   :  { %s203_s10 = smov 72   ;;  %s204_s11 = smov 66   ;;  %vm3_vm0 = vcmask 23552   ;;  %vm9_vm1 = vcmask 613952   ;;  %vm15_vm2 = vcmask 589352   ;;  %vm21_vm3 = vcmask 564752   ;;  %s315_s0 = inlined_call_operand.vmem [shape: f32[25,3], index: 0, kind: input, shape index: {}]   ;;  %s316_s1 = inlined_call_operand.vmem [shape: f32[75], index: 1, kind: output, shape index: {}]  }
   0x1   :  { %v155_v0 = vld [vmem:[%s315_s0 + $0x18] sm:$0x1]   ;;  %v157_v1 = vld [vmem:[%s315_s0 + $0x16] sm:$0x1]   ;;  %v156_v2 = vld [vmem:[%s315_s0 + $0x17] sm:$0x1]  }
   0x2   :  { %7 = vrot.lane.b32.xlu0 %v155_v0, %s203_s10  ;;  %19 = vrot.lane.b32.xlu1 %v157_v1, %s204_s11  ;;  %v158_v3 = vld [vmem:[%s315_s0 + $0x15] sm:$0x1]   ;;  %s205_s16 = smov 69   ;;  %s206_s17 = smov 63   ;;  %v159_v4 = vld [vmem:[%s315_s0 + $0x14] sm:$0x1]  }
   0x3   :  { %v160_v5 = vld [vmem:[%s315_s0 + $0x13] sm:$0x1]   ;;  %s207_s22 = smov 60   ;;  %s208_s23 = smov 57   ;;  %v161_v6 = vld [vmem:[%s315_s0 + $0x12] sm:$0x1]  }
   0x4   :  { %v162_v7 = vld [vmem:[%s315_s0 + $0x11] sm:$0x1]   ;;  %v2_v8 = vld [vmem:[%s315_s0] sm:$0x1]   ;;  %s209_s30 = smov 54   ;;  %s210_s2 = smov 51  }
   0x5   :  { %4 = vst.msk [vmem:[#allocation0] sm:$0x1] %vm3_vm0, %v2_v8   ;;  %v163_v9 = vld [vmem:[%s315_s0 + $0x10] sm:$0x1]   ;;  %v164_v10 = vld [vmem:[%s315_s0 + $0xf] sm:$0x1]  }
   0x6   :  { %13 = vrot.lane.b32.xlu0 %v156_v2, %s205_s16  ;;  %25 = vrot.lane.b32.xlu1 %v158_v3, %s206_s17  ;;  %s211_s7 = smov 48   ;;  %s212_s8 = smov 45   ;;  %v165_v11 = vld [vmem:[%s315_s0 + $0xe] sm:$0x1]   ;;  %v166_v12 = vld [vmem:[%s315_s0 + $0xd] sm:$0x1]  }
   0x7   :  { %s213_s13 = smov 42   ;;  %s214_s14 = smov 39   ;;  %v167_v13 = vld [vmem:[%s315_s0 + $0xc] sm:$0x1]   ;;  %v168_v14 = vld [vmem:[%s315_s0 + $0xb] sm:$0x1]  }
   0x8   :  { %s215_s19 = smov 36   ;;  %s216_s20 = smov 33   ;;  %v169_v15 = vld [vmem:[%s315_s0 + $0xa] sm:$0x1]   ;;  %v170_v16 = vld [vmem:[%s315_s0 + $0x9] sm:$0x1]  }
   0x9   :  { %s217_s25 = smov 30   ;;  %s218_s26 = smov 27   ;;  %v171_v17 = vld [vmem:[%s315_s0 + $0x8] sm:$0x1]   ;;  %v172_v18 = vld [vmem:[%s315_s0 + $0x7] sm:$0x1]  }
   0xa   :  { %31 = vrot.lane.b32.xlu0 %v159_v4, %s207_s22  ;;  %37 = vrot.lane.b32.xlu1 %v160_v5, %s208_s23  ;;  %s220_s3 = smov 21   ;;  %v173_v19 = vld [vmem:[%s315_s0 + $0x6] sm:$0x1]   ;;  %v174_v20 = vld [vmem:[%s315_s0 + $0x5] sm:$0x1]   ;;  %s222_s9 = smov 15  }
   0xb   :  { %v175_v21 = vld [vmem:[%s315_s0 + $0x4] sm:$0x1]   ;;  %v176_v22 = vld [vmem:[%s315_s0 + $0x3] sm:$0x1]   ;;  %s224_s15 = smov 9   ;;  %vm27_vm4 = vcmask 540152  }
   0xc   :  { %v177_v23 = vld [vmem:[%s315_s0 + $0x2] sm:$0x1]   ;;  %v178_v24 = vld [vmem:[%s315_s0 + $0x1] sm:$0x1]   ;;  %s225_s0 = smov 6   ;;  %vm33_vm5 = vcmask 515552  }
   0xd   :  { %vm39_vm6 = vcmask 490952   ;;  %vm45_vm7 = vcmask 466352   ;;  %vm51_vm8 = vcmask 441752   ;;  %vm57_vm9 = vcmask 417152  }
   0xe   :  { %43 = vrot.lane.b32.xlu0 %v161_v6, %s209_s30  ;;  %49 = vrot.lane.b32.xlu1 %v162_v7, %s210_s2  ;;  %s219_s2 = smov 24   ;;  %vm63_vm10 = vcmask 392552   ;;  %vm69_vm11 = vcmask 367952   ;;  %vm75_vm12 = vcmask 343352   ;;  %vm81_vm13 = vcmask 318752  }
   0xf   :  { %vm87_vm14 = vcmask 294152   ;;  %vm93_vm15 = vcmask 269552   ;;  %vm99_vm0 = vcmask 244952  }
  0x12   :  { %55 = vrot.lane.b32.xlu0 %v163_v9, %s211_s7  ;;  %61 = vrot.lane.b32.xlu1 %v164_v10, %s212_s8  ;;  %s221_s8 = smov 18  }
  0x16   :  { %67 = vrot.lane.b32.xlu0 %v165_v11, %s213_s13  ;;  %73 = vrot.lane.b32.xlu1 %v166_v12, %s214_s14  ;;  %s223_s14 = smov 12  }
  0x1a   :  { %79 = vrot.lane.b32.xlu0 %v167_v13, %s215_s19  ;;  %85 = vrot.lane.b32.xlu1 %v168_v14, %s216_s20  ;;  %s226_s20 = smov 3  }
  0x1e   :  { %91 = vrot.lane.b32.xlu0 %v169_v15, %s217_s25  ;;  %97 = vrot.lane.b32.xlu1 %v170_v16, %s218_s26 }
  0x22   :  { %103 = vrot.lane.b32.xlu0 %v171_v17, %s219_s2  ;;  %109 = vrot.lane.b32.xlu1 %v172_v18, %s220_s3 }
  0x26   :  { %115 = vrot.lane.b32.xlu0 %v173_v19, %s221_s8  ;;  %121 = vrot.lane.b32.xlu1 %v174_v20, %s222_s9 }
  0x2a   :  { %127 = vrot.lane.b32.xlu0 %v175_v21, %s223_s14  ;;  %133 = vrot.lane.b32.xlu1 %v176_v22, %s224_s15 }
  0x2e   :  { %139 = vrot.lane.b32.xlu0 %v177_v23, %s225_s0  ;;  %145 = vrot.lane.b32.xlu1 %v178_v24, %s226_s20 }
  0x74   :  { %v8_v25 = vpop.permute.xlu0 %7   ;;  %v20_v26 = vpop.permute.xlu1 %19  }
  0x75   :  { %10 = vst.msk [vmem:[#allocation0] sm:$0x1] %vm9_vm1, %v8_v25   ;;  %vm105_vm1 = vcmask 220352  }
  0x78   :  { %v14_v27 = vpop.permute.xlu0 %13   ;;  %v26_v28 = vpop.permute.xlu1 %25  }
  0x79   :  { %16 = vst.msk [vmem:[#allocation0] sm:$0x1] %vm15_vm2, %v14_v27   ;;  %vm111_vm2 = vcmask 195752  }
  0x7a   :  { %22 = vst.msk [vmem:[#allocation0] sm:$0x1] %vm21_vm3, %v20_v26   ;;  %vm117_vm3 = vcmask 171152  }
  0x7b   :  { %28 = vst.msk [vmem:[#allocation0] sm:$0x1] %vm27_vm4, %v26_v28   ;;  %vm123_vm4 = vcmask 146552  }
  0x7c   :  { %v32_v29 = vpop.permute.xlu0 %31   ;;  %v38_v30 = vpop.permute.xlu1 %37  }
  0x7d   :  { %34 = vst.msk [vmem:[#allocation0] sm:$0x1] %vm33_vm5, %v32_v29   ;;  %vm129_vm5 = vcmask 121952  }
  0x7e   :  { %40 = vst.msk [vmem:[#allocation0] sm:$0x1] %vm39_vm6, %v38_v30   ;;  %vm135_vm6 = vcmask 97352  }
  0x80   :  { %v44_v31 = vpop.permute.xlu0 %43   ;;  %v50_v32 = vpop.permute.xlu1 %49  }
  0x81   :  { %46 = vst.msk [vmem:[#allocation0] sm:$0x1] %vm45_vm7, %v44_v31   ;;  %vm141_vm7 = vcmask 72752  }
  0x82   :  { %52 = vst.msk [vmem:[#allocation0] sm:$0x1] %vm51_vm8, %v50_v32   ;;  %vm147_vm8 = vcmask 48152  }
  0x84   :  { %v56_v33 = vpop.permute.xlu0 %55   ;;  %v62_v34 = vpop.permute.xlu1 %61  }
  0x85   :  { %58 = vst.msk [vmem:[#allocation0] sm:$0x1] %vm57_vm9, %v56_v33  }
  0x86   :  { %64 = vst.msk [vmem:[#allocation0] sm:$0x1] %vm63_vm10, %v62_v34  }
  0x88   :  { %v68_v35 = vpop.permute.xlu0 %67   ;;  %v74_v36 = vpop.permute.xlu1 %73  }
  0x89   :  { %70 = vst.msk [vmem:[#allocation0] sm:$0x1] %vm69_vm11, %v68_v35  }
  0x8a   :  { %76 = vst.msk [vmem:[#allocation0] sm:$0x1] %vm75_vm12, %v74_v36  }
  0x8c   :  { %v80_v37 = vpop.permute.xlu0 %79   ;;  %v86_v38 = vpop.permute.xlu1 %85  }
  0x8d   :  { %82 = vst.msk [vmem:[#allocation0] sm:$0x1] %vm81_vm13, %v80_v37  }
  0x8e   :  { %88 = vst.msk [vmem:[#allocation0] sm:$0x1] %vm87_vm14, %v86_v38  }
  0x90   :  { %v92_v39 = vpop.permute.xlu0 %91   ;;  %v98_v40 = vpop.permute.xlu1 %97  }
  0x91   :  { %94 = vst.msk [vmem:[#allocation0] sm:$0x1] %vm93_vm15, %v92_v39  }
  0x92   :  { %100 = vst.msk [vmem:[#allocation0] sm:$0x1] %vm99_vm0, %v98_v40  }
  0x94   :  { %v104_v41 = vpop.permute.xlu0 %103   ;;  %v110_v42 = vpop.permute.xlu1 %109  }
  0x95   :  { %106 = vst.msk [vmem:[#allocation0] sm:$0x1] %vm105_vm1, %v104_v41  }
  0x96   :  { %112 = vst.msk [vmem:[#allocation0] sm:$0x1] %vm111_vm2, %v110_v42  }
  0x98   :  { %v116_v43 = vpop.permute.xlu0 %115   ;;  %v122_v44 = vpop.permute.xlu1 %121  }
  0x99   :  { %118 = vst.msk [vmem:[#allocation0] sm:$0x1] %vm117_vm3, %v116_v43  }
  0x9a   :  { %124 = vst.msk [vmem:[#allocation0] sm:$0x1] %vm123_vm4, %v122_v44  }
  0x9c   :  { %v128_v45 = vpop.permute.xlu0 %127   ;;  %v134_v46 = vpop.permute.xlu1 %133  }
  0x9d   :  { %130 = vst.msk [vmem:[#allocation0] sm:$0x1] %vm129_vm5, %v128_v45  }
  0x9e   :  { %136 = vst.msk [vmem:[#allocation0] sm:$0x1] %vm135_vm6, %v134_v46  }
  0xa0   :  { %v140_v47 = vpop.permute.xlu0 %139   ;;  %v146_v48 = vpop.permute.xlu1 %145  }
  0xa1   :  { %142 = vst.msk [vmem:[#allocation0] sm:$0x1] %vm141_vm7, %v140_v47  }
  0xa2   :  { %148 = vst.msk [vmem:[#allocation0] sm:$0x1] %vm147_vm8, %v146_v48  }
  0xa9   :  { %v152_v49 = vld [vmem:[#allocation0] sm:$0x1] }
  0xaa   :  { %154 = vst [vmem:[%s316_s1] sm:$0x1] %v152_v49 }

// kernel: net_backpropagation_depth_forward.4
= control target key start
LH: loop header
LB: loop body
LE: loop exit
PB: predicated region body
PF: predicated region fallthrough
CT: control target
= control target key end

     0   :  { %s1113_s9 = smov 0   ;;  %s1115_s10 = smov 0   ;;  %s1226_s0 = inlined_call_operand.vmem [shape: bf16[2048,128], index: 0, kind: input, shape index: {}]   ;;  %s1227_s1 = inlined_call_operand.vmem [shape: bf16[128,128], index: 1, kind: input, shape index: {}]   ;;  %s1228_s2 = inlined_call_operand.vmem [shape: f32[2048,128], index: 2, kind: output, shape index: {}]  }
   0x1   :  { %s1117_s11 = smov 0  }
   0x2 LB: > { %s31_s12 = sadd.s32 1, %s1092_s10  ;;  %p907_p0 = scmp.ge.s32.totalorder %s1096_s11, 1  ;;  %s1096_s11 = sphi %s1117_s11, %s12_s11   ;;  %s1092_s10 = sphi %s1115_s10, %s1230_s10   ;;  %s1088_s9 = sphi %s1113_s9, %s1229_s9  }
   0x3   : > { %p33_p1 = scmp.ge.s32.totalorder %s31_s12, 8  ;;  %p155_p2 = scmp.lt.s32.totalorder %s1096_s11, 9 }
   0x5   : > { %s1232_s12 = smov (%p33_p1, %s31_s12), 0  ;;  %p156_p3 = pnand %p907_p0, %p155_p2 }
   0x6   : > { %v1050_v0 = vld [vmem:[%s1227_s1] sm:$0xff] (!%p156_p3)   ;;  %s908_s15 = sshll.u32 (!%p156_p3), %s1088_s9, 5  ;;  %v1051_v1 = vld [vmem:[%s1227_s1 + $0x8] sm:$0xff] (!%p156_p3)   ;;  %v1052_v2 = vld [vmem:[%s1227_s1 + $0x10] sm:$0xff] (!%p156_p3)  }
   0x7   : > { %159 = sbr.rel (%p156_p3) target bundleno = 281 (0x119), region = 28  ;;  %p192_p4 = scmp.lt.s32.totalorder (!%p156_p3), %s908_s15, 255  ;;  %962 = vmatprep.subr.bf16.mxu0 (!%p156_p3), %v1050_v0  ;;  %1010 = vmatprep.subr.bf16.mxu1 (!%p156_p3), %v1050_v0  ;;  %v1053_v3 = vld [vmem:[%s1227_s1 + $0x18] sm:$0xff] (!%p156_p3)   ;;  %v1054_v6 = vld [vmem:[%s1227_s1 + $0x20] sm:$0xff] (!%p156_p3)   ;;  %v1055_v7 = vld [vmem:[%s1227_s1 + $0x28] sm:$0xff] (!%p156_p3)  }
   0x8   : > { %963 = vmatpush3.bf16.msra.mxu0 (!%p156_p3), %v1050_v0  ;;  %1018 = vmatpush3.bf16.msra.mxu1 (!%p156_p3), %v1050_v0  ;;  %v1056_v8 = vld [vmem:[%s1227_s1 + $0x30] sm:$0xff] (!%p156_p3)   ;;  %v1057_v9 = vld [vmem:[%s1227_s1 + $0x38] sm:$0xff] (!%p156_p3)  }
   0x9   : > { %964 = vmatprep.subr.bf16.mxu0 (!%p156_p3), %v1051_v1  ;;  %1011 = vmatprep.subr.bf16.mxu1 (!%p156_p3), %v1051_v1 }
   0xc   : > { %965 = vmatpush3.bf16.msra.mxu0 (!%p156_p3), %v1051_v1  ;;  %1019 = vmatpush3.bf16.msra.mxu1 (!%p156_p3), %v1051_v1 }
   0xd   : > { %966 = vmatprep.subr.bf16.mxu0 (!%p156_p3), %v1052_v2  ;;  %1012 = vmatprep.subr.bf16.mxu1 (!%p156_p3), %v1052_v2 }
   0xe   : > { %s1234_s15 = smov (!%p192_p4, %s908_s15), 255 }
   0xf   : > { %s909_s20 = sshll.u32 %s1234_s15, 2  ;;  %s911_s6 = sshll.u32 %s1234_s15, 3 }
  0x10   : > { %s1146_s23 = scalar_lea.vmem %s1226_s0, %s909_s20  ;;  %967 = vmatpush3.bf16.msra.mxu0 %v1052_v2  ;;  %1020 = vmatpush3.bf16.msra.mxu1 %v1052_v2  ;;  %s1183_s9 = scalar_lea.vmem %s1228_s2, %s911_s6 }
  0x11   : > { %v1058_v4 = vld [vmem:[%s1146_s23] sm:$0xff]   ;;  %968 = vmatprep.subr.bf16.mxu0 %v1053_v3  ;;  %1013 = vmatprep.subr.bf16.mxu1 %v1053_v3  ;;  %v1060_v10 = vld [vmem:[%s1146_s23 + $0x8] sm:$0xff]   ;;  %v1062_v12 = vld [vmem:[%s1146_s23 + $0x10] sm:$0xff]  }
  0x12   : > { %v1059_v5 = vld [vmem:[%s1146_s23 + $0x40] sm:$0xff]   ;;  %978 = vmatprep.mubr.bf16.mxu0 %v1058_v4  ;;  %v1061_v11 = vld [vmem:[%s1146_s23 + $0x48] sm:$0xff]   ;;  %v1063_v13 = vld [vmem:[%s1146_s23 + $0x50] sm:$0xff]  }
  0x13   : > { %994 = vmatprep.mubr.bf16.mxu1 %v1059_v5  ;;  %v1064_v14 = vld [vmem:[%s1146_s23 + $0x18] sm:$0xff]   ;;  %v1066_v16 = vld [vmem:[%s1146_s23 + $0x20] sm:$0xff]   ;;  %v1068_v18 = vld [vmem:[%s1146_s23 + $0x28] sm:$0xff]  }
  0x14   : > { %969 = vmatpush3.bf16.msra.mxu0 %v1053_v3  ;;  %1021 = vmatpush3.bf16.msra.mxu1 %v1053_v3  ;;  %v1065_v15 = vld [vmem:[%s1146_s23 + $0x58] sm:$0xff]   ;;  %v1067_v17 = vld [vmem:[%s1146_s23 + $0x60] sm:$0xff]   ;;  %v1069_v19 = vld [vmem:[%s1146_s23 + $0x68] sm:$0xff]  }
  0x15   : > { %970 = vmatprep.subr.bf16.mxu0 %v1054_v6  ;;  %1014 = vmatprep.subr.bf16.mxu1 %v1054_v6  ;;  %v1070_v20 = vld [vmem:[%s1146_s23 + $0x30] sm:$0xff]   ;;  %v1072_v22 = vld [vmem:[%s1146_s23 + $0x38] sm:$0xff]  }
  0x16   : > { %v1071_v21 = vld [vmem:[%s1146_s23 + $0x70] sm:$0xff]   ;;  %v1073_v23 = vld [vmem:[%s1146_s23 + $0x78] sm:$0xff]  }
  0x18   : > { %971 = vmatpush3.bf16.msra.mxu0 %v1054_v6  ;;  %1022 = vmatpush3.bf16.msra.mxu1 %v1054_v6 }
  0x19   : > { %972 = vmatprep.subr.bf16.mxu0 %v1055_v7  ;;  %1015 = vmatprep.subr.bf16.mxu1 %v1055_v7 }
  0x1c   : > { %973 = vmatpush3.bf16.msra.mxu0 %v1055_v7  ;;  %1023 = vmatpush3.bf16.msra.mxu1 %v1055_v7 }
  0x1d   : > { %974 = vmatprep.subr.bf16.mxu0 %v1056_v8  ;;  %1016 = vmatprep.subr.bf16.mxu1 %v1056_v8 }
  0x20   : > { %975 = vmatpush3.bf16.msra.mxu0 %v1056_v8  ;;  %1024 = vmatpush3.bf16.msra.mxu1 %v1056_v8 }
  0x21   : > { %976 = vmatprep.subr.bf16.mxu0 %v1057_v9  ;;  %1017 = vmatprep.subr.bf16.mxu1 %v1057_v9 }
  0x24   : > { %977 = vmatpush3.bf16.msra.mxu0 %v1057_v9  ;;  %1025 = vmatpush3.bf16.msra.mxu1 %v1057_v9 }
  0x27   : > { %979 = vmatmul.mubr.bf16.vlgmr.msra.gmra.mrb[0].mxu0 %v1060_v10  ;;  %995 = vmatmul.mubr.bf16.vlgmr.msra.gmra.mrb[0].mxu1 %v1061_v11 }
  0x28   : > { %982 = vmatprep.mubr.bf16.mxu0 %v1062_v12  ;;  %998 = vmatprep.mubr.bf16.mxu1 %v1063_v13 }
  0x2f   : > { %983 = vmatmul.mubr.bf16.gmra.mrb[4].mxu0 %v1064_v14  ;;  %999 = vmatmul.mubr.bf16.gmra.mrb[4].mxu1 %v1065_v15 }
  0x30   : > { %986 = vmatprep.mubr.bf16.mxu0 %v1066_v16  ;;  %1002 = vmatprep.mubr.bf16.mxu1 %v1067_v17 }
  0x37   : > { %987 = vmatmul.mubr.bf16.gmra.mrb[8].mxu0 %v1068_v18  ;;  %1003 = vmatmul.mubr.bf16.gmra.mrb[8].mxu1 %v1069_v19 }
  0x38   : > { %990 = vmatprep.mubr.bf16.mxu0 %v1070_v20  ;;  %1006 = vmatprep.mubr.bf16.mxu1 %v1071_v21 }
  0x3f   : > { %991 = vmatmul.mubr.bf16.gmra.mrb[12].mxu0 %v1072_v22  ;;  %1007 = vmatmul.mubr.bf16.gmra.mrb[12].mxu1 %v1073_v23 }
  0xfa   : > { %v980_v24 = vpop.f32.mrb[0].mxu0  ;;  %v996_v25 = vpop.f32.mrb[0].mxu1 }
  0xfb   : > { %v741_v26 = vmax.f32 %v980_v24, 0.0  ;;  %v757_v27 = vmax.f32 %v996_v25, 0.0  ;;  %v513_v28 = vpop.f32.mrb[1].mxu0  ;;  %v577_v29 = vpop.f32.mrb[1].mxu1 }
  0xfc   : > { %v739_v30 = vmax.f32 %v513_v28, 0.0  ;;  %v755_v31 = vmax.f32 %v577_v29, 0.0  ;;  %v981_v32 = vpop.f32.mrb[2].mxu0  ;;  %v997_v33 = vpop.f32.mrb[2].mxu1 }
  0xfd   : > { %773 = vst [vmem:[%s1183_s9 + $0x10] sm:$0xff] %v741_v26  ;;  %789 = vst [vmem:[%s1183_s9 + $0x90] sm:$0xff] %v757_v27  ;;  %v742_v34 = vmax.f32 %v981_v32, 0.0  ;;  %v758_v35 = vmax.f32 %v997_v33, 0.0  ;;  %v516_v36 = vpop.f32.mrb[3].mxu0  ;;  %v580_v37 = vpop.f32.mrb[3].mxu1 }
  0xfe   : > { %771 = vst [vmem:[%s1183_s9] sm:$0xff] %v739_v30  ;;  %787 = vst [vmem:[%s1183_s9 + $0x80] sm:$0xff] %v755_v31  ;;  %v740_v38 = vmax.f32 %v516_v36, 0.0  ;;  %v756_v39 = vmax.f32 %v580_v37, 0.0 }
  0xff   : > { %774 = vst [vmem:[%s1183_s9 + $0x18] sm:$0xff] %v742_v34  ;;  %790 = vst [vmem:[%s1183_s9 + $0x98] sm:$0xff] %v758_v35 }
 0x100   : > { %772 = vst [vmem:[%s1183_s9 + $0x8] sm:$0xff] %v740_v38  ;;  %788 = vst [vmem:[%s1183_s9 + $0x88] sm:$0xff] %v756_v39 }
 0x102   : > { %v984_v40 = vpop.f32.mrb[4].mxu0  ;;  %v1000_v41 = vpop.f32.mrb[4].mxu1 }
 0x103   : > { %v745_v42 = vmax.f32 %v984_v40, 0.0  ;;  %v761_v43 = vmax.f32 %v1000_v41, 0.0  ;;  %v529_v44 = vpop.f32.mrb[5].mxu0  ;;  %v593_v45 = vpop.f32.mrb[5].mxu1 }
 0x104   : > { %v743_v46 = vmax.f32 %v529_v44, 0.0  ;;  %v759_v47 = vmax.f32 %v593_v45, 0.0  ;;  %v985_v48 = vpop.f32.mrb[6].mxu0  ;;  %v1001_v49 = vpop.f32.mrb[6].mxu1 }
 0x105   : > { %777 = vst [vmem:[%s1183_s9 + $0x30] sm:$0xff] %v745_v42  ;;  %793 = vst [vmem:[%s1183_s9 + $0xb0] sm:$0xff] %v761_v43  ;;  %v746_v50 = vmax.f32 %v985_v48, 0.0  ;;  %v762_v51 = vmax.f32 %v1001_v49, 0.0  ;;  %v532_v52 = vpop.f32.mrb[7].mxu0  ;;  %v596_v53 = vpop.f32.mrb[7].mxu1 }
 0x106   : > { %775 = vst [vmem:[%s1183_s9 + $0x20] sm:$0xff] %v743_v46  ;;  %791 = vst [vmem:[%s1183_s9 + $0xa0] sm:$0xff] %v759_v47  ;;  %v744_v54 = vmax.f32 %v532_v52, 0.0  ;;  %v760_v55 = vmax.f32 %v596_v53, 0.0 }
 0x107   : > { %778 = vst [vmem:[%s1183_s9 + $0x38] sm:$0xff] %v746_v50  ;;  %794 = vst [vmem:[%s1183_s9 + $0xb8] sm:$0xff] %v762_v51 }
 0x108   : > { %776 = vst [vmem:[%s1183_s9 + $0x28] sm:$0xff] %v744_v54  ;;  %792 = vst [vmem:[%s1183_s9 + $0xa8] sm:$0xff] %v760_v55 }
 0x10a   : > { %v988_v56 = vpop.f32.mrb[8].mxu0  ;;  %v1004_v57 = vpop.f32.mrb[8].mxu1 }
 0x10b   : > { %v749_v58 = vmax.f32 %v988_v56, 0.0  ;;  %v765_v59 = vmax.f32 %v1004_v57, 0.0  ;;  %v545_v60 = vpop.f32.mrb[9].mxu0  ;;  %v609_v61 = vpop.f32.mrb[9].mxu1 }
 0x10c   : > { %v747_v62 = vmax.f32 %v545_v60, 0.0  ;;  %v763_v63 = vmax.f32 %v609_v61, 0.0  ;;  %v989_v0 = vpop.f32.mrb[10].mxu0  ;;  %v1005_v1 = vpop.f32.mrb[10].mxu1 }
 0x10d   : > { %781 = vst [vmem:[%s1183_s9 + $0x50] sm:$0xff] %v749_v58  ;;  %797 = vst [vmem:[%s1183_s9 + $0xd0] sm:$0xff] %v765_v59  ;;  %v750_v2 = vmax.f32 %v989_v0, 0.0  ;;  %v766_v3 = vmax.f32 %v1005_v1, 0.0  ;;  %v548_v4 = vpop.f32.mrb[11].mxu0  ;;  %v612_v5 = vpop.f32.mrb[11].mxu1 }
 0x10e   : > { %779 = vst [vmem:[%s1183_s9 + $0x40] sm:$0xff] %v747_v62  ;;  %795 = vst [vmem:[%s1183_s9 + $0xc0] sm:$0xff] %v763_v63  ;;  %v748_v6 = vmax.f32 %v548_v4, 0.0  ;;  %v764_v7 = vmax.f32 %v612_v5, 0.0 }
 0x10f   : > { %782 = vst [vmem:[%s1183_s9 + $0x58] sm:$0xff] %v750_v2  ;;  %798 = vst [vmem:[%s1183_s9 + $0xd8] sm:$0xff] %v766_v3 }
 0x110   : > { %780 = vst [vmem:[%s1183_s9 + $0x48] sm:$0xff] %v748_v6  ;;  %796 = vst [vmem:[%s1183_s9 + $0xc8] sm:$0xff] %v764_v7 }
 0x112   : > { %v992_v8 = vpop.f32.mrb[12].mxu0  ;;  %v1008_v9 = vpop.f32.mrb[12].mxu1 }
 0x113   : > { %v753_v10 = vmax.f32 %v992_v8, 0.0  ;;  %v769_v11 = vmax.f32 %v1008_v9, 0.0  ;;  %v561_v12 = vpop.f32.mrb[13].mxu0  ;;  %v625_v13 = vpop.f32.mrb[13].mxu1 }
 0x114   : > { %v751_v14 = vmax.f32 %v561_v12, 0.0  ;;  %v767_v15 = vmax.f32 %v625_v13, 0.0  ;;  %v993_v16 = vpop.f32.mrb[14].mxu0  ;;  %v1009_v17 = vpop.f32.mrb[14].mxu1 }
 0x115   : > { %785 = vst [vmem:[%s1183_s9 + $0x70] sm:$0xff] %v753_v10  ;;  %801 = vst [vmem:[%s1183_s9 + $0xf0] sm:$0xff] %v769_v11  ;;  %v754_v18 = vmax.f32 %v993_v16, 0.0  ;;  %v770_v19 = vmax.f32 %v1009_v17, 0.0  ;;  %v564_v20 = vpop.f32.mrb[15].mxu0  ;;  %v628_v21 = vpop.f32.mrb[15].mxu1 }
 0x116   : > { %783 = vst [vmem:[%s1183_s9 + $0x60] sm:$0xff] %v751_v14  ;;  %799 = vst [vmem:[%s1183_s9 + $0xe0] sm:$0xff] %v767_v15  ;;  %v752_v22 = vmax.f32 %v564_v20, 0.0  ;;  %v768_v23 = vmax.f32 %v628_v21, 0.0 }
 0x117   : > { %786 = vst [vmem:[%s1183_s9 + $0x78] sm:$0xff] %v754_v18  ;;  %802 = vst [vmem:[%s1183_s9 + $0xf8] sm:$0xff] %v770_v19 }
 0x118   : > { %784 = vst [vmem:[%s1183_s9 + $0x68] sm:$0xff] %v752_v22  ;;  %800 = vst [vmem:[%s1183_s9 + $0xe8] sm:$0xff] %v768_v23 }
 0x119 PF: > { %s12_s11 = sadd.s32 1, %s1096_s11   ;;  %s1229_s9 = smov %s1092_s10 }
 0x11a   : > { %p9_p5 = scmp.ge.s32.totalorder %s12_s11, 10   ;;  %s1230_s10 = smov %s1232_s12 }
 0x11c   :  { %11 = sbr.rel (!%p9_p5) target bundleno = 2 (0x2), region = 69 }

// kernel: neg.16
= control target key start
LH: loop header
LB: loop body
LE: loop exit
PB: predicated region body
PF: predicated region fallthrough
CT: control target
= control target key end

     0   :  { %s24_s0 = inlined_call_operand.vmem [shape: f32[384], index: 0, kind: input, shape index: {}]   ;;  %s25_s1 = inlined_call_operand.vmem [shape: f32[384], index: 1, kind: output, shape index: {}]  }
   0x1   :  { %v2_v0 = vld [vmem:[%s24_s0] sm:$0x7] }
   0x2   :  { %v5_v1 = vxor.u32 2147483648, %v2_v0 }
   0x4   :  { %7 = vst [vmem:[%s25_s1] sm:$0xf] %v5_v1 }

// kernel: net_backpropagation_depth_forward.5
= control target key start
LH: loop header
LB: loop body
LE: loop exit
PB: predicated region body
PF: predicated region fallthrough
CT: control target
= control target key end

     0   :  { %s2095_s12 = smov 0   ;;  %s2097_s13 = smov 0   ;;  %s2459_s0 = inlined_call_operand.vmem [shape: bf16[512,128], index: 0, kind: input, shape index: {}]   ;;  %s2460_s1 = inlined_call_operand.vmem [shape: bf16[128,384], index: 1, kind: input, shape index: {}]   ;;  %s2461_s2 = inlined_call_operand.vmem [shape: f32[1,384], index: 2, kind: input, shape index: {}]   ;;  %s2462_s3 = inlined_call_operand.vmem [shape: f32[512,384], index: 3, kind: output, shape index: {}]  }
   0x1   :  { %s2099_s14 = smov 0  }
   0x2 LB: > { %s32_s15 = sadd.s32 1, %s2068_s13  ;;  %p1841_p0 = scmp.ge.s32.totalorder %s2072_s14, 1  ;;  %s2072_s14 = sphi %s2099_s14, %s13_s14   ;;  %s2068_s13 = sphi %s2097_s13, %s2464_s13   ;;  %s2064_s12 = sphi %s2095_s12, %s2463_s12  }
   0x3   : > { %p34_p1 = scmp.ge.s32.totalorder %s32_s15, 2  ;;  %p193_p2 = scmp.lt.s32.totalorder %s2072_s14, 3 }
   0x5   : > { %s2466_s15 = smov (%p34_p1, %s32_s15), 0  ;;  %p194_p3 = pnand %p1841_p0, %p193_p2 }
   0x6   : > { %v2002_v0 = vld [vmem:[%s2460_s1 + $0x4] ss:$12 sps:$4 sm:$0xff] (!%p194_p3)   ;;  %s1842_s18 = sshll.u32 (!%p194_p3), %s2064_s12, 5  ;;  %v2004_v1 = vld [vmem:[%s2460_s1] ss:$12 sps:$4 sm:$0xff] (!%p194_p3)   ;;  %v2074_v2 = vmov (!%p194_p3), 0   ;;  %v1409_v41 = vlaneseq (!%p194_p3) }
   0x7   : > { %197 = sbr.rel (%p194_p3) target bundleno = 348 (0x15c), region = 32  ;;  %794 = vmatprep.mubr.bf16.mxu0 (!%p194_p3), %v2074_v2  ;;  %914 = vmatprep.mubr.bf16.mxu1 (!%p194_p3), %v2074_v2  ;;  %p240_p4 = scmp.lt.s32.totalorder (!%p194_p3), %s1842_s18, 63  ;;  %v2005_v3 = vld [vmem:[%s2460_s1 + $0x1c] ss:$12 sps:$4 sm:$0xff] (!%p194_p3)   ;;  %v2007_v4 = vld [vmem:[%s2460_s1 + $0x18] ss:$12 sps:$4 sm:$0xff] (!%p194_p3)  }
   0x8   : > { %762 = vmatprep.subr.bf16.mxu0 (!%p194_p3), %v2002_v0  ;;  %1960 = vmatprep.subr.bf16.mxu1 (!%p194_p3), %v2002_v0  ;;  %v2008_v5 = vld [vmem:[%s2460_s1 + $0x34] ss:$12 sps:$4 sm:$0xff] (!%p194_p3)   ;;  %v2010_v6 = vld [vmem:[%s2460_s1 + $0x30] ss:$12 sps:$4 sm:$0xff] (!%p194_p3)   ;;  %v2011_v7 = vld [vmem:[%s2460_s1 + $0x4c] ss:$12 sps:$4 sm:$0xff] (!%p194_p3)  }
   0x9   : > { %763 = vmatpush1.bf16.msra.mxu0 (!%p194_p3), %v2004_v1  ;;  %1968 = vmatpush1.bf16.msra.mxu1 (!%p194_p3), %v2004_v1  ;;  %v2013_v8 = vld [vmem:[%s2460_s1 + $0x48] ss:$12 sps:$4 sm:$0xff] (!%p194_p3)   ;;  %v2014_v9 = vld [vmem:[%s2460_s1 + $0x64] ss:$12 sps:$4 sm:$0xff] (!%p194_p3)   ;;  %v2016_v10 = vld [vmem:[%s2460_s1 + $0x60] ss:$12 sps:$4 sm:$0xff] (!%p194_p3)  }
   0xa   : > { %764 = vmatprep.subr.bf16.mxu0 (!%p194_p3), %v2005_v3  ;;  %1961 = vmatprep.subr.bf16.mxu1 (!%p194_p3), %v2005_v3  ;;  %v2017_v11 = vld [vmem:[%s2460_s1 + $0x7c] ss:$12 sps:$4 sm:$0xff] (!%p194_p3)   ;;  %v2019_v12 = vld [vmem:[%s2460_s1 + $0x78] ss:$12 sps:$4 sm:$0xff] (!%p194_p3)   ;;  %v2020_v13 = vld [vmem:[%s2460_s1 + $0x94] ss:$12 sps:$4 sm:$0xff] (!%p194_p3)  }
   0xb   : > { %v2022_v14 = vld [vmem:[%s2460_s1 + $0x90] ss:$12 sps:$4 sm:$0xff] (!%p194_p3)   ;;  %v2023_v15 = vld [vmem:[%s2460_s1 + $0xac] ss:$12 sps:$4 sm:$0xff] (!%p194_p3)   ;;  %v2025_v16 = vld [vmem:[%s2460_s1 + $0xa8] ss:$12 sps:$4 sm:$0xff] (!%p194_p3)  }
   0xc   : > { %v2028_v17 = vld [vmem:[%s2460_s1 + $0x8] ss:$12 sps:$4 sm:$0xff] (!%p194_p3)   ;;  %v2029_v20 = vld [vmem:[%s2460_s1 + $0x20] ss:$12 sps:$4 sm:$0xff] (!%p194_p3)   ;;  %v2032_v21 = vld [vmem:[%s2460_s1 + $0x38] ss:$12 sps:$4 sm:$0xff] (!%p194_p3)  }
   0xd   : > { %765 = vmatpush1.bf16.msra.mxu0 (!%p194_p3), %v2007_v4  ;;  %1969 = vmatpush1.bf16.msra.mxu1 (!%p194_p3), %v2007_v4  ;;  %v2033_v24 = vld [vmem:[%s2460_s1 + $0x50] ss:$12 sps:$4 sm:$0xff] (!%p194_p3)   ;;  %v2036_v25 = vld [vmem:[%s2460_s1 + $0x68] ss:$12 sps:$4 sm:$0xff] (!%p194_p3)   ;;  %v2037_v28 = vld [vmem:[%s2460_s1 + $0x80] ss:$12 sps:$4 sm:$0xff] (!%p194_p3)  }
   0xe   : > { %s2468_s18 = smov (!%p240_p4, %s1842_s18), 63  ;;  %766 = vmatprep.subr.bf16.mxu0 %v2008_v5  ;;  %1962 = vmatprep.subr.bf16.mxu1 %v2008_v5  ;;  %v2040_v29 = vld [vmem:[%s2460_s1 + $0x98] ss:$12 sps:$4 sm:$0xff]   ;;  %v2041_v32 = vld [vmem:[%s2460_s1 + $0xb0] ss:$12 sps:$4 sm:$0xff]   ;;  %v2233_v42 = vshrl.u32 %v1409_v41, 7 }
   0xf   : > { %s1843_s27 = sshll.u32 %s2468_s18, 2  ;;  %v2239_v44 = vld [vmem:[%s2461_s2] sm:$0x7]  ;;  %s1976_s25 = smul.u32 24, %s2468_s18 }
  0x10   : > { %s2142_s7 = scalar_lea.vmem %s2459_s0, %s1843_s27  ;;  %v1411_v43 = vsub.s32 0, %v2233_v42  ;;  %v1415_v45 = vsub.s32 1, %v2233_v42 }
  0x11   : > { %767 = vmatpush1.bf16.msra.mxu0 %v2010_v6  ;;  %1970 = vmatpush1.bf16.msra.mxu1 %v2010_v6  ;;  %v2026_v18 = vld [vmem:[%s2142_s7] sm:$0xff]   ;;  %v2030_v22 = vld [vmem:[%s2142_s7 + $0x8] sm:$0xff]   ;;  %v2034_v26 = vld [vmem:[%s2142_s7 + $0x10] sm:$0xff]   ;;  %s2254_s28 = scalar_lea.vmem %s2462_s3, %s1976_s25 }
  0x12   : > { %768 = vmatprep.subr.bf16.mxu0 %v2011_v7  ;;  %1963 = vmatprep.subr.bf16.mxu1 %v2011_v7  ;;  %v2176_v19 = vld [vmem:[%s2142_s7 + $0x60] sm:$0xff]   ;;  %v2189_v23 = vld [vmem:[%s2142_s7 + $0x68] sm:$0xff]   ;;  %v2035_v27 = vld [vmem:[%s2142_s7 + $0x70] sm:$0xff]   ;;  %v2243_v46 = vrot.slane %v2239_v44, %v1411_v43  ;;  %v2247_v47 = vrot.slane %v2239_v44, %v1415_v45 }
  0x13   : > { %v2038_v30 = vld [vmem:[%s2142_s7 + $0x18] sm:$0xff]   ;;  %v2042_v33 = vld [vmem:[%s2142_s7 + $0x20] sm:$0xff]   ;;  %v2043_v34 = vld [vmem:[%s2142_s7 + $0x28] sm:$0xff]  }
  0x14   : > { %v2039_v31 = vld [vmem:[%s2142_s7 + $0x78] sm:$0xff]   ;;  %v2044_v35 = vld [vmem:[%s2142_s7 + $0x30] sm:$0xff]   ;;  %v2046_v37 = vld [vmem:[%s2142_s7 + $0x40] sm:$0xff]  }
  0x15   : > { %769 = vmatpush1.bf16.msra.mxu0 %v2013_v8  ;;  %1971 = vmatpush1.bf16.msra.mxu1 %v2013_v8  ;;  %v2045_v36 = vld [vmem:[%s2142_s7 + $0x38] sm:$0xff]   ;;  %v2047_v38 = vld [vmem:[%s2142_s7 + $0x48] sm:$0xff]   ;;  %v2048_v39 = vld [vmem:[%s2142_s7 + $0x50] sm:$0xff]  }
  0x16   : > { %770 = vmatprep.subr.bf16.mxu0 %v2014_v9  ;;  %1964 = vmatprep.subr.bf16.mxu1 %v2014_v9  ;;  %v2049_v40 = vld [vmem:[%s2142_s7 + $0x58] sm:$0xff]  }
  0x19   : > { %771 = vmatpush1.bf16.msra.mxu0 %v2016_v10  ;;  %1972 = vmatpush1.bf16.msra.mxu1 %v2016_v10 }
  0x1a   : > { %772 = vmatprep.subr.bf16.mxu0 %v2017_v11  ;;  %1965 = vmatprep.subr.bf16.mxu1 %v2017_v11 }
  0x1d   : > { %773 = vmatpush1.bf16.msra.mxu0 %v2019_v12  ;;  %1973 = vmatpush1.bf16.msra.mxu1 %v2019_v12 }
  0x1e   : > { %774 = vmatprep.subr.bf16.mxu0 %v2020_v13  ;;  %1966 = vmatprep.subr.bf16.mxu1 %v2020_v13 }
  0x21   : > { %775 = vmatpush1.bf16.msra.mxu0 %v2022_v14  ;;  %1974 = vmatpush1.bf16.msra.mxu1 %v2022_v14 }
  0x22   : > { %776 = vmatprep.subr.bf16.mxu0 %v2023_v15  ;;  %1967 = vmatprep.subr.bf16.mxu1 %v2023_v15 }
  0x25   : > { %777 = vmatpush1.bf16.msra.mxu0 %v2025_v16  ;;  %1975 = vmatpush1.bf16.msra.mxu1 %v2025_v16 }
  0x26   : > { %1912 = vmatprep.subr.bf16.mxu1 %v2028_v17 }
  0x28   : > { %795 = vmatmul.mubr.bf16.vlgmr.msra.gmra.mrb[0].mxu0 %v2026_v18  ;;  %915 = vmatmul.mubr.bf16.vlgmr.msra.gmra.mrb[0].mxu1 %v2176_v19 }
  0x29   : > { %1913 = vmatpush3.bf16.msra.mxu1 %v2028_v17  ;;  %804 = vmatprep.mubr.bf16.mxu0 %v2074_v2 }
  0x2a   : > { %1914 = vmatprep.subr.bf16.mxu1 %v2029_v20  ;;  %924 = vmatprep.mubr.bf16.mxu1 %v2074_v2 }
  0x2d   : > { %1915 = vmatpush3.bf16.msra.mxu1 %v2029_v20 }
  0x2e   : > { %1916 = vmatprep.subr.bf16.mxu1 %v2032_v21 }
  0x30   : > { %805 = vmatmul.mubr.bf16.gmra.mrb[4].mxu0 %v2030_v22  ;;  %925 = vmatmul.mubr.bf16.gmra.mrb[4].mxu1 %v2189_v23 }
  0x31   : > { %1917 = vmatpush3.bf16.msra.mxu1 %v2032_v21  ;;  %814 = vmatprep.mubr.bf16.mxu0 %v2074_v2 }
  0x32   : > { %1918 = vmatprep.subr.bf16.mxu1 %v2033_v24  ;;  %934 = vmatprep.mubr.bf16.mxu1 %v2074_v2 }
  0x35   : > { %1919 = vmatpush3.bf16.msra.mxu1 %v2033_v24 }
  0x36   : > { %1920 = vmatprep.subr.bf16.mxu1 %v2036_v25 }
  0x38   : > { %815 = vmatmul.mubr.bf16.gmra.mrb[8].mxu0 %v2034_v26  ;;  %935 = vmatmul.mubr.bf16.gmra.mrb[8].mxu1 %v2035_v27 }
  0x39   : > { %1921 = vmatpush3.bf16.msra.mxu1 %v2036_v25  ;;  %824 = vmatprep.mubr.bf16.mxu0 %v2074_v2 }
  0x3a   : > { %1922 = vmatprep.subr.bf16.mxu1 %v2037_v28  ;;  %944 = vmatprep.mubr.bf16.mxu1 %v2074_v2 }
  0x3d   : > { %1923 = vmatpush3.bf16.msra.mxu1 %v2037_v28 }
  0x3e   : > { %1924 = vmatprep.subr.bf16.mxu1 %v2040_v29 }
  0x40   : > { %825 = vmatmul.mubr.bf16.gmra.mrb[12].mxu0 %v2038_v30  ;;  %945 = vmatmul.mubr.bf16.gmra.mrb[12].mxu1 %v2039_v31 }
  0x41   : > { %1925 = vmatpush3.bf16.msra.mxu1 %v2040_v29  ;;  %834 = vmatprep.mubr.bf16.mxu0 %v2074_v2 }
  0x42   : > { %1926 = vmatprep.subr.bf16.mxu1 %v2041_v32  ;;  %1928 = vmatprep.mubr.bf16.mxu1 %v2026_v18 }
  0x45   : > { %1927 = vmatpush3.bf16.msra.mxu1 %v2041_v32 }
  0x48   : > { %835 = vmatmul.mubr.bf16.gmra.mrb[16].mxu0 %v2042_v33  ;;  %1929 = vmatmul.mubr.bf16.vlgmr.msra.gmra.mrb[16].mxu1 %v2030_v22 }
  0x49   : > { %844 = vmatprep.mubr.bf16.mxu0 %v2074_v2  ;;  %1932 = vmatprep.mubr.bf16.mxu1 %v2034_v26 }
  0x50   : > { %845 = vmatmul.mubr.bf16.gmra.mrb[20].mxu0 %v2043_v34  ;;  %1933 = vmatmul.mubr.bf16.gmra.mrb[20].mxu1 %v2038_v30 }
  0x51   : > { %854 = vmatprep.mubr.bf16.mxu0 %v2074_v2  ;;  %1936 = vmatprep.mubr.bf16.mxu1 %v2042_v33 }
  0x58   : > { %855 = vmatmul.mubr.bf16.gmra.mrb[24].mxu0 %v2044_v35  ;;  %1937 = vmatmul.mubr.bf16.gmra.mrb[24].mxu1 %v2043_v34 }
  0x59   : > { %864 = vmatprep.mubr.bf16.mxu0 %v2074_v2  ;;  %1940 = vmatprep.mubr.bf16.mxu1 %v2044_v35 }
  0x60   : > { %865 = vmatmul.mubr.bf16.gmra.mrb[28].mxu0 %v2045_v36  ;;  %1941 = vmatmul.mubr.bf16.gmra.mrb[28].mxu1 %v2045_v36 }
  0x61   : > { %874 = vmatprep.mubr.bf16.mxu0 %v2074_v2  ;;  %1944 = vmatprep.mubr.bf16.mxu1 %v2046_v37 }
  0x68   : > { %875 = vmatmul.mubr.bf16.gmra.mrb[32].mxu0 %v2046_v37  ;;  %1945 = vmatmul.mubr.bf16.gmra.mrb[32].mxu1 %v2047_v38 }
  0x69   : > { %884 = vmatprep.mubr.bf16.mxu0 %v2074_v2  ;;  %1948 = vmatprep.mubr.bf16.mxu1 %v2048_v39 }
  0x70   : > { %885 = vmatmul.mubr.bf16.gmra.mrb[36].mxu0 %v2047_v38  ;;  %1949 = vmatmul.mubr.bf16.gmra.mrb[36].mxu1 %v2049_v40 }
  0x71   : > { %894 = vmatprep.mubr.bf16.mxu0 %v2074_v2  ;;  %1952 = vmatprep.mubr.bf16.mxu1 %v2176_v19 }
  0x78   : > { %895 = vmatmul.mubr.bf16.gmra.mrb[40].mxu0 %v2048_v39  ;;  %1953 = vmatmul.mubr.bf16.gmra.mrb[40].mxu1 %v2189_v23 }
  0x79   : > { %904 = vmatprep.mubr.bf16.mxu0 %v2074_v2  ;;  %1956 = vmatprep.mubr.bf16.mxu1 %v2035_v27 }
  0x80   : > { %905 = vmatmul.mubr.bf16.gmra.mrb[44].mxu0 %v2049_v40  ;;  %1957 = vmatmul.mubr.bf16.gmra.mrb[44].mxu1 %v2039_v31 }
  0xfb   : > { %v796_v48 = vpop.f32.mrb[0].mxu0  ;;  %v916_v49 = vpop.f32.mrb[0].mxu1 }
  0xfc   : > { %v1424_v50 = vadd.f32 %v2243_v46, %v796_v48  ;;  %v1496_v51 = vadd.f32 %v2243_v46, %v916_v49  ;;  %v798_v52 = vpop.f32.mrb[1].mxu0  ;;  %v918_v53 = vpop.f32.mrb[1].mxu1 }
  0xfd   : > { %v1425_v54 = vadd.f32 %v2247_v47, %v798_v52  ;;  %v1497_v55 = vadd.f32 %v2247_v47, %v918_v53  ;;  %v800_v56 = vpop.f32.mrb[2].mxu0  ;;  %v920_v57 = vpop.f32.mrb[2].mxu1 }
  0xfe   : > { %v1520_v58 = vmax.f32 %v1424_v50, 0.0  ;;  %v1592_v59 = vmax.f32 %v1496_v51, 0.0  ;;  %v1427_v60 = vadd.f32 %v2243_v46, %v800_v56  ;;  %v1499_v61 = vadd.f32 %v2243_v46, %v920_v57  ;;  %v802_v62 = vpop.f32.mrb[3].mxu0  ;;  %v922_v63 = vpop.f32.mrb[3].mxu1 }
  0xff   : > { %v1521_v0 = vmax.f32 %v1425_v54, 0.0  ;;  %v1593_v1 = vmax.f32 %v1497_v55, 0.0  ;;  %v1428_v2 = vadd.f32 %v2247_v47, %v802_v62  ;;  %v1500_v3 = vadd.f32 %v2247_v47, %v922_v63 }
 0x100   : > { %1616 = vst [vmem:[%s2254_s28] sm:$0xff] %v1520_v58  ;;  %1688 = vst [vmem:[%s2254_s28 + $0x240] sm:$0xff] %v1592_v59  ;;  %v1523_v4 = vmax.f32 %v1427_v60, 0.0  ;;  %v1595_v5 = vmax.f32 %v1499_v61, 0.0 }
 0x101   : > { %1617 = vst [vmem:[%s2254_s28 + $0x8] sm:$0xff] %v1521_v0  ;;  %1689 = vst [vmem:[%s2254_s28 + $0x248] sm:$0xff] %v1593_v1  ;;  %v1524_v6 = vmax.f32 %v1428_v2, 0.0  ;;  %v1596_v7 = vmax.f32 %v1500_v3, 0.0  ;;  %v1419_v2 = vsub.s32 2, %v2233_v42 }
 0x102   : > { %1619 = vst [vmem:[%s2254_s28 + $0x18] sm:$0xff] %v1523_v4  ;;  %1691 = vst [vmem:[%s2254_s28 + $0x258] sm:$0xff] %v1595_v5 }
 0x103   : > { %1620 = vst [vmem:[%s2254_s28 + $0x20] sm:$0xff] %v1524_v6  ;;  %1692 = vst [vmem:[%s2254_s28 + $0x260] sm:$0xff] %v1596_v7  ;;  %v806_v8 = vpop.f32.mrb[4].mxu0  ;;  %v926_v9 = vpop.f32.mrb[4].mxu1 }
 0x104   : > { %v1430_v10 = vadd.f32 %v2243_v46, %v806_v8  ;;  %v1502_v11 = vadd.f32 %v2243_v46, %v926_v9  ;;  %v808_v12 = vpop.f32.mrb[5].mxu0  ;;  %v928_v13 = vpop.f32.mrb[5].mxu1 }
 0x105   : > { %v1431_v14 = vadd.f32 %v2247_v47, %v808_v12  ;;  %v1503_v15 = vadd.f32 %v2247_v47, %v928_v13  ;;  %v810_v16 = vpop.f32.mrb[6].mxu0  ;;  %v930_v17 = vpop.f32.mrb[6].mxu1 }
 0x106   : > { %v1526_v18 = vmax.f32 %v1430_v10, 0.0  ;;  %v1598_v19 = vmax.f32 %v1502_v11, 0.0  ;;  %v1433_v20 = vadd.f32 %v2243_v46, %v810_v16  ;;  %v1505_v21 = vadd.f32 %v2243_v46, %v930_v17  ;;  %v812_v22 = vpop.f32.mrb[7].mxu0  ;;  %v932_v23 = vpop.f32.mrb[7].mxu1 }
 0x107   : > { %v1527_v24 = vmax.f32 %v1431_v14, 0.0  ;;  %v1599_v25 = vmax.f32 %v1503_v15, 0.0  ;;  %v1434_v26 = vadd.f32 %v2247_v47, %v812_v22  ;;  %v1506_v27 = vadd.f32 %v2247_v47, %v932_v23 }
 0x108   : > { %1622 = vst [vmem:[%s2254_s28 + $0x30] sm:$0xff] %v1526_v18  ;;  %1694 = vst [vmem:[%s2254_s28 + $0x270] sm:$0xff] %v1598_v19  ;;  %v1529_v28 = vmax.f32 %v1433_v20, 0.0  ;;  %v1601_v29 = vmax.f32 %v1505_v21, 0.0  ;;  %v2314_v18 = vrot.slane %v2239_v44, %v1419_v2 }
 0x109   : > { %1623 = vst [vmem:[%s2254_s28 + $0x38] sm:$0xff] %v1527_v24  ;;  %1695 = vst [vmem:[%s2254_s28 + $0x278] sm:$0xff] %v1599_v25  ;;  %v1530_v30 = vmax.f32 %v1434_v26, 0.0  ;;  %v1602_v31 = vmax.f32 %v1506_v27, 0.0 }
 0x10a   : > { %1625 = vst [vmem:[%s2254_s28 + $0x48] sm:$0xff] %v1529_v28  ;;  %1697 = vst [vmem:[%s2254_s28 + $0x288] sm:$0xff] %v1601_v29 }
 0x10b   : > { %1626 = vst [vmem:[%s2254_s28 + $0x50] sm:$0xff] %v1530_v30  ;;  %1698 = vst [vmem:[%s2254_s28 + $0x290] sm:$0xff] %v1602_v31  ;;  %v816_v32 = vpop.f32.mrb[8].mxu0  ;;  %v936_v33 = vpop.f32.mrb[8].mxu1 }
 0x10c   : > { %v1436_v34 = vadd.f32 %v2243_v46, %v816_v32  ;;  %v1508_v35 = vadd.f32 %v2243_v46, %v936_v33  ;;  %v818_v36 = vpop.f32.mrb[9].mxu0  ;;  %v938_v37 = vpop.f32.mrb[9].mxu1 }
 0x10d   : > { %v1437_v38 = vadd.f32 %v2247_v47, %v818_v36  ;;  %v1509_v39 = vadd.f32 %v2247_v47, %v938_v37  ;;  %v820_v40 = vpop.f32.mrb[10].mxu0  ;;  %v940_v41 = vpop.f32.mrb[10].mxu1 }
 0x10e   : > { %v1532_v43 = vmax.f32 %v1436_v34, 0.0  ;;  %v1604_v45 = vmax.f32 %v1508_v35, 0.0  ;;  %v1439_v48 = vadd.f32 %v2243_v46, %v820_v40  ;;  %v1511_v49 = vadd.f32 %v2243_v46, %v940_v41  ;;  %v822_v50 = vpop.f32.mrb[11].mxu0  ;;  %v942_v51 = vpop.f32.mrb[11].mxu1 }
 0x10f   : > { %v1533_v52 = vmax.f32 %v1437_v38, 0.0  ;;  %v1605_v53 = vmax.f32 %v1509_v39, 0.0  ;;  %v1440_v54 = vadd.f32 %v2247_v47, %v822_v50  ;;  %v1512_v55 = vadd.f32 %v2247_v47, %v942_v51 }
 0x110   : > { %1628 = vst [vmem:[%s2254_s28 + $0x60] sm:$0xff] %v1532_v43  ;;  %1700 = vst [vmem:[%s2254_s28 + $0x2a0] sm:$0xff] %v1604_v45  ;;  %v1535_v56 = vmax.f32 %v1439_v48, 0.0  ;;  %v1607_v57 = vmax.f32 %v1511_v49, 0.0 }
 0x111   : > { %1629 = vst [vmem:[%s2254_s28 + $0x68] sm:$0xff] %v1533_v52  ;;  %1701 = vst [vmem:[%s2254_s28 + $0x2a8] sm:$0xff] %v1605_v53  ;;  %v1536_v58 = vmax.f32 %v1440_v54, 0.0  ;;  %v1608_v59 = vmax.f32 %v1512_v55, 0.0 }
 0x112   : > { %1631 = vst [vmem:[%s2254_s28 + $0x78] sm:$0xff] %v1535_v56  ;;  %1703 = vst [vmem:[%s2254_s28 + $0x2b8] sm:$0xff] %v1607_v57 }
 0x113   : > { %1632 = vst [vmem:[%s2254_s28 + $0x80] sm:$0xff] %v1536_v58  ;;  %1704 = vst [vmem:[%s2254_s28 + $0x2c0] sm:$0xff] %v1608_v59  ;;  %v826_v60 = vpop.f32.mrb[12].mxu0  ;;  %v946_v61 = vpop.f32.mrb[12].mxu1 }
 0x114   : > { %v1442_v62 = vadd.f32 %v2243_v46, %v826_v60  ;;  %v1514_v63 = vadd.f32 %v2243_v46, %v946_v61  ;;  %v828_v0 = vpop.f32.mrb[13].mxu0  ;;  %v948_v1 = vpop.f32.mrb[13].mxu1 }
 0x115   : > { %v1443_v3 = vadd.f32 %v2247_v47, %v828_v0  ;;  %v1515_v4 = vadd.f32 %v2247_v47, %v948_v1  ;;  %v830_v5 = vpop.f32.mrb[14].mxu0  ;;  %v950_v6 = vpop.f32.mrb[14].mxu1 }
 0x116   : > { %v1538_v7 = vmax.f32 %v1442_v62, 0.0  ;;  %v1610_v8 = vmax.f32 %v1514_v63, 0.0  ;;  %v1445_v9 = vadd.f32 %v2243_v46, %v830_v5  ;;  %v1517_v10 = vadd.f32 %v2243_v46, %v950_v6  ;;  %v832_v11 = vpop.f32.mrb[15].mxu0  ;;  %v952_v12 = vpop.f32.mrb[15].mxu1 }
 0x117   : > { %v1539_v42 = vmax.f32 %v1443_v3, 0.0  ;;  %v1611_v13 = vmax.f32 %v1515_v4, 0.0  ;;  %v1446_v14 = vadd.f32 %v2247_v47, %v832_v11  ;;  %v1518_v15 = vadd.f32 %v2247_v47, %v952_v12 }
 0x118   : > { %1634 = vst [vmem:[%s2254_s28 + $0x90] sm:$0xff] %v1538_v7  ;;  %1706 = vst [vmem:[%s2254_s28 + $0x2d0] sm:$0xff] %v1610_v8  ;;  %v1541_v16 = vmax.f32 %v1445_v9, 0.0  ;;  %v1613_v17 = vmax.f32 %v1517_v10, 0.0 }
 0x119   : > { %1635 = vst [vmem:[%s2254_s28 + $0x98] sm:$0xff] %v1539_v42  ;;  %1707 = vst [vmem:[%s2254_s28 + $0x2d8] sm:$0xff] %v1611_v13  ;;  %v1542_v19 = vmax.f32 %v1446_v14, 0.0  ;;  %v1614_v20 = vmax.f32 %v1518_v15, 0.0 }
 0x11a   : > { %1637 = vst [vmem:[%s2254_s28 + $0xa8] sm:$0xff] %v1541_v16  ;;  %1709 = vst [vmem:[%s2254_s28 + $0x2e8] sm:$0xff] %v1613_v17 }
 0x11b   : > { %1638 = vst [vmem:[%s2254_s28 + $0xb0] sm:$0xff] %v1542_v19  ;;  %1710 = vst [vmem:[%s2254_s28 + $0x2f0] sm:$0xff] %v1614_v20  ;;  %v836_v21 = vpop.f32.mrb[16].mxu0  ;;  %v1930_v22 = vpop.f32.mrb[16].mxu1 }
 0x11c   : > { %v1448_v23 = vadd.f32 %v2243_v46, %v836_v21  ;;  %v1432_v24 = vadd.f32 %v1930_v22, %v2314_v18  ;;  %v838_v25 = vpop.f32.mrb[17].mxu0  ;;  %v989_v26 = vpop.f32.mrb[17].mxu1 }
 0x11d   : > { %v1449_v44 = vadd.f32 %v2247_v47, %v838_v25  ;;  %v1426_v27 = vadd.f32 %v2314_v18, %v989_v26  ;;  %v840_v28 = vpop.f32.mrb[18].mxu0  ;;  %v1931_v29 = vpop.f32.mrb[18].mxu1 }
 0x11e   : > { %v1544_v30 = vmax.f32 %v1448_v23, 0.0  ;;  %v1528_v31 = vmax.f32 %v1432_v24, 0.0  ;;  %v1451_v32 = vadd.f32 %v2243_v46, %v840_v28  ;;  %v1435_v33 = vadd.f32 %v1931_v29, %v2314_v18  ;;  %v842_v34 = vpop.f32.mrb[19].mxu0  ;;  %v992_v35 = vpop.f32.mrb[19].mxu1 }
 0x11f   : > { %v1545_v36 = vmax.f32 %v1449_v44, 0.0  ;;  %v1522_v37 = vmax.f32 %v1426_v27, 0.0  ;;  %v1452_v38 = vadd.f32 %v2247_v47, %v842_v34  ;;  %v1429_v39 = vadd.f32 %v2314_v18, %v992_v35 }
 0x120   : > { %1640 = vst [vmem:[%s2254_s28 + $0xc0] sm:$0xff] %v1544_v30  ;;  %1624 = vst [vmem:[%s2254_s28 + $0x40] sm:$0xff] %v1528_v31  ;;  %v1547_v40 = vmax.f32 %v1451_v32, 0.0  ;;  %v1531_v41 = vmax.f32 %v1435_v33, 0.0 }
 0x121   : > { %1641 = vst [vmem:[%s2254_s28 + $0xc8] sm:$0xff] %v1545_v36  ;;  %1618 = vst [vmem:[%s2254_s28 + $0x10] sm:$0xff] %v1522_v37  ;;  %v1548_v43 = vmax.f32 %v1452_v38, 0.0  ;;  %v1525_v45 = vmax.f32 %v1429_v39, 0.0 }
 0x122   : > { %1643 = vst [vmem:[%s2254_s28 + $0xd8] sm:$0xff] %v1547_v40  ;;  %1627 = vst [vmem:[%s2254_s28 + $0x58] sm:$0xff] %v1531_v41 }
 0x123   : > { %1644 = vst [vmem:[%s2254_s28 + $0xe0] sm:$0xff] %v1548_v43  ;;  %1621 = vst [vmem:[%s2254_s28 + $0x28] sm:$0xff] %v1525_v45  ;;  %v846_v48 = vpop.f32.mrb[20].mxu0  ;;  %v1934_v49 = vpop.f32.mrb[20].mxu1 }
 0x124   : > { %v1454_v50 = vadd.f32 %v2243_v46, %v846_v48  ;;  %v1444_v51 = vadd.f32 %v1934_v49, %v2314_v18  ;;  %v848_v52 = vpop.f32.mrb[21].mxu0  ;;  %v1005_v53 = vpop.f32.mrb[21].mxu1 }
 0x125   : > { %v1455_v54 = vadd.f32 %v2247_v47, %v848_v52  ;;  %v1438_v55 = vadd.f32 %v2314_v18, %v1005_v53  ;;  %v850_v56 = vpop.f32.mrb[22].mxu0  ;;  %v1935_v57 = vpop.f32.mrb[22].mxu1 }
 0x126   : > { %v1550_v58 = vmax.f32 %v1454_v50, 0.0  ;;  %v1540_v59 = vmax.f32 %v1444_v51, 0.0  ;;  %v1457_v60 = vadd.f32 %v2243_v46, %v850_v56  ;;  %v1447_v61 = vadd.f32 %v1935_v57, %v2314_v18  ;;  %v852_v62 = vpop.f32.mrb[23].mxu0  ;;  %v1008_v63 = vpop.f32.mrb[23].mxu1 }
 0x127   : > { %v1551_v0 = vmax.f32 %v1455_v54, 0.0  ;;  %v1534_v1 = vmax.f32 %v1438_v55, 0.0  ;;  %v1458_v2 = vadd.f32 %v2247_v47, %v852_v62  ;;  %v1441_v3 = vadd.f32 %v2314_v18, %v1008_v63 }
 0x128   : > { %1646 = vst [vmem:[%s2254_s28 + $0xf0] sm:$0xff] %v1550_v58  ;;  %1636 = vst [vmem:[%s2254_s28 + $0xa0] sm:$0xff] %v1540_v59  ;;  %v1553_v4 = vmax.f32 %v1457_v60, 0.0  ;;  %v1543_v5 = vmax.f32 %v1447_v61, 0.0 }
 0x129   : > { %1647 = vst [vmem:[%s2254_s28 + $0xf8] sm:$0xff] %v1551_v0  ;;  %1630 = vst [vmem:[%s2254_s28 + $0x70] sm:$0xff] %v1534_v1  ;;  %v1554_v6 = vmax.f32 %v1458_v2, 0.0  ;;  %v1537_v7 = vmax.f32 %v1441_v3, 0.0 }
 0x12a   : > { %1649 = vst [vmem:[%s2254_s28 + $0x108] sm:$0xff] %v1553_v4  ;;  %1639 = vst [vmem:[%s2254_s28 + $0xb8] sm:$0xff] %v1543_v5 }
 0x12b   : > { %1650 = vst [vmem:[%s2254_s28 + $0x110] sm:$0xff] %v1554_v6  ;;  %1633 = vst [vmem:[%s2254_s28 + $0x88] sm:$0xff] %v1537_v7  ;;  %v856_v8 = vpop.f32.mrb[24].mxu0  ;;  %v1938_v9 = vpop.f32.mrb[24].mxu1 }
 0x12c   : > { %v1460_v10 = vadd.f32 %v2243_v46, %v856_v8  ;;  %v1456_v11 = vadd.f32 %v1938_v9, %v2314_v18  ;;  %v858_v12 = vpop.f32.mrb[25].mxu0  ;;  %v1021_v42 = vpop.f32.mrb[25].mxu1 }
 0x12d   : > { %v1461_v13 = vadd.f32 %v2247_v47, %v858_v12  ;;  %v1450_v14 = vadd.f32 %v2314_v18, %v1021_v42  ;;  %v860_v15 = vpop.f32.mrb[26].mxu0  ;;  %v1939_v16 = vpop.f32.mrb[26].mxu1 }
 0x12e   : > { %v1556_v17 = vmax.f32 %v1460_v10, 0.0  ;;  %v1552_v19 = vmax.f32 %v1456_v11, 0.0  ;;  %v1463_v20 = vadd.f32 %v2243_v46, %v860_v15  ;;  %v1459_v21 = vadd.f32 %v1939_v16, %v2314_v18  ;;  %v862_v22 = vpop.f32.mrb[27].mxu0  ;;  %v1024_v23 = vpop.f32.mrb[27].mxu1 }
 0x12f   : > { %v1557_v24 = vmax.f32 %v1461_v13, 0.0  ;;  %v1546_v25 = vmax.f32 %v1450_v14, 0.0  ;;  %v1464_v26 = vadd.f32 %v2247_v47, %v862_v22  ;;  %v1453_v44 = vadd.f32 %v2314_v18, %v1024_v23 }
 0x130   : > { %1652 = vst [vmem:[%s2254_s28 + $0x120] sm:$0xff] %v1556_v17  ;;  %1648 = vst [vmem:[%s2254_s28 + $0x100] sm:$0xff] %v1552_v19  ;;  %v1559_v27 = vmax.f32 %v1463_v20, 0.0  ;;  %v1555_v28 = vmax.f32 %v1459_v21, 0.0 }
 0x131   : > { %1653 = vst [vmem:[%s2254_s28 + $0x128] sm:$0xff] %v1557_v24  ;;  %1642 = vst [vmem:[%s2254_s28 + $0xd0] sm:$0xff] %v1546_v25  ;;  %v1560_v29 = vmax.f32 %v1464_v26, 0.0  ;;  %v1549_v30 = vmax.f32 %v1453_v44, 0.0 }
 0x132   : > { %1655 = vst [vmem:[%s2254_s28 + $0x138] sm:$0xff] %v1559_v27  ;;  %1651 = vst [vmem:[%s2254_s28 + $0x118] sm:$0xff] %v1555_v28 }
 0x133   : > { %1656 = vst [vmem:[%s2254_s28 + $0x140] sm:$0xff] %v1560_v29  ;;  %1645 = vst [vmem:[%s2254_s28 + $0xe8] sm:$0xff] %v1549_v30  ;;  %v866_v31 = vpop.f32.mrb[28].mxu0  ;;  %v1942_v32 = vpop.f32.mrb[28].mxu1 }
 0x134   : > { %v1466_v33 = vadd.f32 %v2243_v46, %v866_v31  ;;  %v1468_v34 = vadd.f32 %v1942_v32, %v2314_v18  ;;  %v868_v35 = vpop.f32.mrb[29].mxu0  ;;  %v1037_v36 = vpop.f32.mrb[29].mxu1 }
 0x135   : > { %v1467_v37 = vadd.f32 %v2247_v47, %v868_v35  ;;  %v1462_v38 = vadd.f32 %v2314_v18, %v1037_v36  ;;  %v870_v39 = vpop.f32.mrb[30].mxu0  ;;  %v1943_v40 = vpop.f32.mrb[30].mxu1 }
 0x136   : > { %v1562_v41 = vmax.f32 %v1466_v33, 0.0  ;;  %v1564_v43 = vmax.f32 %v1468_v34, 0.0  ;;  %v1469_v45 = vadd.f32 %v2243_v46, %v870_v39  ;;  %v1471_v48 = vadd.f32 %v1943_v40, %v2314_v18  ;;  %v872_v49 = vpop.f32.mrb[31].mxu0  ;;  %v1040_v50 = vpop.f32.mrb[31].mxu1 }
 0x137   : > { %v1563_v51 = vmax.f32 %v1467_v37, 0.0  ;;  %v1558_v52 = vmax.f32 %v1462_v38, 0.0  ;;  %v1470_v53 = vadd.f32 %v2247_v47, %v872_v49  ;;  %v1465_v54 = vadd.f32 %v2314_v18, %v1040_v50 }
 0x138   : > { %1658 = vst [vmem:[%s2254_s28 + $0x150] sm:$0xff] %v1562_v41  ;;  %1660 = vst [vmem:[%s2254_s28 + $0x160] sm:$0xff] %v1564_v43  ;;  %v1565_v55 = vmax.f32 %v1469_v45, 0.0  ;;  %v1567_v56 = vmax.f32 %v1471_v48, 0.0 }
 0x139   : > { %1659 = vst [vmem:[%s2254_s28 + $0x158] sm:$0xff] %v1563_v51  ;;  %1654 = vst [vmem:[%s2254_s28 + $0x130] sm:$0xff] %v1558_v52  ;;  %v1566_v57 = vmax.f32 %v1470_v53, 0.0  ;;  %v1561_v58 = vmax.f32 %v1465_v54, 0.0 }
 0x13a   : > { %1661 = vst [vmem:[%s2254_s28 + $0x168] sm:$0xff] %v1565_v55  ;;  %1663 = vst [vmem:[%s2254_s28 + $0x178] sm:$0xff] %v1567_v56 }
 0x13b   : > { %1662 = vst [vmem:[%s2254_s28 + $0x170] sm:$0xff] %v1566_v57  ;;  %1657 = vst [vmem:[%s2254_s28 + $0x148] sm:$0xff] %v1561_v58  ;;  %v876_v59 = vpop.f32.mrb[32].mxu0  ;;  %v1946_v60 = vpop.f32.mrb[32].mxu1 }
 0x13c   : > { %v1472_v61 = vadd.f32 %v2243_v46, %v876_v59  ;;  %v1480_v62 = vadd.f32 %v1946_v60, %v2314_v18  ;;  %v878_v63 = vpop.f32.mrb[33].mxu0  ;;  %v1053_v0 = vpop.f32.mrb[33].mxu1 }
 0x13d   : > { %v1473_v1 = vadd.f32 %v2247_v47, %v878_v63  ;;  %v1474_v2 = vadd.f32 %v2314_v18, %v1053_v0  ;;  %v880_v3 = vpop.f32.mrb[34].mxu0  ;;  %v1947_v4 = vpop.f32.mrb[34].mxu1 }
 0x13e   : > { %v1568_v5 = vmax.f32 %v1472_v61, 0.0  ;;  %v1576_v6 = vmax.f32 %v1480_v62, 0.0  ;;  %v1475_v7 = vadd.f32 %v2243_v46, %v880_v3  ;;  %v1483_v8 = vadd.f32 %v1947_v4, %v2314_v18  ;;  %v882_v9 = vpop.f32.mrb[35].mxu0  ;;  %v1056_v10 = vpop.f32.mrb[35].mxu1 }
 0x13f   : > { %v1569_v11 = vmax.f32 %v1473_v1, 0.0  ;;  %v1570_v12 = vmax.f32 %v1474_v2, 0.0  ;;  %v1476_v42 = vadd.f32 %v2247_v47, %v882_v9  ;;  %v1477_v13 = vadd.f32 %v2314_v18, %v1056_v10 }
 0x140   : > { %1664 = vst [vmem:[%s2254_s28 + $0x180] sm:$0xff] %v1568_v5  ;;  %1672 = vst [vmem:[%s2254_s28 + $0x1c0] sm:$0xff] %v1576_v6  ;;  %v1571_v14 = vmax.f32 %v1475_v7, 0.0  ;;  %v1579_v15 = vmax.f32 %v1483_v8, 0.0 }
 0x141   : > { %1665 = vst [vmem:[%s2254_s28 + $0x188] sm:$0xff] %v1569_v11  ;;  %1666 = vst [vmem:[%s2254_s28 + $0x190] sm:$0xff] %v1570_v12  ;;  %v1572_v16 = vmax.f32 %v1476_v42, 0.0  ;;  %v1573_v17 = vmax.f32 %v1477_v13, 0.0 }
 0x142   : > { %1667 = vst [vmem:[%s2254_s28 + $0x198] sm:$0xff] %v1571_v14  ;;  %1675 = vst [vmem:[%s2254_s28 + $0x1d8] sm:$0xff] %v1579_v15 }
 0x143   : > { %1668 = vst [vmem:[%s2254_s28 + $0x1a0] sm:$0xff] %v1572_v16  ;;  %1669 = vst [vmem:[%s2254_s28 + $0x1a8] sm:$0xff] %v1573_v17  ;;  %v886_v19 = vpop.f32.mrb[36].mxu0  ;;  %v1950_v20 = vpop.f32.mrb[36].mxu1 }
 0x144   : > { %v1478_v21 = vadd.f32 %v2243_v46, %v886_v19  ;;  %v1492_v22 = vadd.f32 %v1950_v20, %v2314_v18  ;;  %v888_v23 = vpop.f32.mrb[37].mxu0  ;;  %v1069_v24 = vpop.f32.mrb[37].mxu1 }
 0x145   : > { %v1479_v25 = vadd.f32 %v2247_v47, %v888_v23  ;;  %v1486_v26 = vadd.f32 %v2314_v18, %v1069_v24  ;;  %v890_v44 = vpop.f32.mrb[38].mxu0  ;;  %v1951_v27 = vpop.f32.mrb[38].mxu1 }
 0x146   : > { %v1574_v28 = vmax.f32 %v1478_v21, 0.0  ;;  %v1588_v29 = vmax.f32 %v1492_v22, 0.0  ;;  %v1481_v30 = vadd.f32 %v2243_v46, %v890_v44  ;;  %v1495_v31 = vadd.f32 %v1951_v27, %v2314_v18  ;;  %v892_v32 = vpop.f32.mrb[39].mxu0  ;;  %v1072_v33 = vpop.f32.mrb[39].mxu1 }
 0x147   : > { %v1575_v34 = vmax.f32 %v1479_v25, 0.0  ;;  %v1582_v35 = vmax.f32 %v1486_v26, 0.0  ;;  %v1482_v36 = vadd.f32 %v2247_v47, %v892_v32  ;;  %v1489_v37 = vadd.f32 %v2314_v18, %v1072_v33 }
 0x148   : > { %1670 = vst [vmem:[%s2254_s28 + $0x1b0] sm:$0xff] %v1574_v28  ;;  %1684 = vst [vmem:[%s2254_s28 + $0x220] sm:$0xff] %v1588_v29  ;;  %v1577_v38 = vmax.f32 %v1481_v30, 0.0  ;;  %v1591_v39 = vmax.f32 %v1495_v31, 0.0 }
 0x149   : > { %1671 = vst [vmem:[%s2254_s28 + $0x1b8] sm:$0xff] %v1575_v34  ;;  %1678 = vst [vmem:[%s2254_s28 + $0x1f0] sm:$0xff] %v1582_v35  ;;  %v1578_v40 = vmax.f32 %v1482_v36, 0.0  ;;  %v1585_v41 = vmax.f32 %v1489_v37, 0.0 }
 0x14a   : > { %1673 = vst [vmem:[%s2254_s28 + $0x1c8] sm:$0xff] %v1577_v38  ;;  %1687 = vst [vmem:[%s2254_s28 + $0x238] sm:$0xff] %v1591_v39 }
 0x14b   : > { %1674 = vst [vmem:[%s2254_s28 + $0x1d0] sm:$0xff] %v1578_v40  ;;  %1681 = vst [vmem:[%s2254_s28 + $0x208] sm:$0xff] %v1585_v41  ;;  %v896_v43 = vpop.f32.mrb[40].mxu0  ;;  %v1954_v45 = vpop.f32.mrb[40].mxu1 }
 0x14c   : > { %v1484_v48 = vadd.f32 %v2243_v46, %v896_v43  ;;  %v1504_v49 = vadd.f32 %v1954_v45, %v2314_v18  ;;  %v898_v50 = vpop.f32.mrb[41].mxu0  ;;  %v1085_v51 = vpop.f32.mrb[41].mxu1 }
 0x14d   : > { %v1485_v52 = vadd.f32 %v2247_v47, %v898_v50  ;;  %v1498_v53 = vadd.f32 %v2314_v18, %v1085_v51  ;;  %v900_v54 = vpop.f32.mrb[42].mxu0  ;;  %v1955_v55 = vpop.f32.mrb[42].mxu1 }
 0x14e   : > { %v1580_v56 = vmax.f32 %v1484_v48, 0.0  ;;  %v1600_v57 = vmax.f32 %v1504_v49, 0.0  ;;  %v1487_v58 = vadd.f32 %v2243_v46, %v900_v54  ;;  %v1507_v59 = vadd.f32 %v1955_v55, %v2314_v18  ;;  %v902_v60 = vpop.f32.mrb[43].mxu0  ;;  %v1088_v61 = vpop.f32.mrb[43].mxu1 }
 0x14f   : > { %v1581_v62 = vmax.f32 %v1485_v52, 0.0  ;;  %v1594_v63 = vmax.f32 %v1498_v53, 0.0  ;;  %v1488_v0 = vadd.f32 %v2247_v47, %v902_v60  ;;  %v1501_v1 = vadd.f32 %v2314_v18, %v1088_v61 }
 0x150   : > { %1676 = vst [vmem:[%s2254_s28 + $0x1e0] sm:$0xff] %v1580_v56  ;;  %1696 = vst [vmem:[%s2254_s28 + $0x280] sm:$0xff] %v1600_v57  ;;  %v1583_v2 = vmax.f32 %v1487_v58, 0.0  ;;  %v1603_v3 = vmax.f32 %v1507_v59, 0.0 }
 0x151   : > { %1677 = vst [vmem:[%s2254_s28 + $0x1e8] sm:$0xff] %v1581_v62  ;;  %1690 = vst [vmem:[%s2254_s28 + $0x250] sm:$0xff] %v1594_v63  ;;  %v1584_v4 = vmax.f32 %v1488_v0, 0.0  ;;  %v1597_v5 = vmax.f32 %v1501_v1, 0.0 }
 0x152   : > { %1679 = vst [vmem:[%s2254_s28 + $0x1f8] sm:$0xff] %v1583_v2  ;;  %1699 = vst [vmem:[%s2254_s28 + $0x298] sm:$0xff] %v1603_v3 }
 0x153   : > { %1680 = vst [vmem:[%s2254_s28 + $0x200] sm:$0xff] %v1584_v4  ;;  %1693 = vst [vmem:[%s2254_s28 + $0x268] sm:$0xff] %v1597_v5  ;;  %v906_v6 = vpop.f32.mrb[44].mxu0  ;;  %v1958_v7 = vpop.f32.mrb[44].mxu1 }
 0x154   : > { %v1490_v8 = vadd.f32 %v2243_v46, %v906_v6  ;;  %v1516_v9 = vadd.f32 %v1958_v7, %v2314_v18  ;;  %v908_v10 = vpop.f32.mrb[45].mxu0  ;;  %v1101_v11 = vpop.f32.mrb[45].mxu1 }
 0x155   : > { %v1491_v12 = vadd.f32 %v2247_v47, %v908_v10  ;;  %v1510_v42 = vadd.f32 %v2314_v18, %v1101_v11  ;;  %v910_v13 = vpop.f32.mrb[46].mxu0  ;;  %v1959_v14 = vpop.f32.mrb[46].mxu1 }
 0x156   : > { %v1586_v15 = vmax.f32 %v1490_v8, 0.0  ;;  %v1612_v16 = vmax.f32 %v1516_v9, 0.0  ;;  %v1493_v17 = vadd.f32 %v2243_v46, %v910_v13  ;;  %v1519_v19 = vadd.f32 %v1959_v14, %v2314_v18  ;;  %v912_v20 = vpop.f32.mrb[47].mxu0  ;;  %v1104_v21 = vpop.f32.mrb[47].mxu1 }
 0x157   : > { %v1587_v22 = vmax.f32 %v1491_v12, 0.0  ;;  %v1606_v23 = vmax.f32 %v1510_v42, 0.0  ;;  %v1494_v24 = vadd.f32 %v2247_v47, %v912_v20  ;;  %v1513_v25 = vadd.f32 %v2314_v18, %v1104_v21 }
 0x158   : > { %1682 = vst [vmem:[%s2254_s28 + $0x210] sm:$0xff] %v1586_v15  ;;  %1708 = vst [vmem:[%s2254_s28 + $0x2e0] sm:$0xff] %v1612_v16  ;;  %v1589_v26 = vmax.f32 %v1493_v17, 0.0  ;;  %v1615_v44 = vmax.f32 %v1519_v19, 0.0 }
 0x159   : > { %1683 = vst [vmem:[%s2254_s28 + $0x218] sm:$0xff] %v1587_v22  ;;  %1702 = vst [vmem:[%s2254_s28 + $0x2b0] sm:$0xff] %v1606_v23  ;;  %v1590_v46 = vmax.f32 %v1494_v24, 0.0  ;;  %v1609_v27 = vmax.f32 %v1513_v25, 0.0 }
 0x15a   : > { %1685 = vst [vmem:[%s2254_s28 + $0x228] sm:$0xff] %v1589_v26  ;;  %1711 = vst [vmem:[%s2254_s28 + $0x2f8] sm:$0xff] %v1615_v44 }
 0x15b   : > { %1686 = vst [vmem:[%s2254_s28 + $0x230] sm:$0xff] %v1590_v46  ;;  %1705 = vst [vmem:[%s2254_s28 + $0x2c8] sm:$0xff] %v1609_v27 }
 0x15c PF: > { %s13_s14 = sadd.s32 1, %s2072_s14   ;;  %s2463_s12 = smov %s2068_s13 }
 0x15d   : > { %p10_p5 = scmp.ge.s32.totalorder %s13_s14, 4   ;;  %s2464_s13 = smov %s2466_s15 }
 0x15f   :  { %12 = sbr.rel (!%p10_p5) target bundleno = 2 (0x2), region = 76 }

// kernel: neg.17
= control target key start
LH: loop header
LB: loop body
LE: loop exit
PB: predicated region body
PF: predicated region fallthrough
CT: control target
= control target key end

     0   :  { %s40_s0 = inlined_call_operand.vmem [shape: f32[1536], index: 0, kind: input, shape index: {}]   ;;  %s41_s1 = inlined_call_operand.vmem [shape: f32[1536], index: 1, kind: output, shape index: {}]  }
   0x1   :  { %v2_v0 = vld [vmem:[%s40_s0] sm:$0xff]  ;;  %v16_v1 = vld [vmem:[%s40_s0 + $0x8] sm:$0xff] }
   0x2   :  { %v5_v2 = vxor.u32 2147483648, %v2_v0  ;;  %v12_v3 = vxor.u32 2147483648, %v16_v1 }
   0x4   :  { %7 = vst [vmem:[%s41_s1] sm:$0xff] %v5_v2  ;;  %17 = vst [vmem:[%s41_s1 + $0x8] sm:$0xff] %v12_v3 }

// kernel: net_backpropagation_depth_forward.6
= control target key start
LH: loop header
LB: loop body
LE: loop exit
PB: predicated region body
PF: predicated region fallthrough
CT: control target
= control target key end

     0   :  { %s2772_s12 = smov 0   ;;  %s2774_s13 = smov 0   ;;  %s3581_s0 = inlined_call_operand.vmem [shape: bf16[128,384], index: 0, kind: input, shape index: {}]   ;;  %s3582_s1 = inlined_call_operand.vmem [shape: bf16[384,1536], index: 1, kind: input, shape index: {}]   ;;  %s3583_s2 = inlined_call_operand.vmem [shape: f32[1,1536], index: 2, kind: input, shape index: {}]   ;;  %s3584_s3 = inlined_call_operand.vmem [shape: f32[128,1536], index: 3, kind: output, shape index: {}]  }
   0x1   :  { %s2776_s14 = smov 0   ;;  %s2778_s15 = smov 0  }
   0x2   :  { %s2780_s16 = smov 0  }
   0x3 LB: > { %s28_s17 = sadd.s32 1, %s2745_s15  ;;  %s2175_s18 = sadd.s32 4294967295, %s2749_s16   ;;  %s2749_s16 = sphi %s2780_s16, %s13_s16   ;;  %s2745_s15 = sphi %s2778_s15, %s3589_s15   ;;  %s2741_s14 = sphi %s2776_s14, %s3588_s14   ;;  %s2737_s13 = sphi %s2774_s13, %s3587_s13   ;;  %s2733_s12 = sphi %s2772_s12, %s3586_s12  }
   0x4   : > { %p30_p0 = scmp.ge.s32.totalorder %s28_s17, 4  ;;  %p76_p1 = scmp.ne.s32.totalorder %s2737_s13, %s2733_s12 }
   0x5   : > { %p77_p2 = scmp.eq.s32.totalorder %s2749_s16, 0  ;;  %p134_p4 = scmp.eq.s32.totalorder %s2175_s18, 3 }
   0x6   : > { %s3591_s17 = smov (%p30_p0, %s28_s17), 0  ;;  %s69_s20 = sadd.s32 1, %s2737_s13 }
   0x7   : > { %p78_p3 = por %p77_p2, %p76_p1  ;;  %s65_s19 = ssub.s32 %s2745_s15, %s3591_s17 }
   0x8   : > { %p67_p5 = scmp.eq.s32.totalorder %s65_s19, 0  ;;  %p2807_p6 = por %p134_p4, %p76_p1 }
   0x9   : > { %p2179_p7 = scmp.ge.s32.totalorder %s2749_s16, 4 }
   0xa   : > { %s2812_s22 = scalar_select %p67_p5, %s2737_s13, %s69_s20  }
   0xb   : > { %171 = sbr.rel (%p2179_p7) target bundleno = 79 (0x4f), region = 20 }
  0x12   : > { %174 = sbr.rel (!%p78_p3) target bundleno = 79 (0x4f), region = 24  ;;  %s176_s23 = sand.u32 (%p78_p3), 1, %s2737_s13  }
  0x13   : > { %s2377_s24 = smul.u32 (%p78_p3), 12, %s2745_s15 }
  0x14   : > { %s2539_s25 = smul.u32 (%p78_p3), 576, %s176_s23 }
  0x15   : > { %s2820_s28 = scalar_lea.vmem (%p78_p3), %s3582_s1, %s2377_s24 }
  0x16   : > { %v199_v0 = vld [vmem:[%s2820_s28] sm:$0xff] (%p78_p3)  ;;  %v201_v1 = vld [vmem:[%s2820_s28 + $0x30] sm:$0xff] (%p78_p3)  ;;  %s2825_s29 = scalar_lea.vmem (%p78_p3), [#allocation3], %s2539_s25  ;;  %v2181_v48 = vld [vmem:[%s2820_s28 + $0x8] sm:$0xf] (%p78_p3) }
  0x17   : > { %v203_v2 = vld [vmem:[%s2820_s28 + $0x60] sm:$0xff] (%p78_p3)  ;;  %200 = vst [vmem:[%s2825_s29] sm:$0xff] (%p78_p3), %v199_v0  ;;  %202 = vst [vmem:[%s2825_s29 + $0xc] sm:$0xff] (%p78_p3), %v201_v1  ;;  %v205_v3 = vld [vmem:[%s2820_s28 + $0x90] sm:$0xff] (%p78_p3) }
  0x18   : > { %204 = vst [vmem:[%s2825_s29 + $0x18] sm:$0xff] (%p78_p3), %v203_v2  ;;  %v207_v4 = vld [vmem:[%s2820_s28 + $0xc0] sm:$0xff] (%p78_p3)  ;;  %v209_v5 = vld [vmem:[%s2820_s28 + $0xf0] sm:$0xff] (%p78_p3)  ;;  %206 = vst [vmem:[%s2825_s29 + $0x24] sm:$0xff] (%p78_p3), %v205_v3 }
  0x19   : > { %208 = vst [vmem:[%s2825_s29 + $0x30] sm:$0xff] %v207_v4  ;;  %210 = vst [vmem:[%s2825_s29 + $0x3c] sm:$0xff] %v209_v5  ;;  %v211_v6 = vld [vmem:[%s2820_s28 + $0x120] sm:$0xff]  ;;  %v213_v7 = vld [vmem:[%s2820_s28 + $0x150] sm:$0xff] }
  0x1a   : > { %v215_v8 = vld [vmem:[%s2820_s28 + $0x180] sm:$0xff]  ;;  %212 = vst [vmem:[%s2825_s29 + $0x48] sm:$0xff] %v211_v6  ;;  %214 = vst [vmem:[%s2825_s29 + $0x54] sm:$0xff] %v213_v7  ;;  %v217_v9 = vld [vmem:[%s2820_s28 + $0x1b0] sm:$0xff] }
  0x1b   : > { %216 = vst [vmem:[%s2825_s29 + $0x60] sm:$0xff] %v215_v8  ;;  %v219_v10 = vld [vmem:[%s2820_s28 + $0x1e0] sm:$0xff]  ;;  %v221_v11 = vld [vmem:[%s2820_s28 + $0x210] sm:$0xff]  ;;  %218 = vst [vmem:[%s2825_s29 + $0x6c] sm:$0xff] %v217_v9 }
  0x1c   : > { %220 = vst [vmem:[%s2825_s29 + $0x78] sm:$0xff] %v219_v10  ;;  %222 = vst [vmem:[%s2825_s29 + $0x84] sm:$0xff] %v221_v11  ;;  %v223_v12 = vld [vmem:[%s2820_s28 + $0x240] sm:$0xff]  ;;  %v225_v13 = vld [vmem:[%s2820_s28 + $0x270] sm:$0xff] }
  0x1d   : > { %v227_v14 = vld [vmem:[%s2820_s28 + $0x2a0] sm:$0xff]  ;;  %224 = vst [vmem:[%s2825_s29 + $0x90] sm:$0xff] %v223_v12  ;;  %226 = vst [vmem:[%s2825_s29 + $0x9c] sm:$0xff] %v225_v13  ;;  %v229_v15 = vld [vmem:[%s2820_s28 + $0x2d0] sm:$0xff] }
  0x1e   : > { %228 = vst [vmem:[%s2825_s29 + $0xa8] sm:$0xff] %v227_v14  ;;  %v231_v16 = vld [vmem:[%s2820_s28 + $0x300] sm:$0xff]  ;;  %v233_v17 = vld [vmem:[%s2820_s28 + $0x330] sm:$0xff]  ;;  %230 = vst [vmem:[%s2825_s29 + $0xb4] sm:$0xff] %v229_v15 }
  0x1f   : > { %232 = vst [vmem:[%s2825_s29 + $0xc0] sm:$0xff] %v231_v16  ;;  %234 = vst [vmem:[%s2825_s29 + $0xcc] sm:$0xff] %v233_v17  ;;  %v235_v18 = vld [vmem:[%s2820_s28 + $0x360] sm:$0xff]  ;;  %v237_v19 = vld [vmem:[%s2820_s28 + $0x390] sm:$0xff] }
  0x20   : > { %v239_v20 = vld [vmem:[%s2820_s28 + $0x3c0] sm:$0xff]  ;;  %236 = vst [vmem:[%s2825_s29 + $0xd8] sm:$0xff] %v235_v18  ;;  %238 = vst [vmem:[%s2825_s29 + $0xe4] sm:$0xff] %v237_v19  ;;  %v241_v21 = vld [vmem:[%s2820_s28 + $0x3f0] sm:$0xff] }
  0x21   : > { %240 = vst [vmem:[%s2825_s29 + $0xf0] sm:$0xff] %v239_v20  ;;  %v243_v22 = vld [vmem:[%s2820_s28 + $0x420] sm:$0xff]  ;;  %v245_v23 = vld [vmem:[%s2820_s28 + $0x450] sm:$0xff]  ;;  %242 = vst [vmem:[%s2825_s29 + $0xfc] sm:$0xff] %v241_v21 }
  0x22   : > { %244 = vst [vmem:[%s2825_s29 + $0x108] sm:$0xff] %v243_v22  ;;  %246 = vst [vmem:[%s2825_s29 + $0x114] sm:$0xff] %v245_v23  ;;  %v247_v24 = vld [vmem:[%s2820_s28 + $0x480] sm:$0xff]  ;;  %v249_v25 = vld [vmem:[%s2820_s28 + $0x4b0] sm:$0xff] }
  0x23   : > { %v251_v26 = vld [vmem:[%s2820_s28 + $0x4e0] sm:$0xff]  ;;  %248 = vst [vmem:[%s2825_s29 + $0x120] sm:$0xff] %v247_v24  ;;  %250 = vst [vmem:[%s2825_s29 + $0x12c] sm:$0xff] %v249_v25  ;;  %v253_v27 = vld [vmem:[%s2820_s28 + $0x510] sm:$0xff] }
  0x24   : > { %252 = vst [vmem:[%s2825_s29 + $0x138] sm:$0xff] %v251_v26  ;;  %v255_v28 = vld [vmem:[%s2820_s28 + $0x540] sm:$0xff]  ;;  %v257_v29 = vld [vmem:[%s2820_s28 + $0x570] sm:$0xff]  ;;  %254 = vst [vmem:[%s2825_s29 + $0x144] sm:$0xff] %v253_v27 }
  0x25   : > { %256 = vst [vmem:[%s2825_s29 + $0x150] sm:$0xff] %v255_v28  ;;  %258 = vst [vmem:[%s2825_s29 + $0x15c] sm:$0xff] %v257_v29  ;;  %v259_v30 = vld [vmem:[%s2820_s28 + $0x5a0] sm:$0xff]  ;;  %v261_v31 = vld [vmem:[%s2820_s28 + $0x5d0] sm:$0xff] }
  0x26   : > { %v263_v32 = vld [vmem:[%s2820_s28 + $0x600] sm:$0xff]  ;;  %260 = vst [vmem:[%s2825_s29 + $0x168] sm:$0xff] %v259_v30  ;;  %262 = vst [vmem:[%s2825_s29 + $0x174] sm:$0xff] %v261_v31  ;;  %v265_v33 = vld [vmem:[%s2820_s28 + $0x630] sm:$0xff] }
  0x27   : > { %264 = vst [vmem:[%s2825_s29 + $0x180] sm:$0xff] %v263_v32  ;;  %v267_v34 = vld [vmem:[%s2820_s28 + $0x660] sm:$0xff]  ;;  %v269_v35 = vld [vmem:[%s2820_s28 + $0x690] sm:$0xff]  ;;  %266 = vst [vmem:[%s2825_s29 + $0x18c] sm:$0xff] %v265_v33 }
  0x28   : > { %268 = vst [vmem:[%s2825_s29 + $0x198] sm:$0xff] %v267_v34  ;;  %270 = vst [vmem:[%s2825_s29 + $0x1a4] sm:$0xff] %v269_v35  ;;  %v271_v36 = vld [vmem:[%s2820_s28 + $0x6c0] sm:$0xff]  ;;  %v273_v37 = vld [vmem:[%s2820_s28 + $0x6f0] sm:$0xff] }
  0x29   : > { %v275_v38 = vld [vmem:[%s2820_s28 + $0x720] sm:$0xff]  ;;  %272 = vst [vmem:[%s2825_s29 + $0x1b0] sm:$0xff] %v271_v36  ;;  %274 = vst [vmem:[%s2825_s29 + $0x1bc] sm:$0xff] %v273_v37  ;;  %v277_v39 = vld [vmem:[%s2820_s28 + $0x750] sm:$0xff] }
  0x2a   : > { %276 = vst [vmem:[%s2825_s29 + $0x1c8] sm:$0xff] %v275_v38  ;;  %v279_v40 = vld [vmem:[%s2820_s28 + $0x780] sm:$0xff]  ;;  %v281_v41 = vld [vmem:[%s2820_s28 + $0x7b0] sm:$0xff]  ;;  %278 = vst [vmem:[%s2825_s29 + $0x1d4] sm:$0xff] %v277_v39 }
  0x2b   : > { %280 = vst [vmem:[%s2825_s29 + $0x1e0] sm:$0xff] %v279_v40  ;;  %282 = vst [vmem:[%s2825_s29 + $0x1ec] sm:$0xff] %v281_v41  ;;  %v283_v42 = vld [vmem:[%s2820_s28 + $0x7e0] sm:$0xff]  ;;  %v285_v43 = vld [vmem:[%s2820_s28 + $0x810] sm:$0xff] }
  0x2c   : > { %v287_v44 = vld [vmem:[%s2820_s28 + $0x840] sm:$0xff]  ;;  %284 = vst [vmem:[%s2825_s29 + $0x1f8] sm:$0xff] %v283_v42  ;;  %286 = vst [vmem:[%s2825_s29 + $0x204] sm:$0xff] %v285_v43  ;;  %v289_v45 = vld [vmem:[%s2820_s28 + $0x870] sm:$0xff] }
  0x2d   : > { %288 = vst [vmem:[%s2825_s29 + $0x210] sm:$0xff] %v287_v44  ;;  %v291_v46 = vld [vmem:[%s2820_s28 + $0x8a0] sm:$0xff]  ;;  %v293_v47 = vld [vmem:[%s2820_s28 + $0x8d0] sm:$0xff]  ;;  %290 = vst [vmem:[%s2825_s29 + $0x21c] sm:$0xff] %v289_v45 }
  0x2e   : > { %292 = vst [vmem:[%s2825_s29 + $0x228] sm:$0xff] %v291_v46  ;;  %294 = vst [vmem:[%s2825_s29 + $0x234] sm:$0xff] %v293_v47  ;;  %v2183_v49 = vld [vmem:[%s2820_s28 + $0x38] sm:$0xf]  ;;  %v2185_v50 = vld [vmem:[%s2820_s28 + $0x68] sm:$0xf] }
  0x2f   : > { %2182 = vst [vmem:[%s2825_s29 + $0x8] sm:$0xf] %v2181_v48  ;;  %2184 = vst [vmem:[%s2825_s29 + $0x14] sm:$0xf] %v2183_v49  ;;  %v2187_v51 = vld [vmem:[%s2820_s28 + $0x98] sm:$0xf] }
  0x30   : > { %2186 = vst [vmem:[%s2825_s29 + $0x20] sm:$0xf] %v2185_v50  ;;  %v2189_v52 = vld [vmem:[%s2820_s28 + $0xc8] sm:$0xf]  ;;  %v2191_v53 = vld [vmem:[%s2820_s28 + $0xf8] sm:$0xf] }
  0x31   : > { %2188 = vst [vmem:[%s2825_s29 + $0x2c] sm:$0xf] %v2187_v51  ;;  %2190 = vst [vmem:[%s2825_s29 + $0x38] sm:$0xf] %v2189_v52  ;;  %v2193_v54 = vld [vmem:[%s2820_s28 + $0x128] sm:$0xf] }
  0x32   : > { %2192 = vst [vmem:[%s2825_s29 + $0x44] sm:$0xf] %v2191_v53  ;;  %v2195_v55 = vld [vmem:[%s2820_s28 + $0x158] sm:$0xf]  ;;  %v2197_v56 = vld [vmem:[%s2820_s28 + $0x188] sm:$0xf] }
  0x33   : > { %2194 = vst [vmem:[%s2825_s29 + $0x50] sm:$0xf] %v2193_v54  ;;  %2196 = vst [vmem:[%s2825_s29 + $0x5c] sm:$0xf] %v2195_v55  ;;  %v2199_v57 = vld [vmem:[%s2820_s28 + $0x1b8] sm:$0xf] }
  0x34   : > { %2198 = vst [vmem:[%s2825_s29 + $0x68] sm:$0xf] %v2197_v56  ;;  %v2201_v58 = vld [vmem:[%s2820_s28 + $0x1e8] sm:$0xf]  ;;  %v2203_v59 = vld [vmem:[%s2820_s28 + $0x218] sm:$0xf] }
  0x35   : > { %2200 = vst [vmem:[%s2825_s29 + $0x74] sm:$0xf] %v2199_v57  ;;  %2202 = vst [vmem:[%s2825_s29 + $0x80] sm:$0xf] %v2201_v58  ;;  %v2205_v60 = vld [vmem:[%s2820_s28 + $0x248] sm:$0xf] }
  0x36   : > { %2204 = vst [vmem:[%s2825_s29 + $0x8c] sm:$0xf] %v2203_v59  ;;  %v2207_v61 = vld [vmem:[%s2820_s28 + $0x278] sm:$0xf]  ;;  %v2209_v62 = vld [vmem:[%s2820_s28 + $0x2a8] sm:$0xf] }
  0x37   : > { %2206 = vst [vmem:[%s2825_s29 + $0x98] sm:$0xf] %v2205_v60  ;;  %2208 = vst [vmem:[%s2825_s29 + $0xa4] sm:$0xf] %v2207_v61  ;;  %v2211_v63 = vld [vmem:[%s2820_s28 + $0x2d8] sm:$0xf] }
  0x38   : > { %2210 = vst [vmem:[%s2825_s29 + $0xb0] sm:$0xf] %v2209_v62  ;;  %v2213_v0 = vld [vmem:[%s2820_s28 + $0x308] sm:$0xf]  ;;  %v2215_v1 = vld [vmem:[%s2820_s28 + $0x338] sm:$0xf] }
  0x39   : > { %2212 = vst [vmem:[%s2825_s29 + $0xbc] sm:$0xf] %v2211_v63  ;;  %2214 = vst [vmem:[%s2825_s29 + $0xc8] sm:$0xf] %v2213_v0  ;;  %v2217_v2 = vld [vmem:[%s2820_s28 + $0x368] sm:$0xf] }
  0x3a   : > { %2216 = vst [vmem:[%s2825_s29 + $0xd4] sm:$0xf] %v2215_v1  ;;  %v2219_v3 = vld [vmem:[%s2820_s28 + $0x398] sm:$0xf]  ;;  %v2221_v4 = vld [vmem:[%s2820_s28 + $0x3c8] sm:$0xf] }
  0x3b   : > { %2218 = vst [vmem:[%s2825_s29 + $0xe0] sm:$0xf] %v2217_v2  ;;  %2220 = vst [vmem:[%s2825_s29 + $0xec] sm:$0xf] %v2219_v3  ;;  %v2223_v5 = vld [vmem:[%s2820_s28 + $0x3f8] sm:$0xf] }
  0x3c   : > { %2222 = vst [vmem:[%s2825_s29 + $0xf8] sm:$0xf] %v2221_v4  ;;  %v2225_v6 = vld [vmem:[%s2820_s28 + $0x428] sm:$0xf]  ;;  %v2227_v7 = vld [vmem:[%s2820_s28 + $0x458] sm:$0xf] }
  0x3d   : > { %2224 = vst [vmem:[%s2825_s29 + $0x104] sm:$0xf] %v2223_v5  ;;  %2226 = vst [vmem:[%s2825_s29 + $0x110] sm:$0xf] %v2225_v6  ;;  %v2229_v8 = vld [vmem:[%s2820_s28 + $0x488] sm:$0xf] }
  0x3e   : > { %2228 = vst [vmem:[%s2825_s29 + $0x11c] sm:$0xf] %v2227_v7  ;;  %v2231_v9 = vld [vmem:[%s2820_s28 + $0x4b8] sm:$0xf]  ;;  %v2233_v10 = vld [vmem:[%s2820_s28 + $0x4e8] sm:$0xf] }
  0x3f   : > { %2230 = vst [vmem:[%s2825_s29 + $0x128] sm:$0xf] %v2229_v8  ;;  %2232 = vst [vmem:[%s2825_s29 + $0x134] sm:$0xf] %v2231_v9  ;;  %v2235_v11 = vld [vmem:[%s2820_s28 + $0x518] sm:$0xf] }
  0x40   : > { %2234 = vst [vmem:[%s2825_s29 + $0x140] sm:$0xf] %v2233_v10  ;;  %v2237_v12 = vld [vmem:[%s2820_s28 + $0x548] sm:$0xf]  ;;  %v2239_v13 = vld [vmem:[%s2820_s28 + $0x578] sm:$0xf] }
  0x41   : > { %2236 = vst [vmem:[%s2825_s29 + $0x14c] sm:$0xf] %v2235_v11  ;;  %2238 = vst [vmem:[%s2825_s29 + $0x158] sm:$0xf] %v2237_v12  ;;  %v2241_v14 = vld [vmem:[%s2820_s28 + $0x5a8] sm:$0xf] }
  0x42   : > { %2240 = vst [vmem:[%s2825_s29 + $0x164] sm:$0xf] %v2239_v13  ;;  %v2243_v15 = vld [vmem:[%s2820_s28 + $0x5d8] sm:$0xf]  ;;  %v2245_v16 = vld [vmem:[%s2820_s28 + $0x608] sm:$0xf] }
  0x43   : > { %2242 = vst [vmem:[%s2825_s29 + $0x170] sm:$0xf] %v2241_v14  ;;  %2244 = vst [vmem:[%s2825_s29 + $0x17c] sm:$0xf] %v2243_v15  ;;  %v2247_v17 = vld [vmem:[%s2820_s28 + $0x638] sm:$0xf] }
  0x44   : > { %2246 = vst [vmem:[%s2825_s29 + $0x188] sm:$0xf] %v2245_v16  ;;  %v2249_v18 = vld [vmem:[%s2820_s28 + $0x668] sm:$0xf]  ;;  %v2251_v19 = vld [vmem:[%s2820_s28 + $0x698] sm:$0xf] }
  0x45   : > { %2248 = vst [vmem:[%s2825_s29 + $0x194] sm:$0xf] %v2247_v17  ;;  %2250 = vst [vmem:[%s2825_s29 + $0x1a0] sm:$0xf] %v2249_v18  ;;  %v2253_v20 = vld [vmem:[%s2820_s28 + $0x6c8] sm:$0xf] }
  0x46   : > { %2252 = vst [vmem:[%s2825_s29 + $0x1ac] sm:$0xf] %v2251_v19  ;;  %v2255_v21 = vld [vmem:[%s2820_s28 + $0x6f8] sm:$0xf]  ;;  %v2257_v22 = vld [vmem:[%s2820_s28 + $0x728] sm:$0xf] }
  0x47   : > { %2254 = vst [vmem:[%s2825_s29 + $0x1b8] sm:$0xf] %v2253_v20  ;;  %2256 = vst [vmem:[%s2825_s29 + $0x1c4] sm:$0xf] %v2255_v21  ;;  %v2259_v23 = vld [vmem:[%s2820_s28 + $0x758] sm:$0xf] }
  0x48   : > { %2258 = vst [vmem:[%s2825_s29 + $0x1d0] sm:$0xf] %v2257_v22  ;;  %v2261_v24 = vld [vmem:[%s2820_s28 + $0x788] sm:$0xf]  ;;  %v2263_v25 = vld [vmem:[%s2820_s28 + $0x7b8] sm:$0xf] }
  0x49   : > { %2260 = vst [vmem:[%s2825_s29 + $0x1dc] sm:$0xf] %v2259_v23  ;;  %2262 = vst [vmem:[%s2825_s29 + $0x1e8] sm:$0xf] %v2261_v24  ;;  %v2265_v26 = vld [vmem:[%s2820_s28 + $0x7e8] sm:$0xf] }
  0x4a   : > { %2264 = vst [vmem:[%s2825_s29 + $0x1f4] sm:$0xf] %v2263_v25  ;;  %v2267_v27 = vld [vmem:[%s2820_s28 + $0x818] sm:$0xf]  ;;  %v2269_v28 = vld [vmem:[%s2820_s28 + $0x848] sm:$0xf] }
  0x4b   : > { %2266 = vst [vmem:[%s2825_s29 + $0x200] sm:$0xf] %v2265_v26  ;;  %2268 = vst [vmem:[%s2825_s29 + $0x20c] sm:$0xf] %v2267_v27  ;;  %v2271_v29 = vld [vmem:[%s2820_s28 + $0x878] sm:$0xf] }
  0x4c   : > { %2270 = vst [vmem:[%s2825_s29 + $0x218] sm:$0xf] %v2269_v28  ;;  %v2273_v30 = vld [vmem:[%s2820_s28 + $0x8a8] sm:$0xf]  ;;  %v2275_v31 = vld [vmem:[%s2820_s28 + $0x8d8] sm:$0xf] }
  0x4d   : > { %2272 = vst [vmem:[%s2825_s29 + $0x224] sm:$0xf] %v2271_v29  ;;  %2274 = vst [vmem:[%s2825_s29 + $0x230] sm:$0xf] %v2273_v30 }
  0x4e   : > { %2276 = vst [vmem:[%s2825_s29 + $0x23c] sm:$0xf] %v2275_v31 }
  0x4f PF: > { %p2277_p8 = scmp.ge.s32.totalorder %s2749_s16, 1  ;;  %p410_p9 = scmp.lt.s32.totalorder %s2749_s16, 5 }
  0x51   : > { %p411_p10 = pnand %p2277_p8, %p410_p9 }
  0x52   : > { %s417_s30 = sand.u32 (!%p411_p10), 1, %s2733_s12   ;;  %v2751_v32 = vmov (!%p411_p10), 0   ;;  %v3108_v3 = vld [vmem:[%s3581_s0 + $0x68] ss:$12 sps:$4 sm:$0xff] (!%p411_p10)   ;;  %v3122_v11 = vld [vmem:[%s3581_s0 + $0x80] ss:$12 sps:$4 sm:$0xff] (!%p411_p10)  }
  0x53   : > { %414 = sbr.rel (%p411_p10) target bundleno = 478 (0x1de), region = 54  ;;  %1400 = vmatprep.mubr.bf16.mxu1 (!%p411_p10), %v2751_v32  ;;  %v3139_v21 = vld [vmem:[%s3581_s0 + $0x98] ss:$12 sps:$4 sm:$0xff] (!%p411_p10)   ;;  %v3157_v31 = vld [vmem:[%s3581_s0 + $0xb0] ss:$12 sps:$4 sm:$0xff] (!%p411_p10)  }
  0x54   : > { %s2540_s4 = smul.u32 (!%p411_p10), 576, %s417_s30  ;;  %v2677_v26 = vld [vmem:[%s3581_s0 + $0x4] ss:$12 sps:$4 sm:$0xff] (!%p411_p10)  }
  0x55   : > { %1247 = vmatprep.mubr.bf16.mxu0 (!%p411_p10), %v2677_v26 }
  0x56   : > { %s3022_s5 = scalar_lea.vmem (!%p411_p10), [#allocation3], %s2540_s4  ;;  %s2541_s4 = smul.u32 (!%p411_p10), 384, %s417_s30 }
  0x57   : > { %v2583_v33 = vld [vmem:[%s3022_s5 + $0x4] ss:$12 sps:$4 sm:$0xff] (!%p411_p10)   ;;  %v2587_v35 = vld [vmem:[%s3022_s5] ss:$12 sps:$4 sm:$0xff] (!%p411_p10)   ;;  %v2589_v37 = vld [vmem:[%s3022_s5 + $0x1c] ss:$12 sps:$4 sm:$0xff] (!%p411_p10)  }
  0x58   : > { %v3026_v34 = vld [vmem:[%s3022_s5 + $0x184] ss:$12 sps:$4 sm:$0xff] (!%p411_p10)   ;;  %1215 = vmatprep.subr.bf16.mxu0 (!%p411_p10), %v2583_v33  ;;  %v3030_v36 = vld [vmem:[%s3022_s5 + $0x180] ss:$12 sps:$4 sm:$0xff] (!%p411_p10)   ;;  %v3036_v38 = vld [vmem:[%s3022_s5 + $0x19c] ss:$12 sps:$4 sm:$0xff] (!%p411_p10)  }
  0x59   : > { %2491 = vmatprep.subr.bf16.mxu1 (!%p411_p10), %v3026_v34  ;;  %1216 = vmatpush1.bf16.msra.mxu0 (!%p411_p10), %v2587_v35  ;;  %v2593_v39 = vld [vmem:[%s3022_s5 + $0x18] ss:$12 sps:$4 sm:$0xff] (!%p411_p10)   ;;  %v2595_v41 = vld [vmem:[%s3022_s5 + $0x34] ss:$12 sps:$4 sm:$0xff] (!%p411_p10)   ;;  %v2599_v43 = vld [vmem:[%s3022_s5 + $0x30] ss:$12 sps:$4 sm:$0xff] (!%p411_p10)  }
  0x5a   : > { %2499 = vmatpush1.bf16.msra.mxu1 %v3030_v36  ;;  %1217 = vmatprep.subr.bf16.mxu0 %v2589_v37  ;;  %v3040_v40 = vld [vmem:[%s3022_s5 + $0x198] ss:$12 sps:$4 sm:$0xff]   ;;  %v3045_v42 = vld [vmem:[%s3022_s5 + $0x1b4] ss:$12 sps:$4 sm:$0xff]   ;;  %v3049_v44 = vld [vmem:[%s3022_s5 + $0x1b0] ss:$12 sps:$4 sm:$0xff]  }
  0x5b   : > { %2492 = vmatprep.subr.bf16.mxu1 %v3036_v38  ;;  %v2601_v45 = vld [vmem:[%s3022_s5 + $0x4c] ss:$12 sps:$4 sm:$0xff]   ;;  %v2605_v47 = vld [vmem:[%s3022_s5 + $0x48] ss:$12 sps:$4 sm:$0xff]   ;;  %v2607_v49 = vld [vmem:[%s3022_s5 + $0x64] ss:$12 sps:$4 sm:$0xff]  }
  0x5c   : > { %v3055_v46 = vld [vmem:[%s3022_s5 + $0x1cc] ss:$12 sps:$4 sm:$0xff]   ;;  %v3060_v48 = vld [vmem:[%s3022_s5 + $0x1c8] ss:$12 sps:$4 sm:$0xff]   ;;  %v3065_v50 = vld [vmem:[%s3022_s5 + $0x1e4] ss:$12 sps:$4 sm:$0xff]  }
  0x5d   : > { %1218 = vmatpush1.bf16.msra.mxu0 %v2593_v39  ;;  %v2611_v51 = vld [vmem:[%s3022_s5 + $0x60] ss:$12 sps:$4 sm:$0xff]   ;;  %v2613_v53 = vld [vmem:[%s3022_s5 + $0x7c] ss:$12 sps:$4 sm:$0xff]   ;;  %v2617_v55 = vld [vmem:[%s3022_s5 + $0x78] ss:$12 sps:$4 sm:$0xff]  }
  0x5e   : > { %2500 = vmatpush1.bf16.msra.mxu1 %v3040_v40  ;;  %1219 = vmatprep.subr.bf16.mxu0 %v2595_v41  ;;  %v3069_v52 = vld [vmem:[%s3022_s5 + $0x1e0] ss:$12 sps:$4 sm:$0xff]   ;;  %v3075_v54 = vld [vmem:[%s3022_s5 + $0x1fc] ss:$12 sps:$4 sm:$0xff]   ;;  %v3080_v56 = vld [vmem:[%s3022_s5 + $0x1f8] ss:$12 sps:$4 sm:$0xff]  }
  0x5f   : > { %2493 = vmatprep.subr.bf16.mxu1 %v3045_v42  ;;  %v2619_v57 = vld [vmem:[%s3022_s5 + $0x94] ss:$12 sps:$4 sm:$0xff]   ;;  %v2623_v59 = vld [vmem:[%s3022_s5 + $0x90] ss:$12 sps:$4 sm:$0xff]   ;;  %v2625_v61 = vld [vmem:[%s3022_s5 + $0xac] ss:$12 sps:$4 sm:$0xff]  }
  0x60   : > { %v3085_v58 = vld [vmem:[%s3022_s5 + $0x214] ss:$12 sps:$4 sm:$0xff]   ;;  %v3089_v60 = vld [vmem:[%s3022_s5 + $0x210] ss:$12 sps:$4 sm:$0xff]   ;;  %v3095_v62 = vld [vmem:[%s3022_s5 + $0x22c] ss:$12 sps:$4 sm:$0xff]  }
  0x61   : > { %1220 = vmatpush1.bf16.msra.mxu0 %v2599_v43  ;;  %v2629_v63 = vld [vmem:[%s3022_s5 + $0xa8] ss:$12 sps:$4 sm:$0xff]   ;;  %v2631_v1 = vld [vmem:[%s3022_s5 + $0xc4] ss:$12 sps:$4 sm:$0xff]   ;;  %v2635_v4 = vld [vmem:[%s3022_s5 + $0xc0] ss:$12 sps:$4 sm:$0xff]  }
  0x62   : > { %2501 = vmatpush1.bf16.msra.mxu1 %v3049_v44  ;;  %1221 = vmatprep.subr.bf16.mxu0 %v2601_v45  ;;  %v3099_v0 = vld [vmem:[%s3022_s5 + $0x228] ss:$12 sps:$4 sm:$0xff]   ;;  %v2639_v7 = vld [vmem:[%s3022_s5 + $0xe0] ss:$12 sps:$4 sm:$0xff]   ;;  %v2640_v8 = vld [vmem:[%s3022_s5 + $0xd8] ss:$12 sps:$4 sm:$0xff]  }
  0x63   : > { %2494 = vmatprep.subr.bf16.mxu1 %v3055_v46  ;;  %v2634_v2 = vld [vmem:[%s3022_s5 + $0xc8] ss:$12 sps:$4 sm:$0xff]   ;;  %v2641_v9 = vld [vmem:[%s3022_s5 + $0x20] ss:$12 sps:$4 sm:$0xff]   ;;  %v2645_v12 = vld [vmem:[%s3022_s5 + $0xf8] ss:$12 sps:$4 sm:$0xff]  }
  0x64   : > { %v2636_v5 = vld [vmem:[%s3022_s5 + $0x8] ss:$12 sps:$4 sm:$0xff]   ;;  %v2646_v13 = vld [vmem:[%s3022_s5 + $0xf0] ss:$12 sps:$4 sm:$0xff]   ;;  %v2647_v14 = vld [vmem:[%s3022_s5 + $0x38] ss:$12 sps:$4 sm:$0xff]  }
  0x65   : > { %1222 = vmatpush1.bf16.msra.mxu0 %v2605_v47  ;;  %v2637_v6 = vld [vmem:[%s3022_s5 + $0xdc] ss:$12 sps:$4 sm:$0xff]   ;;  %v2642_v10 = vld [vmem:[%s3022_s5 + $0xf4] ss:$12 sps:$4 sm:$0xff]   ;;  %v2648_v15 = vld [vmem:[%s3022_s5 + $0x10c] ss:$12 sps:$4 sm:$0xff]  }
  0x66   : > { %2502 = vmatpush1.bf16.msra.mxu1 %v3060_v48  ;;  %1223 = vmatprep.subr.bf16.mxu0 %v2607_v49  ;;  %v2650_v16 = vld [vmem:[%s3022_s5 + $0x110] ss:$12 sps:$4 sm:$0xff]   ;;  %v2651_v17 = vld [vmem:[%s3022_s5 + $0x108] ss:$12 sps:$4 sm:$0xff]   ;;  %v2657_v22 = vld [vmem:[%s3022_s5 + $0x120] ss:$12 sps:$4 sm:$0xff]  }
  0x67   : > { %2495 = vmatprep.subr.bf16.mxu1 %v3065_v50  ;;  %v2652_v18 = vld [vmem:[%s3022_s5 + $0x50] ss:$12 sps:$4 sm:$0xff]   ;;  %v2656_v20 = vld [vmem:[%s3022_s5 + $0x128] ss:$12 sps:$4 sm:$0xff]   ;;  %v2661_v25 = vld [vmem:[%s3022_s5 + $0x140] ss:$12 sps:$4 sm:$0xff]  }
  0x68   : > { %v2653_v19 = vld [vmem:[%s3022_s5 + $0x124] ss:$12 sps:$4 sm:$0xff]   ;;  %v2658_v23 = vld [vmem:[%s3022_s5 + $0x68] ss:$12 sps:$4 sm:$0xff]   ;;  %v2663_v28 = vld [vmem:[%s3022_s5 + $0x80] ss:$12 sps:$4 sm:$0xff]  }
  0x69   : > { %1224 = vmatpush1.bf16.msra.mxu0 %v2611_v51  ;;  %v2659_v24 = vld [vmem:[%s3022_s5 + $0x13c] ss:$12 sps:$4 sm:$0xff]   ;;  %v2662_v27 = vld [vmem:[%s3022_s5 + $0x138] ss:$12 sps:$4 sm:$0xff]   ;;  %v2664_v29 = vld [vmem:[%s3022_s5 + $0x154] ss:$12 sps:$4 sm:$0xff]  }
  0x6a   : > { %2503 = vmatpush1.bf16.msra.mxu1 %v3069_v52  ;;  %1225 = vmatprep.subr.bf16.mxu0 %v2613_v53  ;;  %v2667_v30 = vld [vmem:[%s3022_s5 + $0x158] ss:$12 sps:$4 sm:$0xff]   ;;  %v2668_v33 = vld [vmem:[%s3022_s5 + $0x150] ss:$12 sps:$4 sm:$0xff]   ;;  %v2673_v41 = vld [vmem:[%s3022_s5 + $0x168] ss:$12 sps:$4 sm:$0xff]  }
  0x6b   : > { %2496 = vmatprep.subr.bf16.mxu1 %v3075_v54  ;;  %v2669_v35 = vld [vmem:[%s3022_s5 + $0x98] ss:$12 sps:$4 sm:$0xff]   ;;  %v2672_v39 = vld [vmem:[%s3022_s5 + $0x170] ss:$12 sps:$4 sm:$0xff]   ;;  %v2678_v45 = vld [vmem:[%s3022_s5 + $0x188] ss:$12 sps:$4 sm:$0xff]  }
  0x6c   : > { %v2670_v37 = vld [vmem:[%s3022_s5 + $0x16c] ss:$12 sps:$4 sm:$0xff]   ;;  %v2674_v43 = vld [vmem:[%s3022_s5 + $0xb0] ss:$12 sps:$4 sm:$0xff]   ;;  %s3324_s12 = scalar_lea.vmem [#allocation4], %s2541_s4  ;;  %s2378_s30 = smul.u32 (%p2807_p6), 24, %s2741_s14 }
  0x6d   : > { %1226 = vmatpush1.bf16.msra.mxu0 %v2617_v55  ;;  %v2675_v47 = vld [vmem:[%s3581_s0] ss:$12 sps:$4 sm:$0xff]   ;;  %v2679_v49 = vld [vmem:[%s3581_s0 + $0x1c] ss:$12 sps:$4 sm:$0xff]   ;;  %v2686_v53 = vld [vmem:[%s3022_s5 + $0x1b8] ss:$12 sps:$4 sm:$0xff]  }
  0x6e   : > { %2504 = vmatpush1.bf16.msra.mxu1 %v3080_v56  ;;  %1227 = vmatprep.subr.bf16.mxu0 %v2619_v57  ;;  %v2682_v51 = vld [vmem:[%s3022_s5 + $0x1a0] ss:$12 sps:$4 sm:$0xff]   ;;  %v2706_v57 = vld [vmem:[%s3022_s5 + $0x230] ss:$12 sps:$4 sm:$0xff]   ;;  %s3474_s7 = scalar_lea.vmem (%p2807_p6), %s3584_s3, %s2378_s30 }
  0x6f   : > { %2497 = vmatprep.subr.bf16.mxu1 %v3085_v58  ;;  %v2683_v55 = vld [vmem:[%s3581_s0 + $0x34] ss:$12 sps:$4 sm:$0xff]  }
  0x71   : > { %1228 = vmatpush1.bf16.msra.mxu0 %v2623_v59  ;;  %v2701_v59 = vld [vmem:[%s3581_s0 + $0x90] ss:$12 sps:$4 sm:$0xff]  }
  0x72   : > { %2505 = vmatpush1.bf16.msra.mxu1 %v3089_v60  ;;  %1229 = vmatprep.subr.bf16.mxu0 %v2625_v61  ;;  %v2705_v61 = vld [vmem:[%s3581_s0 + $0xa8] ss:$12 sps:$4 sm:$0xff]  }
  0x73   : > { %2498 = vmatprep.subr.bf16.mxu1 %v3095_v62 }
  0x75   : > { %1230 = vmatpush1.bf16.msra.mxu0 %v2629_v63  ;;  %v2708_v63 = vld [vmem:[%s3581_s0 + $0x20] ss:$12 sps:$4 sm:$0xff]  }
  0x76   : > { %2506 = vmatpush1.bf16.msra.mxu1 %v3099_v0  ;;  %1231 = vmatprep.subr.bf16.mxu0 %v2631_v1  ;;  %v2710_v1 = vld [vmem:[%s3581_s0 + $0x50] ss:$12 sps:$4 sm:$0xff]  }
  0x77   : > { %2379 = vmatprep.subr.bf16.mxu1 %v2634_v2 }
  0x79   : > { %1401 = vmatmul.mubr.bf16.vlgmr.msra.gmra.mrb[0].mxu1 %v3108_v3  ;;  %1232 = vmatpush1.bf16.msra.mxu0 %v2635_v4 }
  0x7a   : > { %2380 = vmatpush3.bf16.msra.mxu1 %v2636_v5  ;;  %1233 = vmatprep.subr.bf16.mxu0 %v2637_v6 }
  0x7b   : > { %2381 = vmatprep.subr.bf16.mxu1 %v2639_v7  ;;  %1410 = vmatprep.mubr.bf16.mxu1 %v2751_v32 }
  0x7d   : > { %1234 = vmatpush1.bf16.msra.mxu0 %v2640_v8 }
  0x7e   : > { %2382 = vmatpush3.bf16.msra.mxu1 %v2641_v9  ;;  %1235 = vmatprep.subr.bf16.mxu0 %v2642_v10 }
  0x7f   : > { %2383 = vmatprep.subr.bf16.mxu1 %v2645_v12 }
  0x81   : > { %1411 = vmatmul.mubr.bf16.gmra.mrb[4].mxu1 %v3122_v11  ;;  %1236 = vmatpush1.bf16.msra.mxu0 %v2646_v13 }
  0x82   : > { %2384 = vmatpush3.bf16.msra.mxu1 %v2647_v14  ;;  %1237 = vmatprep.subr.bf16.mxu0 %v2648_v15 }
  0x83   : > { %2385 = vmatprep.subr.bf16.mxu1 %v2650_v16  ;;  %1420 = vmatprep.mubr.bf16.mxu1 %v2751_v32 }
  0x85   : > { %1238 = vmatpush1.bf16.msra.mxu0 %v2651_v17 }
  0x86   : > { %2386 = vmatpush3.bf16.msra.mxu1 %v2652_v18  ;;  %1239 = vmatprep.subr.bf16.mxu0 %v2653_v19 }
  0x87   : > { %2387 = vmatprep.subr.bf16.mxu1 %v2656_v20 }
  0x89   : > { %1421 = vmatmul.mubr.bf16.gmra.mrb[8].mxu1 %v3139_v21  ;;  %1240 = vmatpush1.bf16.msra.mxu0 %v2657_v22 }
  0x8a   : > { %2388 = vmatpush3.bf16.msra.mxu1 %v2658_v23  ;;  %1241 = vmatprep.subr.bf16.mxu0 %v2659_v24 }
  0x8b   : > { %2389 = vmatprep.subr.bf16.mxu1 %v2661_v25  ;;  %1430 = vmatprep.mubr.bf16.mxu1 %v2751_v32 }
  0x8d   : > { %1242 = vmatpush1.bf16.msra.mxu0 %v2662_v27 }
  0x8e   : > { %2390 = vmatpush3.bf16.msra.mxu1 %v2663_v28  ;;  %1243 = vmatprep.subr.bf16.mxu0 %v2664_v29 }
  0x8f   : > { %2391 = vmatprep.subr.bf16.mxu1 %v2667_v30 }
  0x91   : > { %1431 = vmatmul.mubr.bf16.gmra.mrb[12].mxu1 %v3157_v31  ;;  %1244 = vmatpush1.bf16.msra.mxu0 %v2668_v33 }
  0x92   : > { %2392 = vmatpush3.bf16.msra.mxu1 %v2669_v35  ;;  %1245 = vmatprep.subr.bf16.mxu0 %v2670_v37  ;;  %v1784_v37 = vlaneseq }
  0x93   : > { %2393 = vmatprep.subr.bf16.mxu1 %v2672_v39  ;;  %1473 = vmatprep.mubr.bf16.mxu1 %v2677_v26 }
  0x95   : > { %1246 = vmatpush1.bf16.msra.mxu0 %v2673_v41  ;;  %v3294_v41 = vshrl.u32 %v1784_v37, 7 }
  0x96   : > { %2394 = vmatpush3.bf16.msra.mxu1 %v2674_v43  ;;  %1328 = vmatprep.subr.bf16.mxu0 %v3026_v34  ;;  %v2681_v34 = vld [vmem:[%s3581_s0 + $0x18] ss:$12 sps:$4 sm:$0xff]  }
  0x97   : > { %2459 = vmatprep.subr.bf16.mxu1 %v2678_v45 }
  0x98   : > { %1248 = vmatmul.mubr.bf16.vlgmr.msra.gmra.mrb[0].mxu0 %v2675_v47 }
  0x99   : > { %1474 = vmatmul.mubr.bf16.vlgmr.msra.gmra.mrb[16].mxu1 %v2675_v47  ;;  %1329 = vmatpush1.bf16.msra.mxu0 %v3030_v36  ;;  %v2690_v36 = vld [vmem:[%s3022_s5 + $0x1d0] ss:$12 sps:$4 sm:$0xff]  }
  0x9a   : > { %2460 = vmatpush3.bf16.msra.mxu1 %v2678_v45  ;;  %1257 = vmatprep.mubr.bf16.mxu0 %v2679_v49 }
  0x9b   : > { %1481 = vmatprep.mubr.bf16.mxu1 %v2679_v49  ;;  %2461 = vmatprep.subr.bf16.mxu1 %v2682_v51 }
  0x9c   : > { %1330 = vmatprep.subr.bf16.mxu0 %v3036_v38  ;;  %v2694_v38 = vld [vmem:[%s3022_s5 + $0x1e8] ss:$12 sps:$4 sm:$0xff]  }
  0x9d   : > { %1331 = vmatpush1.bf16.msra.mxu0 %v3040_v40  ;;  %v2685_v40 = vld [vmem:[%s3581_s0 + $0x30] ss:$12 sps:$4 sm:$0xff]  }
  0x9e   : > { %2462 = vmatpush3.bf16.msra.mxu1 %v2682_v51  ;;  %1332 = vmatprep.subr.bf16.mxu0 %v3045_v42  ;;  %v2687_v42 = vld [vmem:[%s3581_s0 + $0x4c] ss:$12 sps:$4 sm:$0xff]  }
  0x9f   : > { %2463 = vmatprep.subr.bf16.mxu1 %v2686_v53 }
  0xa0   : > { %1258 = vmatmul.mubr.bf16.gmra.mrb[4].mxu0 %v2681_v34 }
  0xa1   : > { %1482 = vmatmul.mubr.bf16.gmra.mrb[20].mxu1 %v2681_v34  ;;  %1267 = vmatprep.mubr.bf16.mxu0 %v2683_v55 }
  0xa2   : > { %1489 = vmatprep.mubr.bf16.mxu1 %v2683_v55  ;;  %2464 = vmatpush3.bf16.msra.mxu1 %v2686_v53  ;;  %v1786_v53 = vsub.s32 0, %v3294_v41 }
  0xa3   : > { %1333 = vmatpush1.bf16.msra.mxu0 %v3049_v44  ;;  %2465 = vmatprep.subr.bf16.mxu1 %v2690_v36  ;;  %v2698_v44 = vld [vmem:[%s3022_s5 + $0x200] ss:$12 sps:$4 sm:$0xff]  }
  0xa4   : > { %1334 = vmatprep.subr.bf16.mxu0 %v3055_v46  ;;  %v2702_v46 = vld [vmem:[%s3022_s5 + $0x218] ss:$12 sps:$4 sm:$0xff]   ;;  %s467_s5 = smul.u32 3, %s2741_s14 }
  0xa6   : > { %2466 = vmatpush3.bf16.msra.mxu1 %v2690_v36  ;;  %p468_p11 = scmp.lt.s32.totalorder %s467_s5, 11  ;;  %v1790_v36 = vsub.s32 1, %v3294_v41 }
  0xa7   : > { %1335 = vmatpush1.bf16.msra.mxu0 %v3060_v48  ;;  %2467 = vmatprep.subr.bf16.mxu1 %v2694_v38  ;;  %v2689_v48 = vld [vmem:[%s3581_s0 + $0x48] ss:$12 sps:$4 sm:$0xff]  }
  0xa8   : > { %1336 = vmatprep.subr.bf16.mxu0 %v3065_v50  ;;  %1268 = vmatmul.mubr.bf16.gmra.mrb[8].mxu0 %v2685_v40  ;;  %v2691_v50 = vld [vmem:[%s3581_s0 + $0x64] ss:$12 sps:$4 sm:$0xff]   ;;  %s3593_s5 = smov (!%p468_p11, %s467_s5), 11 }
  0xa9   : > { %1490 = vmatmul.mubr.bf16.gmra.mrb[24].mxu1 %v2685_v40  ;;  %1277 = vmatprep.mubr.bf16.mxu0 %v2687_v42  ;;  %s470_s29 = scalar_lea.vmem %s3583_s2, %s3593_s5 }
  0xaa   : > { %1497 = vmatprep.mubr.bf16.mxu1 %v2687_v42  ;;  %2468 = vmatpush3.bf16.msra.mxu1 %v2694_v38  ;;  %v3304_v55 = vld [vmem:[%s470_s29] sm:$0x7] }
  0xab   : > { %1337 = vmatpush1.bf16.msra.mxu0 %v3069_v52  ;;  %2469 = vmatprep.subr.bf16.mxu1 %v2698_v44  ;;  %v2693_v52 = vld [vmem:[%s3581_s0 + $0x60] ss:$12 sps:$4 sm:$0xff]   ;;  %v3308_v38 = vrot.slane %v3304_v55, %v1786_v53 }
  0xac   : > { %1338 = vmatprep.subr.bf16.mxu0 %v3075_v54  ;;  %v2695_v54 = vld [vmem:[%s3581_s0 + $0x7c] ss:$12 sps:$4 sm:$0xff]  }
  0xae   : > { %2470 = vmatpush3.bf16.msra.mxu1 %v2698_v44  ;;  %v3313_v44 = vrot.slane %v3304_v55, %v1790_v36 }
  0xaf   : > { %1339 = vmatpush1.bf16.msra.mxu0 %v3080_v56  ;;  %2471 = vmatprep.subr.bf16.mxu1 %v2702_v46  ;;  %v2697_v56 = vld [vmem:[%s3581_s0 + $0x78] ss:$12 sps:$4 sm:$0xff]  }
  0xb0   : > { %1340 = vmatprep.subr.bf16.mxu0 %v3085_v58  ;;  %1278 = vmatmul.mubr.bf16.gmra.mrb[12].mxu0 %v2689_v48  ;;  %v2699_v58 = vld [vmem:[%s3581_s0 + $0x94] ss:$12 sps:$4 sm:$0xff]  }
  0xb1   : > { %1498 = vmatmul.mubr.bf16.gmra.mrb[28].mxu1 %v2689_v48  ;;  %1287 = vmatprep.mubr.bf16.mxu0 %v2691_v50 }
  0xb2   : > { %1505 = vmatprep.mubr.bf16.mxu1 %v2691_v50  ;;  %2472 = vmatpush3.bf16.msra.mxu1 %v2702_v46 }
  0xb3   : > { %1341 = vmatpush1.bf16.msra.mxu0 %v3089_v60  ;;  %2473 = vmatprep.subr.bf16.mxu1 %v2706_v57  ;;  %v2703_v60 = vld [vmem:[%s3581_s0 + $0xac] ss:$12 sps:$4 sm:$0xff]  }
  0xb4   : > { %1342 = vmatprep.subr.bf16.mxu0 %v3095_v62  ;;  %v2707_v62 = vld [vmem:[%s3581_s0 + $0x8] ss:$12 sps:$4 sm:$0xff]  }
  0xb6   : > { %2474 = vmatpush3.bf16.msra.mxu1 %v2706_v57 }
  0xb7   : > { %1343 = vmatpush1.bf16.msra.mxu0 %v3099_v0  ;;  %v2709_v0 = vld [vmem:[%s3581_s0 + $0x38] ss:$12 sps:$4 sm:$0xff]  }
  0xb8   : > { %1288 = vmatmul.mubr.bf16.gmra.mrb[16].mxu0 %v2693_v52 }
  0xb9   : > { %1506 = vmatmul.mubr.bf16.gmra.mrb[32].mxu1 %v2693_v52  ;;  %1297 = vmatprep.mubr.bf16.mxu0 %v2695_v54 }
  0xba   : > { %1513 = vmatprep.mubr.bf16.mxu1 %v2695_v54 }
  0xc0   : > { %1298 = vmatmul.mubr.bf16.gmra.mrb[20].mxu0 %v2697_v56 }
  0xc1   : > { %1514 = vmatmul.mubr.bf16.gmra.mrb[36].mxu1 %v2697_v56  ;;  %1307 = vmatprep.mubr.bf16.mxu0 %v2699_v58 }
  0xc2   : > { %1521 = vmatprep.mubr.bf16.mxu1 %v2699_v58 }
  0xc8   : > { %1308 = vmatmul.mubr.bf16.gmra.mrb[24].mxu0 %v2701_v59 }
  0xc9   : > { %1522 = vmatmul.mubr.bf16.gmra.mrb[40].mxu1 %v2701_v59  ;;  %1317 = vmatprep.mubr.bf16.mxu0 %v2703_v60 }
  0xca   : > { %1529 = vmatprep.mubr.bf16.mxu1 %v2703_v60 }
  0xd0   : > { %1318 = vmatmul.mubr.bf16.gmra.mrb[28].mxu0 %v2705_v61 }
  0xd1   : > { %1530 = vmatmul.mubr.bf16.gmra.mrb[44].mxu1 %v2705_v61  ;;  %1360 = vmatprep.mubr.bf16.mxu0 %v2751_v32 }
  0xd2   : > { %2475 = vmatprep.mubr.bf16.mxu1 %v2707_v62 }
  0xd8   : > { %1361 = vmatmul.mubr.bf16.vlgmr.msra.gmra.mrb[0].mxu0 %v2707_v62 }
  0xd9   : > { %2476 = vmatmul.mubr.bf16.vlgmr.msra.gmra.mrb[48].mxu1 %v2708_v63  ;;  %1370 = vmatprep.mubr.bf16.mxu0 %v2751_v32 }
  0xda   : > { %2479 = vmatprep.mubr.bf16.mxu1 %v2709_v0 }
  0xe0   : > { %1371 = vmatmul.mubr.bf16.gmra.mrb[4].mxu0 %v2708_v63 }
  0xe1   : > { %2480 = vmatmul.mubr.bf16.gmra.mrb[52].mxu1 %v2710_v1  ;;  %1380 = vmatprep.mubr.bf16.mxu0 %v2751_v32 }
  0xe2   : > { %2483 = vmatprep.mubr.bf16.mxu1 %v3108_v3 }
  0xe8   : > { %1381 = vmatmul.mubr.bf16.gmra.mrb[8].mxu0 %v2709_v0 }
  0xe9   : > { %2484 = vmatmul.mubr.bf16.gmra.mrb[56].mxu1 %v3122_v11  ;;  %1390 = vmatprep.mubr.bf16.mxu0 %v2751_v32 }
  0xea   : > { %2487 = vmatprep.mubr.bf16.mxu1 %v3139_v21 }
  0xf0   : > { %1391 = vmatmul.mubr.bf16.gmra.mrb[12].mxu0 %v2710_v1 }
  0xf1   : > { %2488 = vmatmul.mubr.bf16.gmra.mrb[60].mxu1 %v3157_v31 }
 0x14c   : > { %v1402_v2 = vpop.f32.mrb[0].mxu1 }
 0x14d   : > { %v1404_v4 = vpop.f32.mrb[1].mxu1 }
 0x14e   : > { %v1406_v5 = vpop.f32.mrb[2].mxu1 }
 0x14f   : > { %v3255_v6 = vpop.f32.mrb[3].mxu1 }
 0x154   : > { %v3257_v7 = vpop.f32.mrb[4].mxu1 }
 0x155   : > { %v3259_v8 = vpop.f32.mrb[5].mxu1 }
 0x156   : > { %v3261_v3 = vpop.f32.mrb[6].mxu1 }
 0x157   : > { %v3263_v9 = vpop.f32.mrb[7].mxu1 }
 0x15c   : > { %v3265_v10 = vpop.f32.mrb[8].mxu1 }
 0x15d   : > { %v3267_v32 = vpop.f32.mrb[9].mxu1 }
 0x15e   : > { %v3269_v11 = vpop.f32.mrb[10].mxu1 }
 0x15f   : > { %v3271_v12 = vpop.f32.mrb[11].mxu1 }
 0x164   : > { %v3273_v13 = vpop.f32.mrb[12].mxu1 }
 0x165   : > { %v3275_v14 = vpop.f32.mrb[13].mxu1 }
 0x166   : > { %v3277_v15 = vpop.f32.mrb[14].mxu1 }
 0x167   : > { %v3279_v16 = vpop.f32.mrb[15].mxu1 }
 0x16c   : > { %v2395_v17 = vpop.f32.mrb[16].mxu1 }
 0x16d   : > { %v2396_v18 = vpop.f32.mrb[17].mxu1 }
 0x16e   : > { %v3281_v19 = vadd.f32 %v2396_v18, %v2395_v17  ;;  %v2398_v20 = vpop.f32.mrb[18].mxu1 }
 0x16f   : > { %v2399_v21 = vpop.f32.mrb[19].mxu1 }
 0x170   : > { %v3283_v22 = vadd.f32 %v2399_v21, %v2398_v20 }
 0x174   : > { %v2401_v23 = vpop.f32.mrb[20].mxu1 }
 0x175   : > { %v2402_v24 = vpop.f32.mrb[21].mxu1 }
 0x176   : > { %v3285_v25 = vadd.f32 %v2402_v24, %v2401_v23  ;;  %v2404_v26 = vpop.f32.mrb[22].mxu1 }
 0x177   : > { %v2405_v27 = vpop.f32.mrb[23].mxu1 }
 0x178   : > { %v3287_v28 = vadd.f32 %v2405_v27, %v2404_v26 }
 0x17c   : > { %v2407_v29 = vpop.f32.mrb[24].mxu1 }
 0x17d   : > { %v2408_v30 = vpop.f32.mrb[25].mxu1 }
 0x17e   : > { %v3290_v31 = vadd.f32 %v2408_v30, %v2407_v29  ;;  %v2410_v33 = vpop.f32.mrb[26].mxu1 }
 0x17f   : > { %v2411_v35 = vpop.f32.mrb[27].mxu1 }
 0x180   : > { %v3292_v39 = vadd.f32 %v2411_v35, %v2410_v33 }
 0x184   : > { %v2413_v43 = vpop.f32.mrb[28].mxu1 }
 0x185   : > { %v2414_v45 = vpop.f32.mrb[29].mxu1 }
 0x186   : > { %v3299_v47 = vadd.f32 %v2414_v45, %v2413_v43  ;;  %v2416_v49 = vpop.f32.mrb[30].mxu1 }
 0x187   : > { %v2417_v51 = vpop.f32.mrb[31].mxu1 }
 0x188   : > { %v3302_v34 = vadd.f32 %v2417_v51, %v2416_v49 }
 0x18b   : > { %v1289_v40 = vpop.f32.mrb[16].mxu0 }
 0x18c   : > { %v2419_v42 = vpop.f32.mrb[32].mxu1  ;;  %v1403_v46 = vadd.f32 %v1402_v2, %v1289_v40  ;;  %v1291_v48 = vpop.f32.mrb[17].mxu0 }
 0x18d   : > { %v2420_v50 = vpop.f32.mrb[33].mxu1  ;;  %v1405_v57 = vadd.f32 %v1404_v4, %v1291_v48  ;;  %v1293_v54 = vpop.f32.mrb[18].mxu0 }
 0x18e   : > { %v3315_v52 = vadd.f32 %v2420_v50, %v2419_v42  ;;  %v2422_v56 = vpop.f32.mrb[34].mxu1  ;;  %v1823_v58 = vadd.f32 %v3308_v38, %v1403_v46  ;;  %v1407_v59 = vadd.f32 %v1406_v5, %v1293_v54  ;;  %v1295_v60 = vpop.f32.mrb[19].mxu0 }
 0x18f   : > { %v2423_v61 = vpop.f32.mrb[35].mxu1  ;;  %v1824_v62 = vadd.f32 %v3313_v44, %v1405_v57  ;;  %v1409_v63 = vadd.f32 %v3255_v6, %v1295_v60 }
 0x190   : > { %v3320_v0 = vadd.f32 %v2423_v61, %v2422_v56  ;;  %v1871_v1 = vmax.f32 %v1823_v58, 0.0  ;;  %v1826_v2 = vadd.f32 %v3308_v38, %v1407_v59 }
 0x191   : > { %v1872_v17 = vmax.f32 %v1824_v62, 0.0  ;;  %v1827_v4 = vadd.f32 %v3313_v44, %v1409_v63 }
 0x192   : > { %1919 = vst [vmem:[%s3324_s12 + $0xc0] sm:$0xff] %v1871_v1  ;;  %v1874_v5 = vmax.f32 %v1826_v2, 0.0 }
 0x193   : > { %1920 = vst [vmem:[%s3324_s12 + $0xc8] sm:$0xff] %v1872_v17  ;;  %v1875_v18 = vmax.f32 %v1827_v4, 0.0  ;;  %v1299_v20 = vpop.f32.mrb[20].mxu0 }
 0x194   : > { %v2425_v6 = vpop.f32.mrb[36].mxu1  ;;  %1922 = vst [vmem:[%s3324_s12 + $0xd8] sm:$0xff] %v1874_v5  ;;  %v1413_v21 = vadd.f32 %v3257_v7, %v1299_v20  ;;  %v1301_v23 = vpop.f32.mrb[21].mxu0 }
 0x195   : > { %v2426_v24 = vpop.f32.mrb[37].mxu1  ;;  %1923 = vst [vmem:[%s3324_s12 + $0xe0] sm:$0xff] %v1875_v18  ;;  %v1415_v26 = vadd.f32 %v3259_v8, %v1301_v23  ;;  %v1303_v29 = vpop.f32.mrb[22].mxu0 }
 0x196   : > { %v3332_v27 = vadd.f32 %v2426_v24, %v2425_v6  ;;  %v2428_v30 = vpop.f32.mrb[38].mxu1  ;;  %v1829_v33 = vadd.f32 %v3308_v38, %v1413_v21  ;;  %v1417_v35 = vadd.f32 %v3261_v3, %v1303_v29  ;;  %v1305_v37 = vpop.f32.mrb[23].mxu0 }
 0x197   : > { %v2429_v43 = vpop.f32.mrb[39].mxu1  ;;  %v1830_v7 = vadd.f32 %v3313_v44, %v1415_v26  ;;  %v1419_v45 = vadd.f32 %v3263_v9, %v1305_v37 }
 0x198   : > { %v3338_v49 = vadd.f32 %v2429_v43, %v2428_v30  ;;  %v1877_v8 = vmax.f32 %v1829_v33, 0.0  ;;  %v1832_v51 = vadd.f32 %v3308_v38, %v1417_v35 }
 0x199   : > { %v1878_v53 = vmax.f32 %v1830_v7, 0.0  ;;  %v1833_v36 = vadd.f32 %v3313_v44, %v1419_v45 }
 0x19a   : > { %1925 = vst [vmem:[%s3324_s12 + $0xf0] sm:$0xff] %v1877_v8  ;;  %v1880_v40 = vmax.f32 %v1832_v51, 0.0 }
 0x19b   : > { %1926 = vst [vmem:[%s3324_s12 + $0xf8] sm:$0xff] %v1878_v53  ;;  %v1881_v3 = vmax.f32 %v1833_v36, 0.0  ;;  %v1309_v42 = vpop.f32.mrb[24].mxu0 }
 0x19c   : > { %v2431_v46 = vpop.f32.mrb[40].mxu1  ;;  %1928 = vst [vmem:[%s3324_s12 + $0x108] sm:$0xff] %v1880_v40  ;;  %v1423_v48 = vadd.f32 %v3265_v10, %v1309_v42  ;;  %v1311_v50 = vpop.f32.mrb[25].mxu0 }
 0x19d   : > { %v2432_v9 = vpop.f32.mrb[41].mxu1  ;;  %1929 = vst [vmem:[%s3324_s12 + $0x110] sm:$0xff] %v1881_v3  ;;  %v1425_v57 = vadd.f32 %v3267_v32, %v1311_v50  ;;  %v1313_v56 = vpop.f32.mrb[26].mxu0 }
 0x19e   : > { %v3348_v54 = vadd.f32 %v2432_v9, %v2431_v46  ;;  %v2434_v58 = vpop.f32.mrb[42].mxu1  ;;  %v1835_v59 = vadd.f32 %v3308_v38, %v1423_v48  ;;  %v1427_v60 = vadd.f32 %v3269_v11, %v1313_v56  ;;  %v1315_v61 = vpop.f32.mrb[27].mxu0 }
 0x19f   : > { %v2435_v62 = vpop.f32.mrb[43].mxu1  ;;  %v1836_v10 = vadd.f32 %v3313_v44, %v1425_v57  ;;  %v1429_v63 = vadd.f32 %v3271_v12, %v1315_v61 }
 0x1a0   : > { %v3354_v1 = vadd.f32 %v2435_v62, %v2434_v58  ;;  %v1883_v32 = vmax.f32 %v1835_v59, 0.0  ;;  %v1838_v2 = vadd.f32 %v3308_v38, %v1427_v60 }
 0x1a1   : > { %v1884_v17 = vmax.f32 %v1836_v10, 0.0  ;;  %v1839_v4 = vadd.f32 %v3313_v44, %v1429_v63 }
 0x1a2   : > { %1931 = vst [vmem:[%s3324_s12 + $0x120] sm:$0xff] %v1883_v32  ;;  %v1886_v5 = vmax.f32 %v1838_v2, 0.0 }
 0x1a3   : > { %1932 = vst [vmem:[%s3324_s12 + $0x128] sm:$0xff] %v1884_v17  ;;  %v1887_v11 = vmax.f32 %v1839_v4, 0.0  ;;  %v1319_v18 = vpop.f32.mrb[28].mxu0 }
 0x1a4   : > { %v2437_v20 = vpop.f32.mrb[44].mxu1  ;;  %1934 = vst [vmem:[%s3324_s12 + $0x138] sm:$0xff] %v1886_v5  ;;  %v1433_v6 = vadd.f32 %v3273_v13, %v1319_v18  ;;  %v1321_v21 = vpop.f32.mrb[29].mxu0  ;;  %v1794_v13 = vsub.s32 2, %v3294_v41 }
 0x1a5   : > { %v2438_v12 = vpop.f32.mrb[45].mxu1  ;;  %1935 = vst [vmem:[%s3324_s12 + $0x140] sm:$0xff] %v1887_v11  ;;  %v1435_v23 = vadd.f32 %v3275_v14, %v1321_v21  ;;  %v1323_v26 = vpop.f32.mrb[30].mxu0 }
 0x1a6   : > { %v3364_v24 = vadd.f32 %v2438_v12, %v2437_v20  ;;  %v2440_v29 = vpop.f32.mrb[46].mxu1  ;;  %v1841_v30 = vadd.f32 %v3308_v38, %v1433_v6  ;;  %v1437_v33 = vadd.f32 %v3277_v15, %v1323_v26  ;;  %v1325_v35 = vpop.f32.mrb[31].mxu0  ;;  %v3377_v36 = vrot.slane %v3304_v55, %v1794_v13 }
 0x1a7   : > { %v2441_v37 = vpop.f32.mrb[47].mxu1  ;;  %v1842_v43 = vadd.f32 %v3313_v44, %v1435_v23  ;;  %v1439_v7 = vadd.f32 %v3279_v16, %v1325_v35 }
 0x1a8   : > { %v3371_v14 = vadd.f32 %v2441_v37, %v2440_v29  ;;  %v1889_v45 = vmax.f32 %v1841_v30, 0.0  ;;  %v1844_v8 = vadd.f32 %v3308_v38, %v1437_v33 }
 0x1a9   : > { %v1890_v51 = vmax.f32 %v1842_v43, 0.0  ;;  %v1845_v53 = vadd.f32 %v3313_v44, %v1439_v7 }
 0x1aa   : > { %1937 = vst [vmem:[%s3324_s12 + $0x150] sm:$0xff] %v1889_v45  ;;  %v1892_v15 = vmax.f32 %v1844_v8, 0.0 }
 0x1ab   : > { %1938 = vst [vmem:[%s3324_s12 + $0x158] sm:$0xff] %v1890_v51  ;;  %v1893_v41 = vmax.f32 %v1845_v53, 0.0  ;;  %v1362_v40 = vpop.f32.mrb[0].mxu0 }
 0x1ac   : > { %v2477_v3 = vpop.f32.mrb[48].mxu1  ;;  %1940 = vst [vmem:[%s3324_s12 + $0x168] sm:$0xff] %v1892_v15  ;;  %v1799_v16 = vadd.f32 %v3308_v38, %v1362_v40  ;;  %v1364_v46 = vpop.f32.mrb[1].mxu0 }
 0x1ad   : > { %v1581_v42 = vadd.f32 %v2477_v3, %v3285_v25  ;;  %v1572_v48 = vpop.f32.mrb[49].mxu1  ;;  %1941 = vst [vmem:[%s3324_s12 + $0x170] sm:$0xff] %v1893_v41  ;;  %v1800_v50 = vadd.f32 %v3313_v44, %v1364_v46  ;;  %v1366_v57 = vpop.f32.mrb[2].mxu0 }
 0x1ae   : > { %v1573_v9 = vadd.f32 %v3281_v19, %v1572_v48  ;;  %v2478_v55 = vpop.f32.mrb[50].mxu1  ;;  %v1847_v56 = vmax.f32 %v1799_v16, 0.0  ;;  %v1802_v59 = vadd.f32 %v3308_v38, %v1366_v57  ;;  %v1368_v25 = vpop.f32.mrb[3].mxu0 }
 0x1af   : > { %v1807_v58 = vadd.f32 %v3377_v36, %v1581_v42  ;;  %v1584_v60 = vadd.f32 %v2478_v55, %v3287_v28  ;;  %v1575_v61 = vpop.f32.mrb[51].mxu1  ;;  %v1848_v62 = vmax.f32 %v1800_v50, 0.0  ;;  %v1803_v19 = vadd.f32 %v3313_v44, %v1368_v25 }
 0x1b0   : > { %v1801_v10 = vadd.f32 %v3377_v36, %v1573_v9  ;;  %v1576_v63 = vadd.f32 %v3283_v22, %v1575_v61  ;;  %1895 = vst [vmem:[%s3324_s12] sm:$0xff] %v1847_v56  ;;  %v1850_v2 = vmax.f32 %v1802_v59, 0.0 }
 0x1b1   : > { %v1855_v32 = vmax.f32 %v1807_v58, 0.0  ;;  %v1810_v17 = vadd.f32 %v3377_v36, %v1584_v60  ;;  %1896 = vst [vmem:[%s3324_s12 + $0x8] sm:$0xff] %v1848_v62  ;;  %v1851_v4 = vmax.f32 %v1803_v19, 0.0 }
 0x1b2   : > { %v1849_v28 = vmax.f32 %v1801_v10, 0.0  ;;  %v1804_v5 = vadd.f32 %v3377_v36, %v1576_v63  ;;  %1898 = vst [vmem:[%s3324_s12 + $0x18] sm:$0xff] %v1850_v2 }
 0x1b3   : > { %1903 = vst [vmem:[%s3324_s12 + $0x40] sm:$0xff] %v1855_v32  ;;  %v1858_v11 = vmax.f32 %v1810_v17, 0.0  ;;  %1899 = vst [vmem:[%s3324_s12 + $0x20] sm:$0xff] %v1851_v4  ;;  %v1372_v20 = vpop.f32.mrb[4].mxu0 }
 0x1b4   : > { %1897 = vst [vmem:[%s3324_s12 + $0x10] sm:$0xff] %v1849_v28  ;;  %v1852_v18 = vmax.f32 %v1804_v5, 0.0  ;;  %v2481_v22 = vpop.f32.mrb[52].mxu1  ;;  %v1805_v6 = vadd.f32 %v3308_v38, %v1372_v20  ;;  %v1374_v12 = vpop.f32.mrb[5].mxu0 }
 0x1b5   : > { %1906 = vst [vmem:[%s3324_s12 + $0x58] sm:$0xff] %v1858_v11  ;;  %v1597_v21 = vadd.f32 %v2481_v22, %v3299_v47  ;;  %v1588_v23 = vpop.f32.mrb[53].mxu1  ;;  %v1806_v26 = vadd.f32 %v3313_v44, %v1374_v12  ;;  %v1376_v30 = vpop.f32.mrb[6].mxu0 }
 0x1b6   : > { %1900 = vst [vmem:[%s3324_s12 + $0x28] sm:$0xff] %v1852_v18  ;;  %v1589_v29 = vadd.f32 %v3290_v31, %v1588_v23  ;;  %v2482_v33 = vpop.f32.mrb[54].mxu1  ;;  %v1853_v35 = vmax.f32 %v1805_v6, 0.0  ;;  %v1808_v13 = vadd.f32 %v3308_v38, %v1376_v30  ;;  %v1378_v47 = vpop.f32.mrb[7].mxu0 }
 0x1b7   : > { %v1819_v37 = vadd.f32 %v3377_v36, %v1597_v21  ;;  %v1600_v43 = vadd.f32 %v2482_v33, %v3302_v34  ;;  %v1591_v7 = vpop.f32.mrb[55].mxu1  ;;  %v1854_v45 = vmax.f32 %v1806_v26, 0.0  ;;  %v1809_v31 = vadd.f32 %v3313_v44, %v1378_v47 }
 0x1b8   : > { %v1813_v8 = vadd.f32 %v3377_v36, %v1589_v29  ;;  %v1592_v51 = vadd.f32 %v3292_v39, %v1591_v7  ;;  %1901 = vst [vmem:[%s3324_s12 + $0x30] sm:$0xff] %v1853_v35  ;;  %v1856_v15 = vmax.f32 %v1808_v13, 0.0 }
 0x1b9   : > { %v1867_v53 = vmax.f32 %v1819_v37, 0.0  ;;  %v1822_v41 = vadd.f32 %v3377_v36, %v1600_v43  ;;  %1902 = vst [vmem:[%s3324_s12 + $0x38] sm:$0xff] %v1854_v45  ;;  %v1857_v40 = vmax.f32 %v1809_v31, 0.0 }
 0x1ba   : > { %v1861_v34 = vmax.f32 %v1813_v8, 0.0  ;;  %v1816_v3 = vadd.f32 %v3377_v36, %v1592_v51  ;;  %1904 = vst [vmem:[%s3324_s12 + $0x48] sm:$0xff] %v1856_v15 }
 0x1bb   : > { %1915 = vst [vmem:[%s3324_s12 + $0xa0] sm:$0xff] %v1867_v53  ;;  %v1870_v16 = vmax.f32 %v1822_v41, 0.0  ;;  %1905 = vst [vmem:[%s3324_s12 + $0x50] sm:$0xff] %v1857_v40  ;;  %v1382_v46 = vpop.f32.mrb[8].mxu0  ;;  %v1972_v41 = vld [vmem:[%s3324_s12 + $0x10] sm:$0xff] (%p2807_p6)  ;;  %v1976_v40 = vld [vmem:[%s3324_s12 + $0x20] sm:$0xff] (%p2807_p6) }
 0x1bc   : > { %1909 = vst [vmem:[%s3324_s12 + $0x70] sm:$0xff] %v1861_v34  ;;  %v1864_v42 = vmax.f32 %v1816_v3, 0.0  ;;  %v2485_v39 = vpop.f32.mrb[56].mxu1  ;;  %v1811_v48 = vadd.f32 %v3308_v38, %v1382_v46  ;;  %v1384_v9 = vpop.f32.mrb[9].mxu0  ;;  %v1974_v34 = vld [vmem:[%s3324_s12 + $0x18] sm:$0xff] (%p2807_p6)  ;;  %v1984_v46 = vld [vmem:[%s3324_s12 + $0x40] sm:$0xff] (%p2807_p6) }
 0x1bd   : > { %1918 = vst [vmem:[%s3324_s12 + $0xb8] sm:$0xff] %v1870_v16  ;;  %v1613_v50 = vadd.f32 %v2485_v39, %v3332_v27  ;;  %v1604_v57 = vpop.f32.mrb[57].mxu1  ;;  %v1812_v55 = vadd.f32 %v3313_v44, %v1384_v9  ;;  %v1386_v58 = vpop.f32.mrb[10].mxu0  ;;  %v1978_v3 = vld [vmem:[%s3324_s12 + $0x28] sm:$0xff] (%p2807_p6)  ;;  %1973 = vst [vmem:[%s3474_s7 + $0x10] sm:$0xff] (%p2807_p6), %v1972_v41 }
 0x1be   : > { %1912 = vst [vmem:[%s3324_s12 + $0x88] sm:$0xff] %v1864_v42  ;;  %v1605_v56 = vadd.f32 %v3315_v52, %v1604_v57  ;;  %v2486_v59 = vpop.f32.mrb[58].mxu1  ;;  %v1859_v60 = vmax.f32 %v1811_v48, 0.0  ;;  %v1814_v61 = vadd.f32 %v3308_v38, %v1386_v58  ;;  %v1388_v27 = vpop.f32.mrb[11].mxu0  ;;  %1975 = vst [vmem:[%s3474_s7 + $0x60] sm:$0xff] (%p2807_p6), %v1974_v34 }
 0x1bf   : > { %v1831_v25 = vadd.f32 %v3377_v36, %v1613_v50  ;;  %v1616_v62 = vadd.f32 %v2486_v59, %v3338_v49  ;;  %v1607_v10 = vpop.f32.mrb[59].mxu1  ;;  %v1860_v19 = vmax.f32 %v1812_v55, 0.0  ;;  %v1815_v52 = vadd.f32 %v3313_v44, %v1388_v27  ;;  %v1980_v16 = vld [vmem:[%s3324_s12 + $0x30] sm:$0xff] (%p2807_p6)  ;;  %1977 = vst [vmem:[%s3474_s7 + $0x68] sm:$0xff] (%p2807_p6), %v1976_v40  ;;  %1979 = vst [vmem:[%s3474_s7 + $0x70] sm:$0xff] (%p2807_p6), %v1978_v3  ;;  %v1990_v50 = vld [vmem:[%s3324_s12 + $0x58] sm:$0xff] (%p2807_p6) }
 0x1c0   : > { %v1825_v63 = vadd.f32 %v3377_v36, %v1605_v56  ;;  %v1608_v32 = vadd.f32 %v3320_v0, %v1607_v10  ;;  %1907 = vst [vmem:[%s3324_s12 + $0x60] sm:$0xff] %v1859_v60  ;;  %v1862_v17 = vmax.f32 %v1814_v61, 0.0  ;;  %v1982_v42 = vld [vmem:[%s3324_s12 + $0x38] sm:$0xff] (%p2807_p6)  ;;  %1981 = vst [vmem:[%s3474_s7 + $0xc0] sm:$0xff] (%p2807_p6), %v1980_v16 }
 0x1c1   : > { %v1879_v2 = vmax.f32 %v1831_v25, 0.0  ;;  %v1834_v28 = vadd.f32 %v3377_v36, %v1616_v62  ;;  %1908 = vst [vmem:[%s3324_s12 + $0x68] sm:$0xff] %v1860_v19  ;;  %v1863_v4 = vmax.f32 %v1815_v52, 0.0  ;;  %1983 = vst [vmem:[%s3474_s7 + $0xc8] sm:$0xff] (%p2807_p6), %v1982_v42  ;;  %v1986_v39 = vld [vmem:[%s3324_s12 + $0x48] sm:$0xff] (%p2807_p6)  ;;  %v2016_v19 = vld [vmem:[%s3324_s12 + $0xc0] sm:$0xff] (%p2807_p6) }
 0x1c2   : > { %v1873_v49 = vmax.f32 %v1825_v63, 0.0  ;;  %v1828_v5 = vadd.f32 %v3377_v36, %v1608_v32  ;;  %1910 = vst [vmem:[%s3324_s12 + $0x78] sm:$0xff] %v1862_v17  ;;  %1985 = vst [vmem:[%s3474_s7 + $0xd0] sm:$0xff] (%p2807_p6), %v1984_v46  ;;  %v1988_v48 = vld [vmem:[%s3324_s12 + $0x50] sm:$0xff] (%p2807_p6)  ;;  %v2008_v61 = vld [vmem:[%s3324_s12 + $0xa0] sm:$0xff] (%p2807_p6) }
 0x1c3   : > { %1927 = vst [vmem:[%s3324_s12 + $0x100] sm:$0xff] %v1879_v2  ;;  %v1882_v11 = vmax.f32 %v1834_v28, 0.0  ;;  %1911 = vst [vmem:[%s3324_s12 + $0x80] sm:$0xff] %v1863_v4  ;;  %v1392_v20 = vpop.f32.mrb[12].mxu0  ;;  %v1996_v55 = vld [vmem:[%s3324_s12 + $0x70] sm:$0xff] (%p2807_p6)  ;;  %v2018_v63 = vld [vmem:[%s3324_s12 + $0xc8] sm:$0xff] (%p2807_p6) }
 0x1c4   : > { %1921 = vst [vmem:[%s3324_s12 + $0xd0] sm:$0xff] %v1873_v49  ;;  %v1876_v18 = vmax.f32 %v1828_v5, 0.0  ;;  %v2489_v0 = vpop.f32.mrb[60].mxu1  ;;  %v1817_v22 = vadd.f32 %v3308_v38, %v1392_v20  ;;  %v1394_v21 = vpop.f32.mrb[13].mxu0  ;;  %1987 = vst [vmem:[%s3474_s7 + $0x120] sm:$0xff] (%p2807_p6), %v1986_v39  ;;  %v2014_v10 = vld [vmem:[%s3324_s12 + $0xb8] sm:$0xff] (%p2807_p6) }
 0x1c5   : > { %1930 = vst [vmem:[%s3324_s12 + $0x118] sm:$0xff] %v1882_v11  ;;  %v1629_v6 = vadd.f32 %v2489_v0, %v3364_v24  ;;  %v1620_v12 = vpop.f32.mrb[61].mxu1  ;;  %v1818_v23 = vadd.f32 %v3313_v44, %v1394_v21  ;;  %v1396_v29 = vpop.f32.mrb[14].mxu0  ;;  %1989 = vst [vmem:[%s3474_s7 + $0x128] sm:$0xff] (%p2807_p6), %v1988_v48  ;;  %v2002_v59 = vld [vmem:[%s3324_s12 + $0x88] sm:$0xff] (%p2807_p6)  ;;  %v2022_v32 = vld [vmem:[%s3324_s12 + $0xd8] sm:$0xff] (%p2807_p6) }
 0x1c6   : > { %1924 = vst [vmem:[%s3324_s12 + $0xe8] sm:$0xff] %v1876_v18  ;;  %v1621_v26 = vadd.f32 %v3348_v54, %v1620_v12  ;;  %v2490_v30 = vpop.f32.mrb[62].mxu1  ;;  %v1865_v33 = vmax.f32 %v1817_v22, 0.0  ;;  %v1820_v37 = vadd.f32 %v3308_v38, %v1396_v29  ;;  %v1398_v24 = vpop.f32.mrb[15].mxu0  ;;  %1991 = vst [vmem:[%s3474_s7 + $0x130] sm:$0xff] (%p2807_p6), %v1990_v50  ;;  %v2024_v2 = vld [vmem:[%s3324_s12 + $0xe0] sm:$0xff] (%p2807_p6) }
 0x1c7   : > { %v1843_v35 = vadd.f32 %v3377_v36, %v1629_v6  ;;  %v1632_v13 = vadd.f32 %v2490_v30, %v3371_v14  ;;  %v1623_v43 = vpop.f32.mrb[63].mxu1  ;;  %v1866_v47 = vmax.f32 %v1818_v23, 0.0  ;;  %v1821_v54 = vadd.f32 %v3313_v44, %v1398_v24  ;;  %v1992_v9 = vld [vmem:[%s3324_s12 + $0x60] sm:$0xff] (%p2807_p6)  ;;  %1997 = vst [vmem:[%s3474_s7 + $0x190] sm:$0xff] (%p2807_p6), %v1996_v55  ;;  %2003 = vst [vmem:[%s3474_s7 + $0x1f0] sm:$0xff] (%p2807_p6), %v2002_v59  ;;  %v2028_v28 = vld [vmem:[%s3324_s12 + $0xf0] sm:$0xff] (%p2807_p6) }
 0x1c8   : > { %v1837_v7 = vadd.f32 %v3377_v36, %v1621_v26  ;;  %v1624_v45 = vadd.f32 %v3354_v1, %v1623_v43  ;;  %1913 = vst [vmem:[%s3324_s12 + $0x90] sm:$0xff] %v1865_v33  ;;  %v1868_v38 = vmax.f32 %v1820_v37, 0.0  ;;  %1949 = sbr.rel (!%p2807_p6) target bundleno = 478 (0x1de), region = 70  ;;  %v1968_v1 = vld [vmem:[%s3324_s12] sm:$0xff] (%p2807_p6)  ;;  %v1994_v57 = vld [vmem:[%s3324_s12 + $0x68] sm:$0xff] (%p2807_p6)  ;;  %1993 = vst [vmem:[%s3474_s7 + $0x180] sm:$0xff] (%p2807_p6), %v1992_v9 }
 0x1c9   : > { %v1891_v8 = vmax.f32 %v1843_v35, 0.0  ;;  %v1846_v31 = vadd.f32 %v3377_v36, %v1632_v13  ;;  %1914 = vst [vmem:[%s3324_s12 + $0x98] sm:$0xff] %v1866_v47  ;;  %v1869_v51 = vmax.f32 %v1821_v54, 0.0  ;;  %1969 = vst [vmem:[%s3474_s7] sm:$0xff] (%p2807_p6), %v1968_v1  ;;  %v1998_v56 = vld [vmem:[%s3324_s12 + $0x78] sm:$0xff] (%p2807_p6)  ;;  %v2034_v5 = vld [vmem:[%s3324_s12 + $0x108] sm:$0xff] (%p2807_p6) }
 0x1ca   : > { %v1885_v14 = vmax.f32 %v1837_v7, 0.0  ;;  %v1840_v53 = vadd.f32 %v3377_v36, %v1624_v45  ;;  %1916 = vst [vmem:[%s3324_s12 + $0xa8] sm:$0xff] %v1868_v38  ;;  %v1970_v36 = vld [vmem:[%s3324_s12 + $0x8] sm:$0xff] (%p2807_p6)  ;;  %1995 = vst [vmem:[%s3474_s7 + $0x188] sm:$0xff] (%p2807_p6), %v1994_v57  ;;  %v2000_v58 = vld [vmem:[%s3324_s12 + $0x80] sm:$0xff] (%p2807_p6) }
 0x1cb   : > { %1939 = vst [vmem:[%s3324_s12 + $0x160] sm:$0xff] %v1891_v8  ;;  %v1894_v15 = vmax.f32 %v1846_v31, 0.0  ;;  %1917 = vst [vmem:[%s3324_s12 + $0xb0] sm:$0xff] %v1869_v51  ;;  %v2020_v52 = vld [vmem:[%s3324_s12 + $0xd0] sm:$0xff] (%p2807_p6)  ;;  %v2030_v49 = vld [vmem:[%s3324_s12 + $0xf8] sm:$0xff] (%p2807_p6) }
 0x1cc   : > { %1933 = vst [vmem:[%s3324_s12 + $0x130] sm:$0xff] %v1885_v14  ;;  %v1888_v44 = vmax.f32 %v1840_v53, 0.0  ;;  %1971 = vst [vmem:[%s3474_s7 + $0x8] sm:$0xff] (%p2807_p6), %v1970_v36  ;;  %v2032_v4 = vld [vmem:[%s3324_s12 + $0x100] sm:$0xff] (%p2807_p6)  ;;  %v2036_v11 = vld [vmem:[%s3324_s12 + $0x110] sm:$0xff] (%p2807_p6) }
 0x1cd   : > { %1942 = vst [vmem:[%s3324_s12 + $0x178] sm:$0xff] %v1894_v15  ;;  %1999 = vst [vmem:[%s3474_s7 + $0x1e0] sm:$0xff] (%p2807_p6), %v1998_v56  ;;  %v2026_v17 = vld [vmem:[%s3324_s12 + $0xe8] sm:$0xff] (%p2807_p6)  ;;  %v2038_v18 = vld [vmem:[%s3324_s12 + $0x118] sm:$0xff] (%p2807_p6) }
 0x1ce   : > { %1936 = vst [vmem:[%s3324_s12 + $0x148] sm:$0xff] %v1888_v44  ;;  %2001 = vst [vmem:[%s3474_s7 + $0x1e8] sm:$0xff] (%p2807_p6), %v2000_v58  ;;  %v2040_v20 = vld [vmem:[%s3324_s12 + $0x120] sm:$0xff] (%p2807_p6)  ;;  %v2042_v0 = vld [vmem:[%s3324_s12 + $0x128] sm:$0xff] (%p2807_p6) }
 0x1cf   : > { %v2004_v60 = vld [vmem:[%s3324_s12 + $0x90] sm:$0xff]  ;;  %2009 = vst [vmem:[%s3474_s7 + $0x250] sm:$0xff] %v2008_v61  ;;  %2015 = vst [vmem:[%s3474_s7 + $0x2b0] sm:$0xff] %v2014_v10  ;;  %v2046_v6 = vld [vmem:[%s3324_s12 + $0x138] sm:$0xff] }
 0x1d0   : > { %v2006_v25 = vld [vmem:[%s3324_s12 + $0x98] sm:$0xff]  ;;  %2005 = vst [vmem:[%s3474_s7 + $0x240] sm:$0xff] %v2004_v60  ;;  %2017 = vst [vmem:[%s3474_s7 + $0x300] sm:$0xff] %v2016_v19  ;;  %v2048_v21 = vld [vmem:[%s3324_s12 + $0x140] sm:$0xff] }
 0x1d1   : > { %2007 = vst [vmem:[%s3474_s7 + $0x248] sm:$0xff] %v2006_v25  ;;  %v2010_v62 = vld [vmem:[%s3324_s12 + $0xa8] sm:$0xff]  ;;  %2019 = vst [vmem:[%s3474_s7 + $0x308] sm:$0xff] %v2018_v63  ;;  %v2052_v23 = vld [vmem:[%s3324_s12 + $0x150] sm:$0xff] }
 0x1d2   : > { %v2012_v27 = vld [vmem:[%s3324_s12 + $0xb0] sm:$0xff]  ;;  %2011 = vst [vmem:[%s3474_s7 + $0x2a0] sm:$0xff] %v2010_v62  ;;  %2021 = vst [vmem:[%s3474_s7 + $0x310] sm:$0xff] %v2020_v52  ;;  %v2054_v26 = vld [vmem:[%s3324_s12 + $0x158] sm:$0xff] }
 0x1d3   : > { %2013 = vst [vmem:[%s3474_s7 + $0x2a8] sm:$0xff] %v2012_v27  ;;  %2023 = vst [vmem:[%s3474_s7 + $0x360] sm:$0xff] %v2022_v32  ;;  %v2044_v22 = vld [vmem:[%s3324_s12 + $0x130] sm:$0xff]  ;;  %v2056_v29 = vld [vmem:[%s3324_s12 + $0x160] sm:$0xff] }
 0x1d4   : > { %2025 = vst [vmem:[%s3474_s7 + $0x368] sm:$0xff] %v2024_v2  ;;  %2027 = vst [vmem:[%s3474_s7 + $0x370] sm:$0xff] %v2026_v17  ;;  %v2058_v30 = vld [vmem:[%s3324_s12 + $0x168] sm:$0xff]  ;;  %v2060_v33 = vld [vmem:[%s3324_s12 + $0x170] sm:$0xff] }
 0x1d5   : > { %2029 = vst [vmem:[%s3474_s7 + $0x3c0] sm:$0xff] %v2028_v28  ;;  %2031 = vst [vmem:[%s3474_s7 + $0x3c8] sm:$0xff] %v2030_v49  ;;  %v2050_v12 = vld [vmem:[%s3324_s12 + $0x148] sm:$0xff]  ;;  %v2062_v35 = vld [vmem:[%s3324_s12 + $0x178] sm:$0xff] }
 0x1d6   : > { %2033 = vst [vmem:[%s3474_s7 + $0x3d0] sm:$0xff] %v2032_v4  ;;  %2035 = vst [vmem:[%s3474_s7 + $0x420] sm:$0xff] %v2034_v5 }
 0x1d7   : > { %2037 = vst [vmem:[%s3474_s7 + $0x428] sm:$0xff] %v2036_v11  ;;  %2039 = vst [vmem:[%s3474_s7 + $0x430] sm:$0xff] %v2038_v18 }
 0x1d8   : > { %2041 = vst [vmem:[%s3474_s7 + $0x480] sm:$0xff] %v2040_v20  ;;  %2043 = vst [vmem:[%s3474_s7 + $0x488] sm:$0xff] %v2042_v0 }
 0x1d9   : > { %2045 = vst [vmem:[%s3474_s7 + $0x490] sm:$0xff] %v2044_v22  ;;  %2047 = vst [vmem:[%s3474_s7 + $0x4e0] sm:$0xff] %v2046_v6 }
 0x1da   : > { %2049 = vst [vmem:[%s3474_s7 + $0x4e8] sm:$0xff] %v2048_v21  ;;  %2051 = vst [vmem:[%s3474_s7 + $0x4f0] sm:$0xff] %v2050_v12 }
 0x1db   : > { %2053 = vst [vmem:[%s3474_s7 + $0x540] sm:$0xff] %v2052_v23  ;;  %2055 = vst [vmem:[%s3474_s7 + $0x548] sm:$0xff] %v2054_v26 }
 0x1dc   : > { %2057 = vst [vmem:[%s3474_s7 + $0x550] sm:$0xff] %v2056_v29  ;;  %2059 = vst [vmem:[%s3474_s7 + $0x5a0] sm:$0xff] %v2058_v30 }
 0x1dd   : > { %2061 = vst [vmem:[%s3474_s7 + $0x5a8] sm:$0xff] %v2060_v33  ;;  %2063 = vst [vmem:[%s3474_s7 + $0x5b0] sm:$0xff] %v2062_v35 }
 0x1de PF: > { %s13_s16 = sadd.s32 1, %s2749_s16   ;;  %s3586_s12 = smov %s2737_s13 }
 0x1df   : > { %p10_p12 = scmp.ge.s32.totalorder %s13_s16, 6   ;;  %s3587_s13 = smov %s2812_s22 }
 0x1e0   : > { %s3588_s14 = smov %s2745_s15  ;;  %s3589_s15 = smov %s3591_s17 }
 0x1e1   :  { %12 = sbr.rel (!%p10_p12) target bundleno = 3 (0x3), region = 136 }

// kernel: net_backpropagation_depth_forward.7
= control target key start
LH: loop header
LB: loop body
LE: loop exit
PB: predicated region body
PF: predicated region fallthrough
CT: control target
= control target key end

     0   :  { %8 = vsyncpa [#allocation4], 0  ;;  %s8071_s12 = smov 0   ;;  %s8073_s13 = smov 0   ;;  %s8780_s0 = inlined_call_operand.vmem [shape: bf16[2,24576], index: 0, kind: input, shape index: {}]   ;;  %s8781_s1 = inlined_call_operand.vmem [shape: bf16[24576,10], index: 1, kind: input, shape index: {}]   ;;  %s8782_s2 = inlined_call_operand.vmem [shape: f32[1,10], index: 2, kind: input, shape index: {}]   ;;  %s8783_s3 = inlined_call_operand.hbm [shape: f32[2,10], index: 3, kind: output, shape index: {}]  }
   0x1   :  { %s8075_s14 = smov 0  }
   0x2 LB: > { %s6210_s15 = sadd.s32 4294967295, %s8046_s14   ;;  %s26_s16 = sadd.s32 1, %s8042_s13  ;;  %s8046_s14 = sphi %s8075_s14, %s14_s14   ;;  %s8042_s13 = sphi %s8073_s13, %s8786_s13   ;;  %s8038_s12 = sphi %s8071_s12, %s8785_s12  }
   0x3   : > { %p27_p0 = scmp.ge.s32.totalorder %s26_s16, 3  ;;  %p6214_p1 = scmp.ge.s32.totalorder %s8046_s14, 1 }
   0x4   : > { %p189_p2 = scmp.lt.s32.totalorder %s8046_s14, 4 }
   0x5   : > { %s8788_s16 = smov (%p27_p0, %s26_s16), 0 }
   0x6   : > { %p190_p3 = pnand %p6214_p1, %p189_p2 }
   0x7   : > { %s6215_s17 = sshll.u32 (!%p190_p3), %s8038_s12, 6  ;;  %s6216_s18 = sshll.u32 (!%p190_p3), %s8038_s12, 10 }
   0x8   : > { %193 = sbr.rel (%p190_p3) target bundleno = 795 (0x31b), region = 32  ;;  %p225_p4 = scmp.lt.s32.totalorder (!%p190_p3), %s6215_s17, 191 }
   0x9   : > { %p232_p5 = scmp.lt.s32.totalorder (!%p190_p3), %s6216_s18, 3071  ;;  %p6218_p6 = scmp.ne.s32.totalorder (!%p190_p3), %s8038_s12, 0 }
   0xf   : > { %s8790_s17 = smov (!%p225_p4, %s6215_s17), 191  ;;  %s8792_s18 = smov (!%p232_p5, %s6216_s18), 3071 }
  0x10   : > { %s8097_s21 = scalar_lea.vmem %s8780_s0, %s8790_s17  ;;  %s6217_s22 = sshll.u32 %s8792_s18, 2  ;;  %vm248_vm0 = vcmask (!%p6218_p6), 74752   ;;  %v8048_v0 = vmov (!%p6218_p6), 0.0  }
  0x11   : > { %s8102_s25 = scalar_lea.vmem %s8781_s1, %s6217_s22  ;;  %247 = sbr.rel (%p6218_p6) target bundleno = 24 (0x18), region = 36  ;;  %249 = vst.msk [vmem:[#allocation2] sm:$0x3] (!%p6218_p6), %vm248_vm0, %v8048_v0 }
  0x18 PF: > { %v7474_v1 = vld [vmem:[%s8102_s25 + $0x40] sm:$0xff]   ;;  %v7478_v5 = vld [vmem:[%s8102_s25 + $0x48] sm:$0xff]   ;;  %v7482_v9 = vld [vmem:[%s8102_s25 + $0x50] sm:$0xff]   ;;  %v1295_v29 = vlaneseq  ;;  %v8049_v37 = vmov 1966171168   ;;  %vm6100_vm1 = vcmask 74752  }
  0x19   : > { %v7475_v2 = vld [vmem:[%s8102_s25 + $0xc0] sm:$0xff]   ;;  %6737 = vmatprep.subr.bf16.mxu0 %v7474_v1  ;;  %v7479_v6 = vld [vmem:[%s8102_s25 + $0xc8] sm:$0xff]   ;;  %v7483_v10 = vld [vmem:[%s8102_s25 + $0xd0] sm:$0xff]   ;;  %v1293_v38 = vunpack.c.l.s4 %v8049_v37  ;;  %p6731_p7 = scmp.ne.s32.totalorder %s8038_s12, 2 }
  0x1a   : > { %v7476_v3 = vld [vmem:[%s8102_s25] sm:$0xff]   ;;  %6759 = vmatprep.subr.bf16.mxu1 %v7475_v2  ;;  %v7480_v7 = vld [vmem:[%s8102_s25 + $0x8] sm:$0xff]   ;;  %v7484_v11 = vld [vmem:[%s8102_s25 + $0x10] sm:$0xff]   ;;  %v1296_v34 = vshrl.u32 %v1295_v29, 7 }
  0x1b   : > { %v7477_v4 = vld [vmem:[%s8102_s25 + $0x80] sm:$0xff]   ;;  %6738 = vmatpush3.bf16.msra.mxu0 %v7476_v3  ;;  %v7481_v8 = vld [vmem:[%s8102_s25 + $0x88] sm:$0xff]   ;;  %v7485_v12 = vld [vmem:[%s8102_s25 + $0x90] sm:$0xff]   ;;  %v1294_v41 = vunpack.c.0.s8 %v1293_v38 }
  0x1c   : > { %6760 = vmatpush3.bf16.msra.mxu1 %v7477_v4  ;;  %6739 = vmatprep.subr.bf16.mxu0 %v7478_v5  ;;  %v7486_v13 = vld [vmem:[%s8102_s25 + $0x58] sm:$0xff]   ;;  %v7490_v17 = vld [vmem:[%s8102_s25 + $0x60] sm:$0xff]   ;;  %v7494_v21 = vld [vmem:[%s8102_s25 + $0x68] sm:$0xff]  }
  0x1d   : > { %6761 = vmatprep.subr.bf16.mxu1 %v7479_v6  ;;  %v7487_v14 = vld [vmem:[%s8102_s25 + $0xd8] sm:$0xff]   ;;  %v7491_v18 = vld [vmem:[%s8102_s25 + $0xe0] sm:$0xff]   ;;  %v7495_v22 = vld [vmem:[%s8102_s25 + $0xe8] sm:$0xff]   ;;  %v8140_v42 = vsub.s32 %v1294_v41, %v1296_v34 }
  0x1e   : > { %v7488_v15 = vld [vmem:[%s8102_s25 + $0x18] sm:$0xff]   ;;  %v7492_v19 = vld [vmem:[%s8102_s25 + $0x20] sm:$0xff]   ;;  %v7496_v23 = vld [vmem:[%s8102_s25 + $0x28] sm:$0xff]  }
  0x1f   : > { %6740 = vmatpush3.bf16.msra.mxu0 %v7480_v7  ;;  %v7489_v16 = vld [vmem:[%s8102_s25 + $0x98] sm:$0xff]   ;;  %v7493_v20 = vld [vmem:[%s8102_s25 + $0xa0] sm:$0xff]   ;;  %v7497_v24 = vld [vmem:[%s8102_s25 + $0xa8] sm:$0xff]  }
  0x20   : > { %6762 = vmatpush3.bf16.msra.mxu1 %v7481_v8  ;;  %6741 = vmatprep.subr.bf16.mxu0 %v7482_v9  ;;  %v7498_v25 = vld [vmem:[%s8102_s25 + $0x70] sm:$0xff]   ;;  %v7502_v30 = vld [vmem:[%s8102_s25 + $0x78] sm:$0xff]   ;;  %v251_v35 = vld [vmem:[%s8097_s21] sm:$0xff] }
  0x21   : > { %6763 = vmatprep.subr.bf16.mxu1 %v7483_v10  ;;  %v7499_v26 = vld [vmem:[%s8102_s25 + $0xf0] sm:$0xff]   ;;  %v7503_v31 = vld [vmem:[%s8102_s25 + $0xf8] sm:$0xff]   ;;  %v7507_v36 = vld [vmem:[%s8102_s25 + $0x140] sm:$0xff]   ;;  %v1291_v40 = vcombine.high %v251_v35, %v251_v35  ;;  %v1298_v43 = vrot.slane %v251_v35, %v8140_v42 }
  0x22   : > { %v7500_v27 = vld [vmem:[%s8102_s25 + $0x30] sm:$0xff]   ;;  %v7504_v32 = vld [vmem:[%s8102_s25 + $0x38] sm:$0xff]   ;;  %v7508_v39 = vld [vmem:[%s8102_s25 + $0x1c0] sm:$0xff]  }
  0x23   : > { %6742 = vmatpush3.bf16.msra.mxu0 %v7484_v11  ;;  %v7501_v28 = vld [vmem:[%s8102_s25 + $0xb0] sm:$0xff]   ;;  %v7505_v33 = vld [vmem:[%s8102_s25 + $0xb8] sm:$0xff]   ;;  %v8144_v44 = vrot.slane %v1291_v40, %v8140_v42  ;;  %v1306_v45 = vcombine.high %v1298_v43, %v1298_v43  ;;  %v1314_v46 = vrot.slane %v1298_v43, %v8140_v42  ;;  %v7509_v48 = vld [vmem:[%s8102_s25 + $0x100] sm:$0xff]  }
  0x24   : > { %6764 = vmatpush3.bf16.msra.mxu1 %v7485_v12  ;;  %6743 = vmatprep.subr.bf16.mxu0 %v7486_v13  ;;  %v7510_v50 = vld [vmem:[%s8102_s25 + $0x180] sm:$0xff]   ;;  %v7511_v53 = vld [vmem:[%s8102_s25 + $0x148] sm:$0xff]   ;;  %v7515_v59 = vld [vmem:[%s8102_s25 + $0x150] sm:$0xff]  }
  0x25   : > { %6765 = vmatprep.subr.bf16.mxu1 %v7487_v14  ;;  %v1307_v47 = vcombine.high %v8144_v44, %v8144_v44  ;;  %v1328_v49 = vrot.slane %v1306_v45, %v8140_v42  ;;  %v1336_v52 = vcombine.high %v1314_v46, %v1314_v46  ;;  %v7512_v55 = vld [vmem:[%s8102_s25 + $0x1c8] sm:$0xff]   ;;  %v7516_v60 = vld [vmem:[%s8102_s25 + $0x1d0] sm:$0xff]   ;;  %v7519_v63 = vld [vmem:[%s8102_s25 + $0x158] sm:$0xff]  }
  0x26   : > { %v7513_v56 = vld [vmem:[%s8102_s25 + $0x108] sm:$0xff]   ;;  %v7517_v61 = vld [vmem:[%s8102_s25 + $0x110] sm:$0xff]   ;;  %v7520_v0 = vld [vmem:[%s8102_s25 + $0x1d8] sm:$0xff]  }
  0x27   : > { %6744 = vmatpush3.bf16.msra.mxu0 %v7488_v15  ;;  %v1335_v51 = vrot.slane %v1307_v47, %v8140_v42  ;;  %4851 = vmatprep.mubr.bf16.mxu0 %v1328_v49  ;;  %v1338_v54 = vcombine.high %v1328_v49, %v1328_v49  ;;  %v7514_v58 = vld [vmem:[%s8102_s25 + $0x188] sm:$0xff]   ;;  %v7518_v62 = vld [vmem:[%s8102_s25 + $0x190] sm:$0xff]   ;;  %v7521_v1 = vld [vmem:[%s8102_s25 + $0x118] sm:$0xff]  }
  0x28   : > { %6766 = vmatpush3.bf16.msra.mxu1 %v7489_v16  ;;  %6745 = vmatprep.subr.bf16.mxu0 %v7490_v17  ;;  %v7522_v2 = vld [vmem:[%s8102_s25 + $0x198] sm:$0xff]   ;;  %v7523_v3 = vld [vmem:[%s8102_s25 + $0x160] sm:$0xff]   ;;  %v7527_v7 = vld [vmem:[%s8102_s25 + $0x168] sm:$0xff]  }
  0x29   : > { %6767 = vmatprep.subr.bf16.mxu1 %v7491_v18  ;;  %v1339_v57 = vcombine.high %v1335_v51, %v1335_v51  ;;  %4891 = vmatprep.mubr.bf16.mxu1 %v1338_v54  ;;  %v7524_v4 = vld [vmem:[%s8102_s25 + $0x1e0] sm:$0xff]   ;;  %v7528_v8 = vld [vmem:[%s8102_s25 + $0x1e8] sm:$0xff]   ;;  %v7531_v11 = vld [vmem:[%s8102_s25 + $0x170] sm:$0xff]  }
  0x2a   : > { %v7525_v5 = vld [vmem:[%s8102_s25 + $0x120] sm:$0xff]   ;;  %v7529_v9 = vld [vmem:[%s8102_s25 + $0x128] sm:$0xff]   ;;  %v7532_v12 = vld [vmem:[%s8102_s25 + $0x1f0] sm:$0xff]  }
  0x2b   : > { %6746 = vmatpush3.bf16.msra.mxu0 %v7492_v19  ;;  %v7526_v6 = vld [vmem:[%s8102_s25 + $0x1a0] sm:$0xff]   ;;  %v7530_v10 = vld [vmem:[%s8102_s25 + $0x1a8] sm:$0xff]   ;;  %v7533_v13 = vld [vmem:[%s8102_s25 + $0x130] sm:$0xff]   ;;  %v1321_v19 = vrot.slane %v8144_v44, %v8140_v42 }
  0x2c   : > { %6768 = vmatpush3.bf16.msra.mxu1 %v7493_v20  ;;  %6747 = vmatprep.subr.bf16.mxu0 %v7494_v21  ;;  %v7534_v14 = vld [vmem:[%s8102_s25 + $0x1b0] sm:$0xff]   ;;  %v7535_v15 = vld [vmem:[%s8102_s25 + $0x178] sm:$0xff]   ;;  %v7539_v20 = vld [vmem:[%s8102_s25 + $0x240] sm:$0xff]  }
  0x2d   : > { %6769 = vmatprep.subr.bf16.mxu1 %v7495_v22  ;;  %v7536_v16 = vld [vmem:[%s8102_s25 + $0x1f8] sm:$0xff]   ;;  %v7540_v21 = vld [vmem:[%s8102_s25 + $0x2c0] sm:$0xff]   ;;  %v7547_v29 = vld [vmem:[%s8102_s25 + $0x250] sm:$0xff]  }
  0x2e   : > { %v7537_v17 = vld [vmem:[%s8102_s25 + $0x138] sm:$0xff]   ;;  %v7541_v22 = vld [vmem:[%s8102_s25 + $0x200] sm:$0xff]   ;;  %v7559_v41 = vld [vmem:[%s8102_s25 + $0x268] sm:$0xff]  }
  0x2f   : > { %6748 = vmatpush3.bf16.msra.mxu0 %v7496_v23  ;;  %v7538_v18 = vld [vmem:[%s8102_s25 + $0x1b8] sm:$0xff]   ;;  %v7542_v23 = vld [vmem:[%s8102_s25 + $0x280] sm:$0xff]   ;;  %v7560_v43 = vld [vmem:[%s8102_s25 + $0x2e8] sm:$0xff]  }
  0x30   : > { %6770 = vmatpush3.bf16.msra.mxu1 %v7497_v24  ;;  %6749 = vmatprep.subr.bf16.mxu0 %v7498_v25  ;;  %v1337_v24 = vcombine.high %v1321_v19, %v1321_v19  ;;  %v7543_v25 = vld [vmem:[%s8102_s25 + $0x248] sm:$0xff]   ;;  %v7552_v34 = vld [vmem:[%s8102_s25 + $0x2d8] sm:$0xff]   ;;  %v7555_v37 = vld [vmem:[%s8102_s25 + $0x260] sm:$0xff]  }
  0x31   : > { %6771 = vmatprep.subr.bf16.mxu1 %v7499_v26  ;;  %v7544_v26 = vld [vmem:[%s8102_s25 + $0x2c8] sm:$0xff]   ;;  %v7553_v35 = vld [vmem:[%s8102_s25 + $0x218] sm:$0xff]   ;;  %v7556_v38 = vld [vmem:[%s8102_s25 + $0x2e0] sm:$0xff]  }
  0x32   : > { %v7558_v40 = vld [vmem:[%s8102_s25 + $0x2a0] sm:$0xff]   ;;  %v7561_v44 = vld [vmem:[%s8102_s25 + $0x228] sm:$0xff]  }
  0x33   : > { %6750 = vmatpush3.bf16.msra.mxu0 %v7500_v27  ;;  %v7545_v27 = vld [vmem:[%s8102_s25 + $0x208] sm:$0xff]  }
  0x34   : > { %6772 = vmatpush3.bf16.msra.mxu1 %v7501_v28  ;;  %6751 = vmatprep.subr.bf16.mxu0 %v7502_v30  ;;  %v7546_v28 = vld [vmem:[%s8102_s25 + $0x288] sm:$0xff]   ;;  %v7548_v30 = vld [vmem:[%s8102_s25 + $0x2d0] sm:$0xff]  }
  0x35   : > { %6773 = vmatprep.subr.bf16.mxu1 %v7503_v31  ;;  %v7549_v31 = vld [vmem:[%s8102_s25 + $0x210] sm:$0xff]   ;;  %v7562_v45 = vld [vmem:[%s8102_s25 + $0x2a8] sm:$0xff]  }
  0x36   : > { %v252_v47 = vld [vmem:[%s8097_s21 + $0x8] sm:$0xff] }
  0x37   : > { %6752 = vmatpush3.bf16.msra.mxu0 %v7504_v32  ;;  %v7550_v32 = vld [vmem:[%s8102_s25 + $0x290] sm:$0xff]   ;;  %v1347_v49 = vrot.slane %v252_v47, %v8140_v42 }
  0x38   : > { %6774 = vmatpush3.bf16.msra.mxu1 %v7505_v33  ;;  %6781 = vmatprep.subr.bf16.mxu0 %v7507_v36  ;;  %v7551_v33 = vld [vmem:[%s8102_s25 + $0x258] sm:$0xff]  }
  0x39   : > { %6803 = vmatprep.subr.bf16.mxu1 %v7508_v39  ;;  %v7554_v36 = vld [vmem:[%s8102_s25 + $0x298] sm:$0xff]   ;;  %v7557_v39 = vld [vmem:[%s8102_s25 + $0x220] sm:$0xff]  }
  0x3a   : > { %4852 = vmatmul.mubr.bf16.vlgmr.msra.gmra.mrb[0].mxu0 %v1314_v46  ;;  %v7563_v46 = vld [vmem:[%s8102_s25 + $0x270] sm:$0xff]  }
  0x3b   : > { %6782 = vmatpush3.bf16.msra.mxu0 %v7509_v48  ;;  %4892 = vmatmul.mubr.bf16.vlgmr.msra.gmra.mrb[0].mxu1 %v1336_v52  ;;  %v7564_v48 = vld [vmem:[%s8102_s25 + $0x2f0] sm:$0xff]  }
  0x3c   : > { %6783 = vmatprep.subr.bf16.mxu0 %v7511_v53  ;;  %6804 = vmatpush3.bf16.msra.mxu1 %v7510_v50  ;;  %v1340_v50 = vcombine.high %v252_v47, %v252_v47  ;;  %v7566_v52 = vld [vmem:[%s8102_s25 + $0x2b0] sm:$0xff]   ;;  %v1355_v53 = vcombine.high %v1347_v49, %v1347_v49 }
  0x3d   : > { %4931 = vmatprep.mubr.bf16.mxu0 %v1335_v51  ;;  %6805 = vmatprep.subr.bf16.mxu1 %v7512_v55  ;;  %v7565_v51 = vld [vmem:[%s8102_s25 + $0x230] sm:$0xff]   ;;  %v7567_v55 = vld [vmem:[%s8102_s25 + $0x278] sm:$0xff]  }
  0x3e   : > { %4971 = vmatprep.mubr.bf16.mxu1 %v1339_v57  ;;  %v8214_v54 = vrot.slane %v1340_v50, %v8140_v42  ;;  %v1377_v57 = vrot.slane %v1355_v53, %v8140_v42  ;;  %v7614_v47 = vld [vmem:[%s8102_s25 + $0x410] sm:$0xff]   ;;  %v7617_v50 = vld [vmem:[%s8102_s25 + $0x4d8] sm:$0xff]   ;;  %v7620_v53 = vld [vmem:[%s8102_s25 + $0x460] sm:$0xff]  }
  0x3f   : > { %6784 = vmatpush3.bf16.msra.mxu0 %v7513_v56  ;;  %v7568_v56 = vld [vmem:[%s8102_s25 + $0x2f8] sm:$0xff]  }
  0x40   : > { %6785 = vmatprep.subr.bf16.mxu0 %v7515_v59  ;;  %6806 = vmatpush3.bf16.msra.mxu1 %v7514_v58  ;;  %v1356_v58 = vcombine.high %v8214_v54, %v8214_v54  ;;  %v7569_v59 = vld [vmem:[%s8102_s25 + $0x238] sm:$0xff]  }
  0x41   : > { %6807 = vmatprep.subr.bf16.mxu1 %v7516_v60  ;;  %v7570_v60 = vld [vmem:[%s8102_s25 + $0x2b8] sm:$0xff]  }
  0x43   : > { %6786 = vmatpush3.bf16.msra.mxu0 %v7517_v61  ;;  %v1387_v61 = vcombine.high %v1377_v57, %v1377_v57 }
  0x44   : > { %6787 = vmatprep.subr.bf16.mxu0 %v7519_v63  ;;  %6808 = vmatpush3.bf16.msra.mxu1 %v7518_v62  ;;  %v1363_v62 = vrot.slane %v1347_v49, %v8140_v42  ;;  %v7571_v63 = vld [vmem:[%s8102_s25 + $0x340] sm:$0xff]   ;;  %v7616_v49 = vld [vmem:[%s8102_s25 + $0x458] sm:$0xff]  }
  0x45   : > { %6809 = vmatprep.subr.bf16.mxu1 %v7520_v0  ;;  %v7572_v0 = vld [vmem:[%s8102_s25 + $0x3c0] sm:$0xff]  }
  0x47   : > { %6788 = vmatpush3.bf16.msra.mxu0 %v7521_v1  ;;  %v1384_v1 = vrot.slane %v1356_v58, %v8140_v42  ;;  %v7625_v58 = vld [vmem:[%s8102_s25 + $0x4e8] sm:$0xff]  }
  0x48   : > { %6789 = vmatprep.subr.bf16.mxu0 %v7523_v3  ;;  %6810 = vmatpush3.bf16.msra.mxu1 %v7522_v2  ;;  %v7573_v2 = vld [vmem:[%s8102_s25 + $0x300] sm:$0xff]  }
  0x49   : > { %6811 = vmatprep.subr.bf16.mxu1 %v7524_v4  ;;  %v7574_v3 = vld [vmem:[%s8102_s25 + $0x380] sm:$0xff]   ;;  %v1385_v4 = vcombine.high %v1363_v62, %v1363_v62 }
  0x4b   : > { %6790 = vmatpush3.bf16.msra.mxu0 %v7525_v5  ;;  %v7575_v5 = vld [vmem:[%s8102_s25 + $0x348] sm:$0xff]  }
  0x4c   : > { %6791 = vmatprep.subr.bf16.mxu0 %v7527_v7  ;;  %6812 = vmatpush3.bf16.msra.mxu1 %v7526_v6  ;;  %v7576_v6 = vld [vmem:[%s8102_s25 + $0x3c8] sm:$0xff]   ;;  %v1388_v7 = vcombine.high %v1384_v1, %v1384_v1 }
  0x4d   : > { %6813 = vmatprep.subr.bf16.mxu1 %v7528_v8  ;;  %v7577_v8 = vld [vmem:[%s8102_s25 + $0x308] sm:$0xff]  }
  0x4f   : > { %6792 = vmatpush3.bf16.msra.mxu0 %v7529_v9  ;;  %v7578_v9 = vld [vmem:[%s8102_s25 + $0x388] sm:$0xff]  }
  0x50   : > { %6793 = vmatprep.subr.bf16.mxu0 %v7531_v11  ;;  %6814 = vmatpush3.bf16.msra.mxu1 %v7530_v10  ;;  %v7579_v10 = vld [vmem:[%s8102_s25 + $0x350] sm:$0xff]  }
  0x51   : > { %6815 = vmatprep.subr.bf16.mxu1 %v7532_v12  ;;  %v7580_v11 = vld [vmem:[%s8102_s25 + $0x3d0] sm:$0xff]  }
  0x52   : > { %v7581_v12 = vld [vmem:[%s8102_s25 + $0x310] sm:$0xff]  }
  0x53   : > { %6794 = vmatpush3.bf16.msra.mxu0 %v7533_v13  ;;  %v7582_v13 = vld [vmem:[%s8102_s25 + $0x390] sm:$0xff]  }
  0x54   : > { %6795 = vmatprep.subr.bf16.mxu0 %v7535_v15  ;;  %6816 = vmatpush3.bf16.msra.mxu1 %v7534_v14  ;;  %v7583_v14 = vld [vmem:[%s8102_s25 + $0x358] sm:$0xff]  }
  0x55   : > { %6817 = vmatprep.subr.bf16.mxu1 %v7536_v16  ;;  %v7584_v15 = vld [vmem:[%s8102_s25 + $0x3d8] sm:$0xff]  }
  0x56   : > { %v7585_v16 = vld [vmem:[%s8102_s25 + $0x318] sm:$0xff]  }
  0x57   : > { %6796 = vmatpush3.bf16.msra.mxu0 %v7537_v17  ;;  %v7586_v17 = vld [vmem:[%s8102_s25 + $0x398] sm:$0xff]  }
  0x58   : > { %6825 = vmatprep.subr.bf16.mxu0 %v7539_v20  ;;  %6818 = vmatpush3.bf16.msra.mxu1 %v7538_v18  ;;  %v7587_v18 = vld [vmem:[%s8102_s25 + $0x360] sm:$0xff]  }
  0x59   : > { %6847 = vmatprep.subr.bf16.mxu1 %v7540_v21  ;;  %v7589_v20 = vld [vmem:[%s8102_s25 + $0x320] sm:$0xff]  }
  0x5a   : > { %4932 = vmatmul.mubr.bf16.vlgmr.msra.gmra.mrb[4].mxu0 %v1321_v19  ;;  %v7588_v19 = vld [vmem:[%s8102_s25 + $0x3e0] sm:$0xff]  }
  0x5b   : > { %6826 = vmatpush3.bf16.msra.mxu0 %v7541_v22  ;;  %4972 = vmatmul.mubr.bf16.vlgmr.msra.gmra.mrb[4].mxu1 %v1337_v24  ;;  %v7590_v21 = vld [vmem:[%s8102_s25 + $0x3a0] sm:$0xff]   ;;  %v7591_v22 = vld [vmem:[%s8102_s25 + $0x368] sm:$0xff]  }
  0x5c   : > { %6827 = vmatprep.subr.bf16.mxu0 %v7543_v25  ;;  %6848 = vmatpush3.bf16.msra.mxu1 %v7542_v23  ;;  %v7592_v23 = vld [vmem:[%s8102_s25 + $0x3e8] sm:$0xff]  }
  0x5d   : > { %6849 = vmatprep.subr.bf16.mxu1 %v7544_v26  ;;  %5011 = vmatprep.mubr.bf16.mxu0 %v1377_v57  ;;  %v7593_v24 = vld [vmem:[%s8102_s25 + $0x328] sm:$0xff]   ;;  %v7595_v26 = vld [vmem:[%s8102_s25 + $0x370] sm:$0xff]  }
  0x5e   : > { %5051 = vmatprep.mubr.bf16.mxu1 %v1387_v61  ;;  %v7594_v25 = vld [vmem:[%s8102_s25 + $0x3a8] sm:$0xff]   ;;  %v7628_v61 = vld [vmem:[%s8102_s25 + $0x470] sm:$0xff]  }
  0x5f   : > { %6828 = vmatpush3.bf16.msra.mxu0 %v7545_v27  ;;  %v7596_v27 = vld [vmem:[%s8102_s25 + $0x3f0] sm:$0xff]   ;;  %v7624_v57 = vld [vmem:[%s8102_s25 + $0x468] sm:$0xff]  }
  0x60   : > { %6829 = vmatprep.subr.bf16.mxu0 %v7547_v29  ;;  %6850 = vmatpush3.bf16.msra.mxu1 %v7546_v28  ;;  %v7597_v28 = vld [vmem:[%s8102_s25 + $0x330] sm:$0xff]  }
  0x61   : > { %6851 = vmatprep.subr.bf16.mxu1 %v7548_v30  ;;  %v7598_v29 = vld [vmem:[%s8102_s25 + $0x3b0] sm:$0xff]   ;;  %v7599_v30 = vld [vmem:[%s8102_s25 + $0x378] sm:$0xff]  }
  0x63   : > { %6830 = vmatpush3.bf16.msra.mxu0 %v7549_v31  ;;  %v7600_v31 = vld [vmem:[%s8102_s25 + $0x3f8] sm:$0xff]  }
  0x64   : > { %6831 = vmatprep.subr.bf16.mxu0 %v7551_v33  ;;  %6852 = vmatpush3.bf16.msra.mxu1 %v7550_v32  ;;  %v7601_v32 = vld [vmem:[%s8102_s25 + $0x338] sm:$0xff]  }
  0x65   : > { %6853 = vmatprep.subr.bf16.mxu1 %v7552_v34  ;;  %v7602_v33 = vld [vmem:[%s8102_s25 + $0x3b8] sm:$0xff]   ;;  %v1370_v34 = vrot.slane %v8214_v54, %v8140_v42  ;;  %v7621_v54 = vld [vmem:[%s8102_s25 + $0x4e0] sm:$0xff]  }
  0x67   : > { %6832 = vmatpush3.bf16.msra.mxu0 %v7553_v35  ;;  %v7604_v35 = vld [vmem:[%s8102_s25 + $0x440] sm:$0xff]  }
  0x68   : > { %6833 = vmatprep.subr.bf16.mxu0 %v7555_v37  ;;  %6854 = vmatpush3.bf16.msra.mxu1 %v7554_v36  ;;  %v7605_v36 = vld [vmem:[%s8102_s25 + $0x4c0] sm:$0xff]  }
  0x69   : > { %6855 = vmatprep.subr.bf16.mxu1 %v7556_v38  ;;  %v7606_v37 = vld [vmem:[%s8102_s25 + $0x400] sm:$0xff]  }
  0x6a   : > { %v7607_v38 = vld [vmem:[%s8102_s25 + $0x480] sm:$0xff]  }
  0x6b   : > { %6834 = vmatpush3.bf16.msra.mxu0 %v7557_v39  ;;  %v1386_v39 = vcombine.high %v1370_v34, %v1370_v34 }
  0x6c   : > { %6835 = vmatprep.subr.bf16.mxu0 %v7559_v41  ;;  %6856 = vmatpush3.bf16.msra.mxu1 %v7558_v40  ;;  %v7608_v40 = vld [vmem:[%s8102_s25 + $0x448] sm:$0xff]  }
  0x6d   : > { %6857 = vmatprep.subr.bf16.mxu1 %v7560_v43  ;;  %v7609_v41 = vld [vmem:[%s8102_s25 + $0x4c8] sm:$0xff]  }
  0x6e   : > { %v7610_v43 = vld [vmem:[%s8102_s25 + $0x408] sm:$0xff]  }
  0x6f   : > { %6836 = vmatpush3.bf16.msra.mxu0 %v7561_v44  ;;  %v7611_v44 = vld [vmem:[%s8102_s25 + $0x488] sm:$0xff]  }
  0x70   : > { %6837 = vmatprep.subr.bf16.mxu0 %v7563_v46  ;;  %6858 = vmatpush3.bf16.msra.mxu1 %v7562_v45  ;;  %v7612_v45 = vld [vmem:[%s8102_s25 + $0x450] sm:$0xff]  }
  0x71   : > { %6859 = vmatprep.subr.bf16.mxu1 %v7564_v48  ;;  %v7613_v46 = vld [vmem:[%s8102_s25 + $0x4d0] sm:$0xff]  }
  0x72   : > { %v7615_v48 = vld [vmem:[%s8102_s25 + $0x490] sm:$0xff]  }
  0x73   : > { %6838 = vmatpush3.bf16.msra.mxu0 %v7565_v51  ;;  %v7618_v51 = vld [vmem:[%s8102_s25 + $0x418] sm:$0xff]  }
  0x74   : > { %6839 = vmatprep.subr.bf16.mxu0 %v7567_v55  ;;  %6860 = vmatpush3.bf16.msra.mxu1 %v7566_v52  ;;  %v7619_v52 = vld [vmem:[%s8102_s25 + $0x498] sm:$0xff]   ;;  %v7622_v55 = vld [vmem:[%s8102_s25 + $0x420] sm:$0xff]  }
  0x75   : > { %6861 = vmatprep.subr.bf16.mxu1 %v7568_v56  ;;  %v7623_v56 = vld [vmem:[%s8102_s25 + $0x4a0] sm:$0xff]  }
  0x77   : > { %6840 = vmatpush3.bf16.msra.mxu0 %v7569_v59  ;;  %v7626_v59 = vld [vmem:[%s8102_s25 + $0x428] sm:$0xff]  }
  0x78   : > { %6869 = vmatprep.subr.bf16.mxu0 %v7571_v63  ;;  %6862 = vmatpush3.bf16.msra.mxu1 %v7570_v60  ;;  %v7627_v60 = vld [vmem:[%s8102_s25 + $0x4a8] sm:$0xff]   ;;  %v7629_v63 = vld [vmem:[%s8102_s25 + $0x4f0] sm:$0xff]  }
  0x79   : > { %6891 = vmatprep.subr.bf16.mxu1 %v7572_v0 }
  0x7a   : > { %5012 = vmatmul.mubr.bf16.vlgmr.msra.gmra.mrb[8].mxu0 %v1363_v62  ;;  %v253_v62 = vld [vmem:[%s8097_s21 + $0x10] sm:$0xff] }
  0x7b   : > { %6870 = vmatpush3.bf16.msra.mxu0 %v7573_v2  ;;  %5091 = vmatprep.mubr.bf16.mxu0 %v1384_v1  ;;  %v1396_v0 = vrot.slane %v253_v62, %v8140_v42  ;;  %v1389_v1 = vcombine.high %v253_v62, %v253_v62  ;;  %v7630_v2 = vld [vmem:[%s8102_s25 + $0x430] sm:$0xff]  }
  0x7c   : > { %5052 = vmatmul.mubr.bf16.vlgmr.msra.gmra.mrb[8].mxu1 %v1385_v4  ;;  %6871 = vmatprep.subr.bf16.mxu0 %v7575_v5  ;;  %v7679_v62 = vld [vmem:[%s8102_s25 + $0x610] sm:$0xff]  }
  0x7d   : > { %6892 = vmatpush3.bf16.msra.mxu1 %v7574_v3  ;;  %5131 = vmatprep.mubr.bf16.mxu1 %v1388_v7  ;;  %v7631_v3 = vld [vmem:[%s8102_s25 + $0x4b0] sm:$0xff]   ;;  %v1404_v4 = vcombine.high %v1396_v0, %v1396_v0  ;;  %v8290_v5 = vrot.slane %v1389_v1, %v8140_v42  ;;  %v7633_v7 = vld [vmem:[%s8102_s25 + $0x4f8] sm:$0xff]  }
  0x7e   : > { %6893 = vmatprep.subr.bf16.mxu1 %v7576_v6  ;;  %v7632_v6 = vld [vmem:[%s8102_s25 + $0x478] sm:$0xff]  }
  0x7f   : > { %6872 = vmatpush3.bf16.msra.mxu0 %v7577_v8  ;;  %v1426_v8 = vrot.slane %v1404_v4, %v8140_v42  ;;  %v7682_v1 = vld [vmem:[%s8102_s25 + $0x6d8] sm:$0xff]   ;;  %v7685_v4 = vld [vmem:[%s8102_s25 + $0x660] sm:$0xff]  }
  0x80   : > { %6873 = vmatprep.subr.bf16.mxu0 %v7579_v10  ;;  %v7634_v10 = vld [vmem:[%s8102_s25 + $0x438] sm:$0xff]  }
  0x81   : > { %6894 = vmatpush3.bf16.msra.mxu1 %v7578_v9  ;;  %v1405_v9 = vcombine.high %v8290_v5, %v8290_v5 }
  0x82   : > { %6895 = vmatprep.subr.bf16.mxu1 %v7580_v11  ;;  %v7635_v11 = vld [vmem:[%s8102_s25 + $0x4b8] sm:$0xff]  }
  0x83   : > { %6874 = vmatpush3.bf16.msra.mxu0 %v7581_v12  ;;  %v1436_v12 = vcombine.high %v1426_v8, %v1426_v8 }
  0x84   : > { %6875 = vmatprep.subr.bf16.mxu0 %v7583_v14  ;;  %v7636_v14 = vld [vmem:[%s8102_s25 + $0x540] sm:$0xff]  }
  0x85   : > { %6896 = vmatpush3.bf16.msra.mxu1 %v7582_v13  ;;  %v1412_v13 = vrot.slane %v1396_v0, %v8140_v42  ;;  %v7681_v0 = vld [vmem:[%s8102_s25 + $0x658] sm:$0xff]  }
  0x86   : > { %6897 = vmatprep.subr.bf16.mxu1 %v7584_v15  ;;  %v7637_v15 = vld [vmem:[%s8102_s25 + $0x5c0] sm:$0xff]  }
  0x87   : > { %6876 = vmatpush3.bf16.msra.mxu0 %v7585_v16  ;;  %v1433_v16 = vrot.slane %v1405_v9, %v8140_v42  ;;  %v7690_v9 = vld [vmem:[%s8102_s25 + $0x6e8] sm:$0xff]  }
  0x88   : > { %6877 = vmatprep.subr.bf16.mxu0 %v7587_v18  ;;  %v7639_v18 = vld [vmem:[%s8102_s25 + $0x580] sm:$0xff]  }
  0x89   : > { %6898 = vmatpush3.bf16.msra.mxu1 %v7586_v17  ;;  %v7638_v17 = vld [vmem:[%s8102_s25 + $0x500] sm:$0xff]  }
  0x8a   : > { %6899 = vmatprep.subr.bf16.mxu1 %v7588_v19  ;;  %v1434_v19 = vcombine.high %v1412_v13, %v1412_v13 }
  0x8b   : > { %6878 = vmatpush3.bf16.msra.mxu0 %v7589_v20  ;;  %v7640_v20 = vld [vmem:[%s8102_s25 + $0x548] sm:$0xff]  }
  0x8c   : > { %6879 = vmatprep.subr.bf16.mxu0 %v7591_v22  ;;  %v1437_v22 = vcombine.high %v1433_v16, %v1433_v16 }
  0x8d   : > { %6900 = vmatpush3.bf16.msra.mxu1 %v7590_v21  ;;  %v7641_v21 = vld [vmem:[%s8102_s25 + $0x5c8] sm:$0xff]  }
  0x8e   : > { %6901 = vmatprep.subr.bf16.mxu1 %v7592_v23  ;;  %v7642_v23 = vld [vmem:[%s8102_s25 + $0x508] sm:$0xff]  }
  0x8f   : > { %6880 = vmatpush3.bf16.msra.mxu0 %v7593_v24  ;;  %v7643_v24 = vld [vmem:[%s8102_s25 + $0x588] sm:$0xff]  }
  0x90   : > { %6881 = vmatprep.subr.bf16.mxu0 %v7595_v26  ;;  %v7645_v26 = vld [vmem:[%s8102_s25 + $0x5d0] sm:$0xff]  }
  0x91   : > { %6902 = vmatpush3.bf16.msra.mxu1 %v7594_v25  ;;  %v7644_v25 = vld [vmem:[%s8102_s25 + $0x550] sm:$0xff]  }
  0x92   : > { %6903 = vmatprep.subr.bf16.mxu1 %v7596_v27  ;;  %v7646_v27 = vld [vmem:[%s8102_s25 + $0x510] sm:$0xff]  }
  0x93   : > { %6882 = vmatpush3.bf16.msra.mxu0 %v7597_v28  ;;  %v7647_v28 = vld [vmem:[%s8102_s25 + $0x590] sm:$0xff]  }
  0x94   : > { %6883 = vmatprep.subr.bf16.mxu0 %v7599_v30  ;;  %v7649_v30 = vld [vmem:[%s8102_s25 + $0x5d8] sm:$0xff]  }
  0x95   : > { %6904 = vmatpush3.bf16.msra.mxu1 %v7598_v29  ;;  %v7648_v29 = vld [vmem:[%s8102_s25 + $0x558] sm:$0xff]  }
  0x96   : > { %6905 = vmatprep.subr.bf16.mxu1 %v7600_v31  ;;  %v7650_v31 = vld [vmem:[%s8102_s25 + $0x518] sm:$0xff]  }
  0x97   : > { %6884 = vmatpush3.bf16.msra.mxu0 %v7601_v32  ;;  %v7651_v32 = vld [vmem:[%s8102_s25 + $0x598] sm:$0xff]  }
  0x98   : > { %6913 = vmatprep.subr.bf16.mxu0 %v7604_v35  ;;  %v7654_v35 = vld [vmem:[%s8102_s25 + $0x520] sm:$0xff]  }
  0x99   : > { %6906 = vmatpush3.bf16.msra.mxu1 %v7602_v33  ;;  %v7652_v33 = vld [vmem:[%s8102_s25 + $0x560] sm:$0xff]  }
  0x9a   : > { %5092 = vmatmul.mubr.bf16.vlgmr.msra.gmra.mrb[12].mxu0 %v1370_v34  ;;  %6935 = vmatprep.subr.bf16.mxu1 %v7605_v36  ;;  %v7653_v34 = vld [vmem:[%s8102_s25 + $0x5e0] sm:$0xff]  }
  0x9b   : > { %6914 = vmatpush3.bf16.msra.mxu0 %v7606_v37  ;;  %5171 = vmatprep.mubr.bf16.mxu0 %v1426_v8  ;;  %v7655_v36 = vld [vmem:[%s8102_s25 + $0x5a0] sm:$0xff]   ;;  %v7656_v37 = vld [vmem:[%s8102_s25 + $0x568] sm:$0xff]  }
  0x9c   : > { %5132 = vmatmul.mubr.bf16.vlgmr.msra.gmra.mrb[12].mxu1 %v1386_v39  ;;  %6915 = vmatprep.subr.bf16.mxu0 %v7608_v40  ;;  %v7658_v39 = vld [vmem:[%s8102_s25 + $0x528] sm:$0xff]  }
  0x9d   : > { %6936 = vmatpush3.bf16.msra.mxu1 %v7607_v38  ;;  %5211 = vmatprep.mubr.bf16.mxu1 %v1436_v12  ;;  %v7657_v38 = vld [vmem:[%s8102_s25 + $0x5e8] sm:$0xff]   ;;  %v7693_v12 = vld [vmem:[%s8102_s25 + $0x670] sm:$0xff]  }
  0x9e   : > { %6937 = vmatprep.subr.bf16.mxu1 %v7609_v41  ;;  %v7659_v40 = vld [vmem:[%s8102_s25 + $0x5a8] sm:$0xff]   ;;  %v7660_v41 = vld [vmem:[%s8102_s25 + $0x570] sm:$0xff]  }
  0x9f   : > { %6916 = vmatpush3.bf16.msra.mxu0 %v7610_v43  ;;  %v7661_v43 = vld [vmem:[%s8102_s25 + $0x5f0] sm:$0xff]   ;;  %v7689_v8 = vld [vmem:[%s8102_s25 + $0x668] sm:$0xff]  }
  0xa0   : > { %6917 = vmatprep.subr.bf16.mxu0 %v7612_v45  ;;  %v7663_v45 = vld [vmem:[%s8102_s25 + $0x5b0] sm:$0xff]  }
  0xa1   : > { %6938 = vmatpush3.bf16.msra.mxu1 %v7611_v44  ;;  %v7662_v44 = vld [vmem:[%s8102_s25 + $0x530] sm:$0xff]  }
  0xa2   : > { %6939 = vmatprep.subr.bf16.mxu1 %v7613_v46  ;;  %v7664_v46 = vld [vmem:[%s8102_s25 + $0x578] sm:$0xff]  }
  0xa3   : > { %6918 = vmatpush3.bf16.msra.mxu0 %v7614_v47  ;;  %v7665_v47 = vld [vmem:[%s8102_s25 + $0x5f8] sm:$0xff]  }
  0xa4   : > { %6919 = vmatprep.subr.bf16.mxu0 %v7616_v49  ;;  %v7667_v49 = vld [vmem:[%s8102_s25 + $0x5b8] sm:$0xff]  }
  0xa5   : > { %6940 = vmatpush3.bf16.msra.mxu1 %v7615_v48  ;;  %v7666_v48 = vld [vmem:[%s8102_s25 + $0x538] sm:$0xff]  }
  0xa6   : > { %6941 = vmatprep.subr.bf16.mxu1 %v7617_v50  ;;  %v1419_v50 = vrot.slane %v8290_v5, %v8140_v42  ;;  %v7686_v5 = vld [vmem:[%s8102_s25 + $0x6e0] sm:$0xff]  }
  0xa7   : > { %6920 = vmatpush3.bf16.msra.mxu0 %v7618_v51  ;;  %v7669_v51 = vld [vmem:[%s8102_s25 + $0x640] sm:$0xff]  }
  0xa8   : > { %6921 = vmatprep.subr.bf16.mxu0 %v7620_v53  ;;  %v7671_v53 = vld [vmem:[%s8102_s25 + $0x600] sm:$0xff]  }
  0xa9   : > { %6942 = vmatpush3.bf16.msra.mxu1 %v7619_v52  ;;  %v7670_v52 = vld [vmem:[%s8102_s25 + $0x6c0] sm:$0xff]  }
  0xaa   : > { %6943 = vmatprep.subr.bf16.mxu1 %v7621_v54  ;;  %v7672_v54 = vld [vmem:[%s8102_s25 + $0x680] sm:$0xff]  }
  0xab   : > { %6922 = vmatpush3.bf16.msra.mxu0 %v7622_v55  ;;  %v1435_v55 = vcombine.high %v1419_v50, %v1419_v50 }
  0xac   : > { %6923 = vmatprep.subr.bf16.mxu0 %v7624_v57  ;;  %v7674_v57 = vld [vmem:[%s8102_s25 + $0x6c8] sm:$0xff]  }
  0xad   : > { %6944 = vmatpush3.bf16.msra.mxu1 %v7623_v56  ;;  %v7673_v56 = vld [vmem:[%s8102_s25 + $0x648] sm:$0xff]  }
  0xae   : > { %6945 = vmatprep.subr.bf16.mxu1 %v7625_v58  ;;  %v7675_v58 = vld [vmem:[%s8102_s25 + $0x608] sm:$0xff]  }
  0xaf   : > { %6924 = vmatpush3.bf16.msra.mxu0 %v7626_v59  ;;  %v7676_v59 = vld [vmem:[%s8102_s25 + $0x688] sm:$0xff]  }
  0xb0   : > { %6925 = vmatprep.subr.bf16.mxu0 %v7628_v61  ;;  %v7678_v61 = vld [vmem:[%s8102_s25 + $0x6d0] sm:$0xff]  }
  0xb1   : > { %6946 = vmatpush3.bf16.msra.mxu1 %v7627_v60  ;;  %v7677_v60 = vld [vmem:[%s8102_s25 + $0x650] sm:$0xff]  }
  0xb2   : > { %6947 = vmatprep.subr.bf16.mxu1 %v7629_v63  ;;  %v7680_v63 = vld [vmem:[%s8102_s25 + $0x690] sm:$0xff]  }
  0xb3   : > { %6926 = vmatpush3.bf16.msra.mxu0 %v7630_v2  ;;  %v7683_v2 = vld [vmem:[%s8102_s25 + $0x618] sm:$0xff]  }
  0xb4   : > { %6927 = vmatprep.subr.bf16.mxu0 %v7632_v6  ;;  %v7687_v6 = vld [vmem:[%s8102_s25 + $0x620] sm:$0xff]  }
  0xb5   : > { %6948 = vmatpush3.bf16.msra.mxu1 %v7631_v3  ;;  %v7684_v3 = vld [vmem:[%s8102_s25 + $0x698] sm:$0xff]  }
  0xb6   : > { %6949 = vmatprep.subr.bf16.mxu1 %v7633_v7  ;;  %v7688_v7 = vld [vmem:[%s8102_s25 + $0x6a0] sm:$0xff]  }
  0xb7   : > { %6928 = vmatpush3.bf16.msra.mxu0 %v7634_v10  ;;  %v7691_v10 = vld [vmem:[%s8102_s25 + $0x628] sm:$0xff]  }
  0xb8   : > { %6957 = vmatprep.subr.bf16.mxu0 %v7636_v14  ;;  %v254_v14 = vld [vmem:[%s8097_s21 + $0x18] sm:$0xff] }
  0xb9   : > { %6950 = vmatpush3.bf16.msra.mxu1 %v7635_v11  ;;  %v7692_v11 = vld [vmem:[%s8102_s25 + $0x6a8] sm:$0xff]  }
  0xba   : > { %5172 = vmatmul.mubr.bf16.vlgmr.msra.gmra.mrb[16].mxu0 %v1412_v13  ;;  %6979 = vmatprep.subr.bf16.mxu1 %v7637_v15  ;;  %v7694_v13 = vld [vmem:[%s8102_s25 + $0x6f0] sm:$0xff]  }
  0xbb   : > { %6958 = vmatpush3.bf16.msra.mxu0 %v7638_v17  ;;  %5251 = vmatprep.mubr.bf16.mxu0 %v1433_v16  ;;  %v7695_v15 = vld [vmem:[%s8102_s25 + $0x630] sm:$0xff]   ;;  %v1445_v16 = vrot.slane %v254_v14, %v8140_v42  ;;  %v1438_v17 = vcombine.high %v254_v14, %v254_v14  ;;  %v7735_v14 = vld [vmem:[%s8102_s25 + $0x8c0] sm:$0xff]  }
  0xbc   : > { %5212 = vmatmul.mubr.bf16.vlgmr.msra.gmra.mrb[16].mxu1 %v1434_v19  ;;  %6959 = vmatprep.subr.bf16.mxu0 %v7640_v20  ;;  %v7697_v19 = vld [vmem:[%s8102_s25 + $0x678] sm:$0xff]  }
  0xbd   : > { %6980 = vmatpush3.bf16.msra.mxu1 %v7639_v18  ;;  %5291 = vmatprep.mubr.bf16.mxu1 %v1437_v22  ;;  %v7696_v18 = vld [vmem:[%s8102_s25 + $0x6b0] sm:$0xff]   ;;  %v1453_v20 = vcombine.high %v1445_v16, %v1445_v16  ;;  %v7698_v22 = vld [vmem:[%s8102_s25 + $0x6f8] sm:$0xff]  }
  0xbe   : > { %6981 = vmatprep.subr.bf16.mxu1 %v7641_v21  ;;  %v8367_v21 = vrot.slane %v1438_v17, %v8140_v42 }
  0xbf   : > { %6960 = vmatpush3.bf16.msra.mxu0 %v7642_v23  ;;  %v7699_v23 = vld [vmem:[%s8102_s25 + $0x638] sm:$0xff]  }
  0xc0   : > { %6961 = vmatprep.subr.bf16.mxu0 %v7644_v25  ;;  %v1454_v25 = vcombine.high %v8367_v21, %v8367_v21 }
  0xc1   : > { %6982 = vmatpush3.bf16.msra.mxu1 %v7643_v24  ;;  %v1475_v24 = vrot.slane %v1453_v20, %v8140_v42  ;;  %v7740_v20 = vld [vmem:[%s8102_s25 + $0x808] sm:$0xff]  }
  0xc2   : > { %6983 = vmatprep.subr.bf16.mxu1 %v7645_v26  ;;  %v7700_v26 = vld [vmem:[%s8102_s25 + $0x6b8] sm:$0xff]  }
  0xc3   : > { %6962 = vmatpush3.bf16.msra.mxu0 %v7646_v27  ;;  %v1485_v27 = vcombine.high %v1475_v24, %v1475_v24 }
  0xc4   : > { %6963 = vmatprep.subr.bf16.mxu0 %v7648_v29  ;;  %v7701_v29 = vld [vmem:[%s8102_s25 + $0x740] sm:$0xff]  }
  0xc5   : > { %6984 = vmatpush3.bf16.msra.mxu1 %v7647_v28  ;;  %v1461_v28 = vrot.slane %v1445_v16, %v8140_v42  ;;  %v7737_v16 = vld [vmem:[%s8102_s25 + $0x880] sm:$0xff]  }
  0xc6   : > { %6985 = vmatprep.subr.bf16.mxu1 %v7649_v30  ;;  %v7702_v30 = vld [vmem:[%s8102_s25 + $0x7c0] sm:$0xff]  }
  0xc7   : > { %6964 = vmatpush3.bf16.msra.mxu0 %v7650_v31  ;;  %v1482_v31 = vrot.slane %v1454_v25, %v8140_v42  ;;  %v7745_v25 = vld [vmem:[%s8102_s25 + $0x890] sm:$0xff]  }
  0xc8   : > { %6965 = vmatprep.subr.bf16.mxu0 %v7652_v33  ;;  %v7704_v33 = vld [vmem:[%s8102_s25 + $0x780] sm:$0xff]  }
  0xc9   : > { %6986 = vmatpush3.bf16.msra.mxu1 %v7651_v32  ;;  %v7703_v32 = vld [vmem:[%s8102_s25 + $0x700] sm:$0xff]  }
  0xca   : > { %6987 = vmatprep.subr.bf16.mxu1 %v7653_v34  ;;  %v1483_v34 = vcombine.high %v1461_v28, %v1461_v28 }
  0xcb   : > { %6966 = vmatpush3.bf16.msra.mxu0 %v7654_v35  ;;  %v7705_v35 = vld [vmem:[%s8102_s25 + $0x748] sm:$0xff]  }
  0xcc   : > { %6967 = vmatprep.subr.bf16.mxu0 %v7656_v37  ;;  %v1486_v37 = vcombine.high %v1482_v31, %v1482_v31 }
  0xcd   : > { %6988 = vmatpush3.bf16.msra.mxu1 %v7655_v36  ;;  %v7706_v36 = vld [vmem:[%s8102_s25 + $0x7c8] sm:$0xff]  }
  0xce   : > { %6989 = vmatprep.subr.bf16.mxu1 %v7657_v38  ;;  %v7707_v38 = vld [vmem:[%s8102_s25 + $0x708] sm:$0xff]  }
  0xcf   : > { %6968 = vmatpush3.bf16.msra.mxu0 %v7658_v39  ;;  %v7708_v39 = vld [vmem:[%s8102_s25 + $0x788] sm:$0xff]  }
  0xd0   : > { %6969 = vmatprep.subr.bf16.mxu0 %v7660_v41  ;;  %v7710_v41 = vld [vmem:[%s8102_s25 + $0x7d0] sm:$0xff]  }
  0xd1   : > { %6990 = vmatpush3.bf16.msra.mxu1 %v7659_v40  ;;  %v7709_v40 = vld [vmem:[%s8102_s25 + $0x750] sm:$0xff]  }
  0xd2   : > { %6991 = vmatprep.subr.bf16.mxu1 %v7661_v43  ;;  %v7711_v43 = vld [vmem:[%s8102_s25 + $0x710] sm:$0xff]  }
  0xd3   : > { %6970 = vmatpush3.bf16.msra.mxu0 %v7662_v44  ;;  %v7712_v44 = vld [vmem:[%s8102_s25 + $0x790] sm:$0xff]  }
  0xd4   : > { %6971 = vmatprep.subr.bf16.mxu0 %v7664_v46  ;;  %v7714_v46 = vld [vmem:[%s8102_s25 + $0x7d8] sm:$0xff]  }
  0xd5   : > { %6992 = vmatpush3.bf16.msra.mxu1 %v7663_v45  ;;  %v7713_v45 = vld [vmem:[%s8102_s25 + $0x758] sm:$0xff]  }
  0xd6   : > { %6993 = vmatprep.subr.bf16.mxu1 %v7665_v47  ;;  %v7715_v47 = vld [vmem:[%s8102_s25 + $0x718] sm:$0xff]  }
  0xd7   : > { %6972 = vmatpush3.bf16.msra.mxu0 %v7666_v48  ;;  %v7716_v48 = vld [vmem:[%s8102_s25 + $0x798] sm:$0xff]  }
  0xd8   : > { %7001 = vmatprep.subr.bf16.mxu0 %v7669_v51  ;;  %v7719_v51 = vld [vmem:[%s8102_s25 + $0x720] sm:$0xff]  }
  0xd9   : > { %6994 = vmatpush3.bf16.msra.mxu1 %v7667_v49  ;;  %v7717_v49 = vld [vmem:[%s8102_s25 + $0x760] sm:$0xff]  }
  0xda   : > { %5252 = vmatmul.mubr.bf16.vlgmr.msra.gmra.mrb[20].mxu0 %v1419_v50  ;;  %7023 = vmatprep.subr.bf16.mxu1 %v7670_v52  ;;  %v7718_v50 = vld [vmem:[%s8102_s25 + $0x7e0] sm:$0xff]  }
  0xdb   : > { %7002 = vmatpush3.bf16.msra.mxu0 %v7671_v53  ;;  %5331 = vmatprep.mubr.bf16.mxu0 %v1475_v24  ;;  %v7720_v52 = vld [vmem:[%s8102_s25 + $0x7a0] sm:$0xff]   ;;  %v7721_v53 = vld [vmem:[%s8102_s25 + $0x768] sm:$0xff]   ;;  %v7744_v24 = vld [vmem:[%s8102_s25 + $0x810] sm:$0xff]  }
  0xdc   : > { %5292 = vmatmul.mubr.bf16.vlgmr.msra.gmra.mrb[20].mxu1 %v1435_v55  ;;  %7003 = vmatprep.subr.bf16.mxu0 %v7673_v56  ;;  %v7723_v55 = vld [vmem:[%s8102_s25 + $0x728] sm:$0xff]  }
  0xdd   : > { %7024 = vmatpush3.bf16.msra.mxu1 %v7672_v54  ;;  %5371 = vmatprep.mubr.bf16.mxu1 %v1485_v27  ;;  %v7722_v54 = vld [vmem:[%s8102_s25 + $0x7e8] sm:$0xff]   ;;  %v7747_v27 = vld [vmem:[%s8102_s25 + $0x8d8] sm:$0xff]  }
  0xde   : > { %7025 = vmatprep.subr.bf16.mxu1 %v7674_v57  ;;  %v7724_v56 = vld [vmem:[%s8102_s25 + $0x7a8] sm:$0xff]   ;;  %v7725_v57 = vld [vmem:[%s8102_s25 + $0x770] sm:$0xff]  }
  0xdf   : > { %7004 = vmatpush3.bf16.msra.mxu0 %v7675_v58 }
  0xe0   : > { %7005 = vmatprep.subr.bf16.mxu0 %v7677_v60 }
  0xe1   : > { %7026 = vmatpush3.bf16.msra.mxu1 %v7676_v59  ;;  %v7726_v59 = vld [vmem:[%s8102_s25 + $0x7f0] sm:$0xff]  }
  0xe2   : > { %7027 = vmatprep.subr.bf16.mxu1 %v7678_v61  ;;  %v7727_v61 = vld [vmem:[%s8102_s25 + $0x730] sm:$0xff]  }
  0xe3   : > { %7006 = vmatpush3.bf16.msra.mxu0 %v7679_v62 }
  0xe4   : > { %7007 = vmatprep.subr.bf16.mxu0 %v7681_v0 }
  0xe5   : > { %7028 = vmatpush3.bf16.msra.mxu1 %v7680_v63 }
  0xe6   : > { %7029 = vmatprep.subr.bf16.mxu1 %v7682_v1  ;;  %v7728_v1 = vld [vmem:[%s8102_s25 + $0x7b0] sm:$0xff]  }
  0xe7   : > { %7008 = vmatpush3.bf16.msra.mxu0 %v7683_v2  ;;  %v7729_v2 = vld [vmem:[%s8102_s25 + $0x778] sm:$0xff]  }
  0xe8   : > { %7009 = vmatprep.subr.bf16.mxu0 %v7685_v4 }
  0xe9   : > { %7030 = vmatpush3.bf16.msra.mxu1 %v7684_v3 }
  0xea   : > { %7031 = vmatprep.subr.bf16.mxu1 %v7686_v5 }
  0xeb   : > { %7010 = vmatpush3.bf16.msra.mxu0 %v7687_v6 }
  0xec   : > { %7011 = vmatprep.subr.bf16.mxu0 %v7689_v8 }
  0xed   : > { %7032 = vmatpush3.bf16.msra.mxu1 %v7688_v7  ;;  %v7730_v7 = vld [vmem:[%s8102_s25 + $0x7f8] sm:$0xff]  }
  0xee   : > { %7033 = vmatprep.subr.bf16.mxu1 %v7690_v9  ;;  %v7731_v9 = vld [vmem:[%s8102_s25 + $0x738] sm:$0xff]  }
  0xef   : > { %7012 = vmatpush3.bf16.msra.mxu0 %v7691_v10 }
  0xf0   : > { %7013 = vmatprep.subr.bf16.mxu0 %v7693_v12  ;;  %v1468_v12 = vrot.slane %v8367_v21, %v8140_v42  ;;  %v7741_v21 = vld [vmem:[%s8102_s25 + $0x888] sm:$0xff]  }
  0xf1   : > { %7034 = vmatpush3.bf16.msra.mxu1 %v7692_v11  ;;  %v7732_v11 = vld [vmem:[%s8102_s25 + $0x7b8] sm:$0xff]  }
  0xf2   : > { %7035 = vmatprep.subr.bf16.mxu1 %v7694_v13  ;;  %v7734_v13 = vld [vmem:[%s8102_s25 + $0x840] sm:$0xff]   ;;  %v1484_v17 = vcombine.high %v1468_v12, %v1468_v12 }
  0xf3   : > { %7014 = vmatpush3.bf16.msra.mxu0 %v7695_v15  ;;  %v7736_v15 = vld [vmem:[%s8102_s25 + $0x800] sm:$0xff]  }
  0xf4   : > { %7015 = vmatprep.subr.bf16.mxu0 %v7697_v19  ;;  %v7739_v19 = vld [vmem:[%s8102_s25 + $0x8c8] sm:$0xff]  }
  0xf5   : > { %7036 = vmatpush3.bf16.msra.mxu1 %v7696_v18  ;;  %v7738_v18 = vld [vmem:[%s8102_s25 + $0x848] sm:$0xff]  }
  0xf6   : > { %7037 = vmatprep.subr.bf16.mxu1 %v7698_v22  ;;  %v7742_v22 = vld [vmem:[%s8102_s25 + $0x850] sm:$0xff]  }
  0xf7   : > { %7016 = vmatpush3.bf16.msra.mxu0 %v7699_v23  ;;  %v7743_v23 = vld [vmem:[%s8102_s25 + $0x8d0] sm:$0xff]  }
  0xf8   : > { %7045 = vmatprep.subr.bf16.mxu0 %v7701_v29  ;;  %v7749_v29 = vld [vmem:[%s8102_s25 + $0x898] sm:$0xff]  }
  0xf9   : > { %7038 = vmatpush3.bf16.msra.mxu1 %v7700_v26  ;;  %v7746_v26 = vld [vmem:[%s8102_s25 + $0x858] sm:$0xff]  }
  0xfa   : > { %5332 = vmatmul.mubr.bf16.vlgmr.msra.gmra.mrb[24].mxu0 %v1461_v28  ;;  %7067 = vmatprep.subr.bf16.mxu1 %v7702_v30  ;;  %v7748_v28 = vld [vmem:[%s8102_s25 + $0x818] sm:$0xff]   ;;  %v7750_v30 = vld [vmem:[%s8102_s25 + $0x860] sm:$0xff]  }
  0xfb   : > { %7046 = vmatpush3.bf16.msra.mxu0 %v7703_v32  ;;  %5411 = vmatprep.mubr.bf16.mxu0 %v1482_v31  ;;  %v7751_v31 = vld [vmem:[%s8102_s25 + $0x8e0] sm:$0xff]  }
  0xfc   : > { %5372 = vmatmul.mubr.bf16.vlgmr.msra.gmra.mrb[24].mxu1 %v1483_v34  ;;  %7047 = vmatprep.subr.bf16.mxu0 %v7705_v35  ;;  %v7752_v32 = vld [vmem:[%s8102_s25 + $0x820] sm:$0xff]   ;;  %v7754_v34 = vld [vmem:[%s8102_s25 + $0x868] sm:$0xff]  }
  0xfd   : > { %7068 = vmatpush3.bf16.msra.mxu1 %v7704_v33  ;;  %5451 = vmatprep.mubr.bf16.mxu1 %v1486_v37  ;;  %v7753_v33 = vld [vmem:[%s8102_s25 + $0x8a0] sm:$0xff]   ;;  %v7755_v35 = vld [vmem:[%s8102_s25 + $0x8e8] sm:$0xff]  }
  0xfe   : > { %7069 = vmatprep.subr.bf16.mxu1 %v7706_v36  ;;  %v7756_v36 = vld [vmem:[%s8102_s25 + $0x828] sm:$0xff]  }
  0xff   : > { %7048 = vmatpush3.bf16.msra.mxu0 %v7707_v38  ;;  %v7757_v37 = vld [vmem:[%s8102_s25 + $0x8a8] sm:$0xff]   ;;  %v7758_v38 = vld [vmem:[%s8102_s25 + $0x870] sm:$0xff]  }
 0x100   : > { %7049 = vmatprep.subr.bf16.mxu0 %v7709_v40  ;;  %v7759_v40 = vld [vmem:[%s8102_s25 + $0x8f0] sm:$0xff]  }
 0x101   : > { %7070 = vmatpush3.bf16.msra.mxu1 %v7708_v39 }
 0x102   : > { %7071 = vmatprep.subr.bf16.mxu1 %v7710_v41  ;;  %v255_v41 = vld [vmem:[%s8097_s21 + $0x20] sm:$0xff] }
 0x103   : > { %7050 = vmatpush3.bf16.msra.mxu0 %v7711_v43 }
 0x104   : > { %7051 = vmatprep.subr.bf16.mxu0 %v7713_v45  ;;  %v1494_v45 = vrot.slane %v255_v41, %v8140_v42 }
 0x105   : > { %7072 = vmatpush3.bf16.msra.mxu1 %v7712_v44  ;;  %v7760_v44 = vld [vmem:[%s8102_s25 + $0x830] sm:$0xff]  }
 0x106   : > { %7073 = vmatprep.subr.bf16.mxu1 %v7714_v46  ;;  %v1487_v46 = vcombine.high %v255_v41, %v255_v41 }
 0x107   : > { %7052 = vmatpush3.bf16.msra.mxu0 %v7715_v47 }
 0x108   : > { %7053 = vmatprep.subr.bf16.mxu0 %v7717_v49 }
 0x109   : > { %7074 = vmatpush3.bf16.msra.mxu1 %v7716_v48 }
 0x10a   : > { %7075 = vmatprep.subr.bf16.mxu1 %v7718_v50 }
 0x10b   : > { %7054 = vmatpush3.bf16.msra.mxu0 %v7719_v51 }
 0x10c   : > { %7055 = vmatprep.subr.bf16.mxu0 %v7721_v53  ;;  %v7762_v53 = vld [vmem:[%s8102_s25 + $0x878] sm:$0xff]  }
 0x10d   : > { %7076 = vmatpush3.bf16.msra.mxu1 %v7720_v52  ;;  %v6753_v58 = vpop.f32.mrb[0].mxu0  ;;  %v7761_v52 = vld [vmem:[%s8102_s25 + $0x8b0] sm:$0xff]  }
 0x10e   : > { %v6754_v60 = vpop.f32.mrb[1].mxu0  ;;  %7077 = vmatprep.subr.bf16.mxu1 %v7722_v54  ;;  %v6775_v62 = vpop.f32.mrb[0].mxu1  ;;  %v1502_v54 = vcombine.high %v1494_v45, %v1494_v45 }
 0x10f   : > { %v6755_v63 = vadd.f32 %v6754_v60, %v6753_v58  ;;  %v6756_v0 = vpop.f32.mrb[2].mxu0  ;;  %7056 = vmatpush3.bf16.msra.mxu0 %v7723_v55  ;;  %v6776_v3 = vpop.f32.mrb[1].mxu1  ;;  %v8445_v55 = vrot.slane %v1487_v46, %v8140_v42 }
 0x110   : > { %v6757_v4 = vpop.f32.mrb[3].mxu0  ;;  %7057 = vmatprep.subr.bf16.mxu0 %v7725_v57  ;;  %v6777_v5 = vadd.f32 %v6776_v3, %v6775_v62  ;;  %v6778_v6 = vpop.f32.mrb[2].mxu1  ;;  %v1524_v62 = vrot.slane %v1502_v54, %v8140_v42  ;;  %v1510_v3 = vrot.slane %v1494_v45, %v8140_v42  ;;  %v7800_v54 = vld [vmem:[%s8102_s25 + $0xac0] sm:$0xff]  }
 0x111   : > { %7078 = vmatpush3.bf16.msra.mxu1 %v7724_v56  ;;  %v6779_v8 = vpop.f32.mrb[3].mxu1  ;;  %v7766_v4 = vld [vmem:[%s8102_s25 + $0x940] sm:$0xff]  }
 0x112   : > { %7079 = vmatprep.subr.bf16.mxu1 %v7726_v59  ;;  %v8408_v10 = vadd.f32 %v6777_v5, %v6755_v63  ;;  %v7763_v59 = vld [vmem:[%s8102_s25 + $0x8f8] sm:$0xff]   ;;  %v1503_v63 = vcombine.high %v8445_v55, %v8445_v55  ;;  %v7767_v5 = vld [vmem:[%s8102_s25 + $0x9c0] sm:$0xff]  }
 0x113   : > { %7058 = vmatpush3.bf16.msra.mxu0 %v7727_v61  ;;  %v7764_v61 = vld [vmem:[%s8102_s25 + $0x838] sm:$0xff]   ;;  %v7769_v8 = vld [vmem:[%s8102_s25 + $0x980] sm:$0xff]  }
 0x114   : > { %7059 = vmatprep.subr.bf16.mxu0 %v7729_v2  ;;  %v1534_v2 = vcombine.high %v1524_v62, %v1524_v62  ;;  %v1531_v6 = vrot.slane %v1503_v63, %v8140_v42  ;;  %v7808_v63 = vld [vmem:[%s8102_s25 + $0xad0] sm:$0xff]  }
 0x115   : > { %7080 = vmatpush3.bf16.msra.mxu1 %v7728_v1  ;;  %v7765_v1 = vld [vmem:[%s8102_s25 + $0x8b8] sm:$0xff]  }
 0x116   : > { %7081 = vmatprep.subr.bf16.mxu1 %v7730_v7  ;;  %v7768_v7 = vld [vmem:[%s8102_s25 + $0x900] sm:$0xff]  }
 0x117   : > { %7060 = vmatpush3.bf16.msra.mxu0 %v7731_v9  ;;  %v1532_v9 = vcombine.high %v1510_v3, %v1510_v3 }
 0x118   : > { %7089 = vmatprep.subr.bf16.mxu0 %v7734_v13  ;;  %v7772_v13 = vld [vmem:[%s8102_s25 + $0x908] sm:$0xff]  }
 0x119   : > { %7082 = vmatpush3.bf16.msra.mxu1 %v7732_v11  ;;  %v7771_v11 = vld [vmem:[%s8102_s25 + $0x9c8] sm:$0xff]  }
 0x11a   : > { %5412 = vmatmul.mubr.bf16.vlgmr.msra.gmra.mrb[28].mxu0 %v1468_v12  ;;  %7111 = vmatprep.subr.bf16.mxu1 %v7735_v14  ;;  %v1535_v12 = vcombine.high %v1531_v6, %v1531_v6  ;;  %v7773_v14 = vld [vmem:[%s8102_s25 + $0x988] sm:$0xff]  }
 0x11b   : > { %7090 = vmatpush3.bf16.msra.mxu0 %v7736_v15  ;;  %5491 = vmatprep.mubr.bf16.mxu0 %v1524_v62  ;;  %v7774_v15 = vld [vmem:[%s8102_s25 + $0x950] sm:$0xff]  }
 0x11c   : > { %5452 = vmatmul.mubr.bf16.vlgmr.msra.gmra.mrb[28].mxu1 %v1484_v17  ;;  %7091 = vmatprep.subr.bf16.mxu0 %v7738_v18  ;;  %v7776_v17 = vld [vmem:[%s8102_s25 + $0x910] sm:$0xff]  }
 0x11d   : > { %7112 = vmatpush3.bf16.msra.mxu1 %v7737_v16  ;;  %5531 = vmatprep.mubr.bf16.mxu1 %v1534_v2  ;;  %v7775_v16 = vld [vmem:[%s8102_s25 + $0x9d0] sm:$0xff]   ;;  %v7811_v2 = vld [vmem:[%s8102_s25 + $0xa58] sm:$0xff]  }
 0x11e   : > { %7113 = vmatprep.subr.bf16.mxu1 %v7739_v19  ;;  %v7777_v18 = vld [vmem:[%s8102_s25 + $0x990] sm:$0xff]   ;;  %v7778_v19 = vld [vmem:[%s8102_s25 + $0x958] sm:$0xff]  }
 0x11f   : > { %7092 = vmatpush3.bf16.msra.mxu0 %v7740_v20  ;;  %v7779_v20 = vld [vmem:[%s8102_s25 + $0x9d8] sm:$0xff]   ;;  %v7807_v62 = vld [vmem:[%s8102_s25 + $0xa50] sm:$0xff]  }
 0x120   : > { %7093 = vmatprep.subr.bf16.mxu0 %v7742_v22  ;;  %v7781_v22 = vld [vmem:[%s8102_s25 + $0x998] sm:$0xff]  }
 0x121   : > { %7114 = vmatpush3.bf16.msra.mxu1 %v7741_v21  ;;  %v7780_v21 = vld [vmem:[%s8102_s25 + $0x918] sm:$0xff]  }
 0x122   : > { %7115 = vmatprep.subr.bf16.mxu1 %v7743_v23  ;;  %v7782_v23 = vld [vmem:[%s8102_s25 + $0x960] sm:$0xff]  }
 0x123   : > { %7094 = vmatpush3.bf16.msra.mxu0 %v7744_v24  ;;  %v7783_v24 = vld [vmem:[%s8102_s25 + $0x9e0] sm:$0xff]  }
 0x124   : > { %7095 = vmatprep.subr.bf16.mxu0 %v7746_v26  ;;  %v7785_v26 = vld [vmem:[%s8102_s25 + $0x9a0] sm:$0xff]  }
 0x125   : > { %7116 = vmatpush3.bf16.msra.mxu1 %v7745_v25  ;;  %v7784_v25 = vld [vmem:[%s8102_s25 + $0x920] sm:$0xff]  }
 0x126   : > { %7117 = vmatprep.subr.bf16.mxu1 %v7747_v27  ;;  %v7786_v27 = vld [vmem:[%s8102_s25 + $0x968] sm:$0xff]  }
 0x127   : > { %7096 = vmatpush3.bf16.msra.mxu0 %v7748_v28  ;;  %v7787_v28 = vld [vmem:[%s8102_s25 + $0x9e8] sm:$0xff]  }
 0x128   : > { %7097 = vmatprep.subr.bf16.mxu0 %v7750_v30  ;;  %v7789_v30 = vld [vmem:[%s8102_s25 + $0x9a8] sm:$0xff]  }
 0x129   : > { %7118 = vmatpush3.bf16.msra.mxu1 %v7749_v29  ;;  %v7788_v29 = vld [vmem:[%s8102_s25 + $0x928] sm:$0xff]  }
 0x12a   : > { %7119 = vmatprep.subr.bf16.mxu1 %v7751_v31  ;;  %v7790_v31 = vld [vmem:[%s8102_s25 + $0x970] sm:$0xff]  }
 0x12b   : > { %7098 = vmatpush3.bf16.msra.mxu0 %v7752_v32 }
 0x12c   : > { %7099 = vmatprep.subr.bf16.mxu0 %v7754_v34 }
 0x12d   : > { %7120 = vmatpush3.bf16.msra.mxu1 %v7753_v33  ;;  %v6797_v39 = vpop.f32.mrb[4].mxu0  ;;  %v7791_v33 = vld [vmem:[%s8102_s25 + $0x9f0] sm:$0xff]  }
 0x12e   : > { %v6798_v43 = vpop.f32.mrb[5].mxu0  ;;  %7121 = vmatprep.subr.bf16.mxu1 %v7755_v35  ;;  %v6819_v47 = vpop.f32.mrb[4].mxu1  ;;  %v7792_v35 = vld [vmem:[%s8102_s25 + $0x930] sm:$0xff]  }
 0x12f   : > { %v6799_v48 = vadd.f32 %v6798_v43, %v6797_v39  ;;  %v6800_v49 = vpop.f32.mrb[6].mxu0  ;;  %7100 = vmatpush3.bf16.msra.mxu0 %v7756_v36  ;;  %v6820_v50 = vpop.f32.mrb[5].mxu1  ;;  %v7793_v39 = vld [vmem:[%s8102_s25 + $0x9b0] sm:$0xff]  }
 0x130   : > { %v6801_v51 = vpop.f32.mrb[7].mxu0  ;;  %7101 = vmatprep.subr.bf16.mxu0 %v7758_v38  ;;  %v6821_v57 = vadd.f32 %v6820_v50, %v6819_v47  ;;  %v6822_v58 = vpop.f32.mrb[6].mxu1  ;;  %v7795_v47 = vld [vmem:[%s8102_s25 + $0x9f8] sm:$0xff]  }
 0x131   : > { %v4934_v56 = vadd.f32 %v6799_v48, %v8408_v10  ;;  %7122 = vmatpush3.bf16.msra.mxu1 %v7757_v37  ;;  %v6823_v60 = vpop.f32.mrb[7].mxu1  ;;  %v7770_v10 = vld [vmem:[%s8102_s25 + $0x948] sm:$0xff]   ;;  %v7796_v49 = vld [vmem:[%s8102_s25 + $0x938] sm:$0xff]  }
 0x132   : > { %7123 = vmatprep.subr.bf16.mxu1 %v7759_v40  ;;  %v7794_v40 = vld [vmem:[%s8102_s25 + $0x978] sm:$0xff]   ;;  %v7804_v60 = vld [vmem:[%s8102_s25 + $0xac8] sm:$0xff]  }
 0x133   : > { %v8453_v0 = vadd.f32 %v6821_v57, %v4934_v56  ;;  %7102 = vmatpush3.bf16.msra.mxu0 %v7760_v44  ;;  %v7797_v51 = vld [vmem:[%s8102_s25 + $0x9b8] sm:$0xff]   ;;  %v7801_v56 = vld [vmem:[%s8102_s25 + $0xa00] sm:$0xff]  }
 0x134   : > { %7103 = vmatprep.subr.bf16.mxu0 %v7762_v53  ;;  %v7799_v53 = vld [vmem:[%s8102_s25 + $0xa40] sm:$0xff]  }
 0x135   : > { %7124 = vmatpush3.bf16.msra.mxu1 %v7761_v52  ;;  %v1517_v52 = vrot.slane %v8445_v55, %v8140_v42  ;;  %v7802_v57 = vld [vmem:[%s8102_s25 + $0xa80] sm:$0xff]   ;;  %v7805_v55 = vld [vmem:[%s8102_s25 + $0xa08] sm:$0xff]  }
 0x136   : > { %7125 = vmatprep.subr.bf16.mxu1 %v7763_v59  ;;  %v7803_v59 = vld [vmem:[%s8102_s25 + $0xa48] sm:$0xff]  }
 0x137   : > { %7104 = vmatpush3.bf16.msra.mxu0 %v7764_v61  ;;  %v1533_v58 = vcombine.high %v1517_v52, %v1517_v52  ;;  %v7806_v61 = vld [vmem:[%s8102_s25 + $0xa88] sm:$0xff]  }
 0x138   : > { %7133 = vmatprep.subr.bf16.mxu0 %v7766_v4  ;;  %v7813_v4 = vld [vmem:[%s8102_s25 + $0xa18] sm:$0xff]  }
 0x139   : > { %7126 = vmatpush3.bf16.msra.mxu1 %v7765_v1  ;;  %v7810_v1 = vld [vmem:[%s8102_s25 + $0xa90] sm:$0xff]  }
 0x13a   : > { %5492 = vmatmul.mubr.bf16.vlgmr.msra.gmra.mrb[32].mxu0 %v1510_v3  ;;  %7155 = vmatprep.subr.bf16.mxu1 %v7767_v5  ;;  %v7812_v3 = vld [vmem:[%s8102_s25 + $0xad8] sm:$0xff]  }
 0x13b   : > { %7134 = vmatpush3.bf16.msra.mxu0 %v7768_v7  ;;  %5571 = vmatprep.mubr.bf16.mxu0 %v1531_v6  ;;  %v7814_v5 = vld [vmem:[%s8102_s25 + $0xa98] sm:$0xff]   ;;  %v7815_v6 = vld [vmem:[%s8102_s25 + $0xa60] sm:$0xff]  }
 0x13c   : > { %5532 = vmatmul.mubr.bf16.vlgmr.msra.gmra.mrb[32].mxu1 %v1532_v9  ;;  %7135 = vmatprep.subr.bf16.mxu0 %v7770_v10  ;;  %v7816_v7 = vld [vmem:[%s8102_s25 + $0xae0] sm:$0xff]   ;;  %v7819_v10 = vld [vmem:[%s8102_s25 + $0xa68] sm:$0xff]  }
 0x13d   : > { %7156 = vmatpush3.bf16.msra.mxu1 %v7769_v8  ;;  %5611 = vmatprep.mubr.bf16.mxu1 %v1535_v12  ;;  %v7817_v8 = vld [vmem:[%s8102_s25 + $0xa20] sm:$0xff]   ;;  %v7821_v12 = vld [vmem:[%s8102_s25 + $0xa28] sm:$0xff]  }
 0x13e   : > { %7157 = vmatprep.subr.bf16.mxu1 %v7771_v11  ;;  %v7818_v9 = vld [vmem:[%s8102_s25 + $0xaa0] sm:$0xff]   ;;  %v7820_v11 = vld [vmem:[%s8102_s25 + $0xae8] sm:$0xff]  }
 0x13f   : > { %7136 = vmatpush3.bf16.msra.mxu0 %v7772_v13  ;;  %v7822_v13 = vld [vmem:[%s8102_s25 + $0xaa8] sm:$0xff]  }
 0x140   : > { %7137 = vmatprep.subr.bf16.mxu0 %v7774_v15 }
 0x141   : > { %7158 = vmatpush3.bf16.msra.mxu1 %v7773_v14  ;;  %v7823_v14 = vld [vmem:[%s8102_s25 + $0xa70] sm:$0xff]  }
 0x142   : > { %7159 = vmatprep.subr.bf16.mxu1 %v7775_v16  ;;  %v7824_v16 = vld [vmem:[%s8102_s25 + $0xaf0] sm:$0xff]  }
 0x143   : > { %7138 = vmatpush3.bf16.msra.mxu0 %v7776_v17 }
 0x144   : > { %7139 = vmatprep.subr.bf16.mxu0 %v7778_v19  ;;  %v256_v19 = vld [vmem:[%s8097_s21 + $0x28] sm:$0xff] }
 0x145   : > { %7160 = vmatpush3.bf16.msra.mxu1 %v7777_v18  ;;  %v7825_v18 = vld [vmem:[%s8102_s25 + $0xa30] sm:$0xff]  }
 0x146   : > { %7161 = vmatprep.subr.bf16.mxu1 %v7779_v20 }
 0x147   : > { %7140 = vmatpush3.bf16.msra.mxu0 %v7780_v21 }
 0x148   : > { %7141 = vmatprep.subr.bf16.mxu0 %v7782_v23  ;;  %v1543_v23 = vrot.slane %v256_v19, %v8140_v42 }
 0x149   : > { %7162 = vmatpush3.bf16.msra.mxu1 %v7781_v22 }
 0x14a   : > { %7163 = vmatprep.subr.bf16.mxu1 %v7783_v24  ;;  %v1536_v24 = vcombine.high %v256_v19, %v256_v19 }
 0x14b   : > { %7142 = vmatpush3.bf16.msra.mxu0 %v7784_v25 }
 0x14c   : > { %7143 = vmatprep.subr.bf16.mxu0 %v7786_v27  ;;  %v7826_v27 = vld [vmem:[%s8102_s25 + $0xab0] sm:$0xff]  }
 0x14d   : > { %7164 = vmatpush3.bf16.msra.mxu1 %v7785_v26  ;;  %v6841_v32 = vpop.f32.mrb[8].mxu0 }
 0x14e   : > { %v6842_v34 = vpop.f32.mrb[9].mxu0  ;;  %7165 = vmatprep.subr.bf16.mxu1 %v7787_v28  ;;  %v7827_v28 = vld [vmem:[%s8102_s25 + $0xa78] sm:$0xff]  }
 0x14f   : > { %v6863_v36 = vpop.f32.mrb[8].mxu1  ;;  %v6843_v37 = vadd.f32 %v6842_v34, %v6841_v32  ;;  %v6844_v38 = vpop.f32.mrb[10].mxu0  ;;  %7144 = vmatpush3.bf16.msra.mxu0 %v7788_v29  ;;  %v7828_v32 = vld [vmem:[%s8102_s25 + $0xaf8] sm:$0xff]  }
 0x150   : > { %v6864_v41 = vpop.f32.mrb[9].mxu1  ;;  %v6845_v43 = vpop.f32.mrb[11].mxu0  ;;  %7145 = vmatprep.subr.bf16.mxu0 %v7790_v31  ;;  %v7830_v38 = vld [vmem:[%s8102_s25 + $0xab8] sm:$0xff]  }
 0x151   : > { %v5014_v44 = vadd.f32 %v6843_v37, %v8453_v0  ;;  %v6865_v45 = vadd.f32 %v6864_v41, %v6863_v36  ;;  %v6866_v46 = vpop.f32.mrb[10].mxu1  ;;  %7166 = vmatpush3.bf16.msra.mxu1 %v7789_v30  ;;  %v7809_v0 = vld [vmem:[%s8102_s25 + $0xa10] sm:$0xff]   ;;  %v8530_v36 = vrot.slane %v1536_v24, %v8140_v42  ;;  %v7831_v41 = vld [vmem:[%s8102_s25 + $0xb40] sm:$0xff]   ;;  %v7861_v24 = vld [vmem:[%s8102_s25 + $0xb38] sm:$0xff]  }
 0x152   : > { %v6867_v48 = vpop.f32.mrb[11].mxu1  ;;  %7167 = vmatprep.subr.bf16.mxu1 %v7791_v33  ;;  %v1551_v33 = vcombine.high %v1543_v23, %v1543_v23  ;;  %v7833_v46 = vld [vmem:[%s8102_s25 + $0xb00] sm:$0xff]  }
 0x153   : > { %v8490_v50 = vadd.f32 %v6865_v45, %v5014_v44  ;;  %7146 = vmatpush3.bf16.msra.mxu0 %v7792_v35  ;;  %v7829_v35 = vld [vmem:[%s8102_s25 + $0xa38] sm:$0xff]   ;;  %v1552_v43 = vcombine.high %v8530_v36, %v8530_v36  ;;  %v7832_v45 = vld [vmem:[%s8102_s25 + $0xbc0] sm:$0xff]  }
 0x154   : > { %7147 = vmatprep.subr.bf16.mxu0 %v7794_v40  ;;  %v1559_v40 = vrot.slane %v1543_v23, %v8140_v42  ;;  %v7834_v48 = vld [vmem:[%s8102_s25 + $0xb80] sm:$0xff]  }
 0x155   : > { %7168 = vmatpush3.bf16.msra.mxu1 %v7793_v39  ;;  %v1573_v39 = vrot.slane %v1551_v33, %v8140_v42  ;;  %v7868_v33 = vld [vmem:[%s8102_s25 + $0xc48] sm:$0xff]  }
 0x156   : > { %7169 = vmatprep.subr.bf16.mxu1 %v7795_v47  ;;  %v1580_v47 = vrot.slane %v1552_v43, %v8140_v42  ;;  %v7877_v43 = vld [vmem:[%s8102_s25 + $0xcd8] sm:$0xff]  }
 0x157   : > { %7148 = vmatpush3.bf16.msra.mxu0 %v7796_v49  ;;  %v1583_v44 = vcombine.high %v1573_v39, %v1573_v39  ;;  %v1581_v49 = vcombine.high %v1559_v40, %v1559_v40 }
 0x158   : > { %7177 = vmatprep.subr.bf16.mxu0 %v7799_v53  ;;  %v7837_v53 = vld [vmem:[%s8102_s25 + $0xb08] sm:$0xff]  }
 0x159   : > { %7170 = vmatpush3.bf16.msra.mxu1 %v7797_v51  ;;  %v7836_v51 = vld [vmem:[%s8102_s25 + $0xbc8] sm:$0xff]  }
 0x15a   : > { %5572 = vmatmul.mubr.bf16.vlgmr.msra.gmra.mrb[36].mxu0 %v1517_v52  ;;  %7199 = vmatprep.subr.bf16.mxu1 %v7800_v54  ;;  %v1584_v52 = vcombine.high %v1580_v47, %v1580_v47  ;;  %v7838_v54 = vld [vmem:[%s8102_s25 + $0xb88] sm:$0xff]  }
 0x15b   : > { %7178 = vmatpush3.bf16.msra.mxu0 %v7801_v56  ;;  %5651 = vmatprep.mubr.bf16.mxu0 %v1573_v39  ;;  %v7839_v56 = vld [vmem:[%s8102_s25 + $0xb50] sm:$0xff]  }
 0x15c   : > { %5612 = vmatmul.mubr.bf16.vlgmr.msra.gmra.mrb[36].mxu1 %v1533_v58  ;;  %7179 = vmatprep.subr.bf16.mxu0 %v7803_v59  ;;  %v7841_v58 = vld [vmem:[%s8102_s25 + $0xb10] sm:$0xff]  }
 0x15d   : > { %7200 = vmatpush3.bf16.msra.mxu1 %v7802_v57  ;;  %5691 = vmatprep.mubr.bf16.mxu1 %v1583_v44  ;;  %v7840_v57 = vld [vmem:[%s8102_s25 + $0xbd0] sm:$0xff]   ;;  %v7878_v44 = vld [vmem:[%s8102_s25 + $0xc18] sm:$0xff]  }
 0x15e   : > { %7201 = vmatprep.subr.bf16.mxu1 %v7804_v60  ;;  %v7842_v59 = vld [vmem:[%s8102_s25 + $0xb90] sm:$0xff]   ;;  %v7843_v60 = vld [vmem:[%s8102_s25 + $0xb58] sm:$0xff]  }
 0x15f   : > { %7180 = vmatpush3.bf16.msra.mxu0 %v7805_v55  ;;  %v7844_v55 = vld [vmem:[%s8102_s25 + $0xbd8] sm:$0xff]   ;;  %v7874_v39 = vld [vmem:[%s8102_s25 + $0xc10] sm:$0xff]  }
 0x160   : > { %7181 = vmatprep.subr.bf16.mxu0 %v7807_v62  ;;  %v7846_v62 = vld [vmem:[%s8102_s25 + $0xb98] sm:$0xff]  }
 0x161   : > { %7202 = vmatpush3.bf16.msra.mxu1 %v7806_v61  ;;  %v7845_v61 = vld [vmem:[%s8102_s25 + $0xb18] sm:$0xff]  }
 0x162   : > { %7203 = vmatprep.subr.bf16.mxu1 %v7808_v63  ;;  %v7847_v63 = vld [vmem:[%s8102_s25 + $0xb60] sm:$0xff]  }
 0x163   : > { %7182 = vmatpush3.bf16.msra.mxu0 %v7809_v0  ;;  %v7848_v0 = vld [vmem:[%s8102_s25 + $0xbe0] sm:$0xff]  }
 0x164   : > { %7183 = vmatprep.subr.bf16.mxu0 %v7811_v2  ;;  %v7850_v2 = vld [vmem:[%s8102_s25 + $0xba0] sm:$0xff]  }
 0x165   : > { %7204 = vmatpush3.bf16.msra.mxu1 %v7810_v1  ;;  %v7849_v1 = vld [vmem:[%s8102_s25 + $0xb20] sm:$0xff]  }
 0x166   : > { %7205 = vmatprep.subr.bf16.mxu1 %v7812_v3  ;;  %v7851_v3 = vld [vmem:[%s8102_s25 + $0xb68] sm:$0xff]  }
 0x167   : > { %7184 = vmatpush3.bf16.msra.mxu0 %v7813_v4  ;;  %v7852_v4 = vld [vmem:[%s8102_s25 + $0xbe8] sm:$0xff]  }
 0x168   : > { %7185 = vmatprep.subr.bf16.mxu0 %v7815_v6  ;;  %v7854_v6 = vld [vmem:[%s8102_s25 + $0xba8] sm:$0xff]  }
 0x169   : > { %7206 = vmatpush3.bf16.msra.mxu1 %v7814_v5  ;;  %v7853_v5 = vld [vmem:[%s8102_s25 + $0xb28] sm:$0xff]  }
 0x16a   : > { %7207 = vmatprep.subr.bf16.mxu1 %v7816_v7  ;;  %v7855_v7 = vld [vmem:[%s8102_s25 + $0xb70] sm:$0xff]  }
 0x16b   : > { %7186 = vmatpush3.bf16.msra.mxu0 %v7817_v8 }
 0x16c   : > { %7187 = vmatprep.subr.bf16.mxu0 %v7819_v10 }
 0x16d   : > { %7208 = vmatpush3.bf16.msra.mxu1 %v7818_v9  ;;  %v6885_v15 = vpop.f32.mrb[12].mxu0  ;;  %v7856_v9 = vld [vmem:[%s8102_s25 + $0xbf0] sm:$0xff]  }
 0x16e   : > { %v6886_v17 = vpop.f32.mrb[13].mxu0  ;;  %7209 = vmatprep.subr.bf16.mxu1 %v7820_v11  ;;  %v7857_v11 = vld [vmem:[%s8102_s25 + $0xb30] sm:$0xff]  }
 0x16f   : > { %v6907_v20 = vpop.f32.mrb[12].mxu1  ;;  %v6887_v21 = vadd.f32 %v6886_v17, %v6885_v15  ;;  %v6888_v22 = vpop.f32.mrb[14].mxu0  ;;  %7188 = vmatpush3.bf16.msra.mxu0 %v7821_v12  ;;  %v7858_v15 = vld [vmem:[%s8102_s25 + $0xbb0] sm:$0xff]  }
 0x170   : > { %v6908_v25 = vpop.f32.mrb[13].mxu1  ;;  %v6889_v26 = vpop.f32.mrb[15].mxu0  ;;  %7189 = vmatprep.subr.bf16.mxu0 %v7823_v14  ;;  %v7860_v22 = vld [vmem:[%s8102_s25 + $0xbf8] sm:$0xff]  }
 0x171   : > { %v5094_v29 = vadd.f32 %v6887_v21, %v8490_v50  ;;  %v6909_v30 = vadd.f32 %v6908_v25, %v6907_v20  ;;  %v6910_v31 = vpop.f32.mrb[14].mxu1  ;;  %7210 = vmatpush3.bf16.msra.mxu1 %v7822_v13  ;;  %v7835_v50 = vld [vmem:[%s8102_s25 + $0xb48] sm:$0xff]   ;;  %v7862_v26 = vld [vmem:[%s8102_s25 + $0xbb8] sm:$0xff]  }
 0x172   : > { %v6911_v34 = vpop.f32.mrb[15].mxu1  ;;  %7211 = vmatprep.subr.bf16.mxu1 %v7824_v16  ;;  %v7859_v16 = vld [vmem:[%s8102_s25 + $0xb78] sm:$0xff]   ;;  %v7867_v31 = vld [vmem:[%s8102_s25 + $0xc80] sm:$0xff]  }
 0x173   : > { %v8532_v37 = vadd.f32 %v6909_v30, %v5094_v29  ;;  %7190 = vmatpush3.bf16.msra.mxu0 %v7825_v18  ;;  %v7865_v29 = vld [vmem:[%s8102_s25 + $0xcc0] sm:$0xff]   ;;  %v7869_v34 = vld [vmem:[%s8102_s25 + $0xcc8] sm:$0xff]  }
 0x174   : > { %7191 = vmatprep.subr.bf16.mxu0 %v7827_v28  ;;  %v7864_v28 = vld [vmem:[%s8102_s25 + $0xc40] sm:$0xff]  }
 0x175   : > { %7212 = vmatpush3.bf16.msra.mxu1 %v7826_v27  ;;  %v1566_v27 = vrot.slane %v8530_v36, %v8140_v42  ;;  %v7866_v30 = vld [vmem:[%s8102_s25 + $0xc00] sm:$0xff]   ;;  %v7871_v36 = vld [vmem:[%s8102_s25 + $0xc88] sm:$0xff]  }
 0x176   : > { %7213 = vmatprep.subr.bf16.mxu1 %v7828_v32 }
 0x177   : > { %7192 = vmatpush3.bf16.msra.mxu0 %v7829_v35  ;;  %v1582_v32 = vcombine.high %v1566_v27, %v1566_v27  ;;  %v7870_v35 = vld [vmem:[%s8102_s25 + $0xc08] sm:$0xff]  }
 0x178   : > { %7221 = vmatprep.subr.bf16.mxu0 %v7831_v41  ;;  %v7876_v41 = vld [vmem:[%s8102_s25 + $0xc58] sm:$0xff]  }
 0x179   : > { %7214 = vmatpush3.bf16.msra.mxu1 %v7830_v38  ;;  %v7873_v38 = vld [vmem:[%s8102_s25 + $0xcd0] sm:$0xff]  }
 0x17a   : > { %5652 = vmatmul.mubr.bf16.vlgmr.msra.gmra.mrb[40].mxu0 %v1559_v40  ;;  %7243 = vmatprep.subr.bf16.mxu1 %v7832_v45  ;;  %v7875_v40 = vld [vmem:[%s8102_s25 + $0xc90] sm:$0xff]   ;;  %v7879_v45 = vld [vmem:[%s8102_s25 + $0xc98] sm:$0xff]  }
 0x17b   : > { %7222 = vmatpush3.bf16.msra.mxu0 %v7833_v46  ;;  %5731 = vmatprep.mubr.bf16.mxu0 %v1580_v47  ;;  %v7880_v46 = vld [vmem:[%s8102_s25 + $0xc60] sm:$0xff]  }
 0x17c   : > { %5692 = vmatmul.mubr.bf16.vlgmr.msra.gmra.mrb[40].mxu1 %v1581_v49  ;;  %7223 = vmatprep.subr.bf16.mxu0 %v7835_v50  ;;  %v7881_v47 = vld [vmem:[%s8102_s25 + $0xce0] sm:$0xff]   ;;  %v7884_v50 = vld [vmem:[%s8102_s25 + $0xc68] sm:$0xff]  }
 0x17d   : > { %7244 = vmatpush3.bf16.msra.mxu1 %v7834_v48  ;;  %5771 = vmatprep.mubr.bf16.mxu1 %v1584_v52  ;;  %v7882_v48 = vld [vmem:[%s8102_s25 + $0xc20] sm:$0xff]   ;;  %v7886_v52 = vld [vmem:[%s8102_s25 + $0xc28] sm:$0xff]  }
 0x17e   : > { %7245 = vmatprep.subr.bf16.mxu1 %v7836_v51  ;;  %v7883_v49 = vld [vmem:[%s8102_s25 + $0xca0] sm:$0xff]   ;;  %v7885_v51 = vld [vmem:[%s8102_s25 + $0xce8] sm:$0xff]  }
 0x17f   : > { %7224 = vmatpush3.bf16.msra.mxu0 %v7837_v53  ;;  %v7887_v53 = vld [vmem:[%s8102_s25 + $0xca8] sm:$0xff]  }
 0x180   : > { %7225 = vmatprep.subr.bf16.mxu0 %v7839_v56 }
 0x181   : > { %7246 = vmatpush3.bf16.msra.mxu1 %v7838_v54  ;;  %v7888_v54 = vld [vmem:[%s8102_s25 + $0xc70] sm:$0xff]  }
 0x182   : > { %7247 = vmatprep.subr.bf16.mxu1 %v7840_v57  ;;  %v7889_v57 = vld [vmem:[%s8102_s25 + $0xcf0] sm:$0xff]  }
 0x183   : > { %7226 = vmatpush3.bf16.msra.mxu0 %v7841_v58 }
 0x184   : > { %7227 = vmatprep.subr.bf16.mxu0 %v7843_v60 }
 0x185   : > { %7248 = vmatpush3.bf16.msra.mxu1 %v7842_v59  ;;  %v7890_v59 = vld [vmem:[%s8102_s25 + $0xc30] sm:$0xff]  }
 0x186   : > { %7249 = vmatprep.subr.bf16.mxu1 %v7844_v55 }
 0x187   : > { %7228 = vmatpush3.bf16.msra.mxu0 %v7845_v61 }
 0x188   : > { %7229 = vmatprep.subr.bf16.mxu0 %v7847_v63  ;;  %v7892_v63 = vld [vmem:[%s8102_s25 + $0xc78] sm:$0xff]  }
 0x189   : > { %7250 = vmatpush3.bf16.msra.mxu1 %v7846_v62  ;;  %v7891_v62 = vld [vmem:[%s8102_s25 + $0xcb0] sm:$0xff]  }
 0x18a   : > { %7251 = vmatprep.subr.bf16.mxu1 %v7848_v0  ;;  %v257_v0 = vld [vmem:[%s8097_s21 + $0x30] sm:$0xff] }
 0x18b   : > { %7230 = vmatpush3.bf16.msra.mxu0 %v7849_v1 }
 0x18c   : > { %7231 = vmatprep.subr.bf16.mxu0 %v7851_v3  ;;  %v1592_v3 = vrot.slane %v257_v0, %v8140_v42 }
 0x18d   : > { %7252 = vmatpush3.bf16.msra.mxu1 %v7850_v2  ;;  %v6929_v8 = vpop.f32.mrb[16].mxu0 }
 0x18e   : > { %v6930_v10 = vpop.f32.mrb[17].mxu0  ;;  %7253 = vmatprep.subr.bf16.mxu1 %v7852_v4  ;;  %v1585_v4 = vcombine.high %v257_v0, %v257_v0  ;;  %v7926_v0 = vld [vmem:[%s8102_s25 + $0xd38] sm:$0xff]  }
 0x18f   : > { %v6951_v12 = vpop.f32.mrb[16].mxu1  ;;  %v6931_v13 = vadd.f32 %v6930_v10, %v6929_v8  ;;  %v6932_v14 = vpop.f32.mrb[18].mxu0  ;;  %7232 = vmatpush3.bf16.msra.mxu0 %v7853_v5  ;;  %v7893_v8 = vld [vmem:[%s8102_s25 + $0xcf8] sm:$0xff]  }
 0x190   : > { %v6952_v17 = vpop.f32.mrb[17].mxu1  ;;  %v6933_v18 = vpop.f32.mrb[19].mxu0  ;;  %7233 = vmatprep.subr.bf16.mxu0 %v7855_v7  ;;  %v7894_v10 = vld [vmem:[%s8102_s25 + $0xc38] sm:$0xff]  }
 0x191   : > { %v5174_v19 = vadd.f32 %v6931_v13, %v8532_v37  ;;  %v6953_v20 = vadd.f32 %v6952_v17, %v6951_v12  ;;  %v6954_v21 = vpop.f32.mrb[18].mxu1  ;;  %7254 = vmatpush3.bf16.msra.mxu1 %v7854_v6  ;;  %v7872_v37 = vld [vmem:[%s8102_s25 + $0xc50] sm:$0xff]   ;;  %v8612_v12 = vrot.slane %v1585_v4, %v8140_v42  ;;  %v7895_v14 = vld [vmem:[%s8102_s25 + $0xcb8] sm:$0xff]   ;;  %v7896_v17 = vld [vmem:[%s8102_s25 + $0xd40] sm:$0xff]  }
 0x192   : > { %v6955_v23 = vpop.f32.mrb[19].mxu1  ;;  %7255 = vmatprep.subr.bf16.mxu1 %v7856_v9  ;;  %v7898_v21 = vld [vmem:[%s8102_s25 + $0xd00] sm:$0xff]  }
 0x193   : > { %v8572_v25 = vadd.f32 %v6953_v20, %v5174_v19  ;;  %7234 = vmatpush3.bf16.msra.mxu0 %v7857_v11  ;;  %v1600_v11 = vcombine.high %v1592_v3, %v1592_v3  ;;  %v1601_v18 = vcombine.high %v8612_v12, %v8612_v12  ;;  %v7897_v19 = vld [vmem:[%s8102_s25 + $0xdc0] sm:$0xff]  }
 0x194   : > { %7235 = vmatprep.subr.bf16.mxu0 %v7859_v16  ;;  %v1608_v16 = vrot.slane %v1592_v3, %v8140_v42  ;;  %v7899_v23 = vld [vmem:[%s8102_s25 + $0xd80] sm:$0xff]   ;;  %v1615_v3 = vrot.slane %v8612_v12, %v8140_v42  ;;  %v7936_v12 = vld [vmem:[%s8102_s25 + $0xe88] sm:$0xff]  }
 0x195   : > { %7256 = vmatpush3.bf16.msra.mxu1 %v7858_v15  ;;  %v1622_v15 = vrot.slane %v1600_v11, %v8140_v42  ;;  %v7929_v4 = vld [vmem:[%s8102_s25 + $0xe40] sm:$0xff]   ;;  %v7935_v11 = vld [vmem:[%s8102_s25 + $0xe08] sm:$0xff]  }
 0x196   : > { %7257 = vmatprep.subr.bf16.mxu1 %v7860_v22  ;;  %v1629_v22 = vrot.slane %v1601_v18, %v8140_v42  ;;  %v7942_v18 = vld [vmem:[%s8102_s25 + $0xed8] sm:$0xff]  }
 0x197   : > { %7236 = vmatpush3.bf16.msra.mxu0 %v7861_v24  ;;  %v1632_v20 = vcombine.high %v1622_v15, %v1622_v15  ;;  %v1630_v24 = vcombine.high %v1608_v16, %v1608_v16 }
 0x198   : > { %7265 = vmatprep.subr.bf16.mxu0 %v7864_v28  ;;  %v7902_v28 = vld [vmem:[%s8102_s25 + $0xd08] sm:$0xff]  }
 0x199   : > { %7258 = vmatpush3.bf16.msra.mxu1 %v7862_v26  ;;  %v7901_v26 = vld [vmem:[%s8102_s25 + $0xdc8] sm:$0xff]  }
 0x19a   : > { %5732 = vmatmul.mubr.bf16.vlgmr.msra.gmra.mrb[44].mxu0 %v1566_v27  ;;  %7287 = vmatprep.subr.bf16.mxu1 %v7865_v29  ;;  %v1633_v27 = vcombine.high %v1629_v22, %v1629_v22  ;;  %v7903_v29 = vld [vmem:[%s8102_s25 + $0xd88] sm:$0xff]  }
 0x19b   : > { %7266 = vmatpush3.bf16.msra.mxu0 %v7866_v30  ;;  %5811 = vmatprep.mubr.bf16.mxu0 %v1622_v15  ;;  %v7904_v30 = vld [vmem:[%s8102_s25 + $0xd50] sm:$0xff]  }
 0x19c   : > { %5772 = vmatmul.mubr.bf16.vlgmr.msra.gmra.mrb[44].mxu1 %v1582_v32  ;;  %7267 = vmatprep.subr.bf16.mxu0 %v7868_v33  ;;  %v7906_v32 = vld [vmem:[%s8102_s25 + $0xd10] sm:$0xff]  }
 0x19d   : > { %7288 = vmatpush3.bf16.msra.mxu1 %v7867_v31  ;;  %5851 = vmatprep.mubr.bf16.mxu1 %v1632_v20  ;;  %v7905_v31 = vld [vmem:[%s8102_s25 + $0xdd0] sm:$0xff]   ;;  %v7944_v20 = vld [vmem:[%s8102_s25 + $0xe98] sm:$0xff]  }
 0x19e   : > { %7289 = vmatprep.subr.bf16.mxu1 %v7869_v34  ;;  %v7907_v33 = vld [vmem:[%s8102_s25 + $0xd90] sm:$0xff]   ;;  %v7908_v34 = vld [vmem:[%s8102_s25 + $0xd58] sm:$0xff]  }
 0x19f   : > { %7268 = vmatpush3.bf16.msra.mxu0 %v7870_v35  ;;  %v7909_v35 = vld [vmem:[%s8102_s25 + $0xdd8] sm:$0xff]   ;;  %v7939_v15 = vld [vmem:[%s8102_s25 + $0xe10] sm:$0xff]  }
 0x1a0   : > { %7269 = vmatprep.subr.bf16.mxu0 %v7872_v37  ;;  %v7911_v37 = vld [vmem:[%s8102_s25 + $0xd98] sm:$0xff]  }
 0x1a1   : > { %7290 = vmatpush3.bf16.msra.mxu1 %v7871_v36  ;;  %v7910_v36 = vld [vmem:[%s8102_s25 + $0xd18] sm:$0xff]  }
 0x1a2   : > { %7291 = vmatprep.subr.bf16.mxu1 %v7873_v38  ;;  %v7912_v38 = vld [vmem:[%s8102_s25 + $0xd60] sm:$0xff]  }
 0x1a3   : > { %7270 = vmatpush3.bf16.msra.mxu0 %v7874_v39  ;;  %v7913_v39 = vld [vmem:[%s8102_s25 + $0xde0] sm:$0xff]  }
 0x1a4   : > { %7271 = vmatprep.subr.bf16.mxu0 %v7876_v41  ;;  %v7915_v41 = vld [vmem:[%s8102_s25 + $0xda0] sm:$0xff]  }
 0x1a5   : > { %7292 = vmatpush3.bf16.msra.mxu1 %v7875_v40  ;;  %v7914_v40 = vld [vmem:[%s8102_s25 + $0xd20] sm:$0xff]  }
 0x1a6   : > { %7293 = vmatprep.subr.bf16.mxu1 %v7877_v43  ;;  %v7916_v43 = vld [vmem:[%s8102_s25 + $0xd68] sm:$0xff]  }
 0x1a7   : > { %7272 = vmatpush3.bf16.msra.mxu0 %v7878_v44  ;;  %v7917_v44 = vld [vmem:[%s8102_s25 + $0xde8] sm:$0xff]  }
 0x1a8   : > { %7273 = vmatprep.subr.bf16.mxu0 %v7880_v46  ;;  %v7919_v46 = vld [vmem:[%s8102_s25 + $0xda8] sm:$0xff]  }
 0x1a9   : > { %7294 = vmatpush3.bf16.msra.mxu1 %v7879_v45  ;;  %v7918_v45 = vld [vmem:[%s8102_s25 + $0xd28] sm:$0xff]  }
 0x1aa   : > { %7295 = vmatprep.subr.bf16.mxu1 %v7881_v47  ;;  %v7920_v47 = vld [vmem:[%s8102_s25 + $0xd70] sm:$0xff]  }
 0x1ab   : > { %7274 = vmatpush3.bf16.msra.mxu0 %v7882_v48 }
 0x1ac   : > { %7275 = vmatprep.subr.bf16.mxu0 %v7884_v50 }
 0x1ad   : > { %7296 = vmatpush3.bf16.msra.mxu1 %v7883_v49  ;;  %v6973_v56 = vpop.f32.mrb[20].mxu0  ;;  %v7921_v49 = vld [vmem:[%s8102_s25 + $0xdf0] sm:$0xff]  }
 0x1ae   : > { %v6974_v58 = vpop.f32.mrb[21].mxu0  ;;  %7297 = vmatprep.subr.bf16.mxu1 %v7885_v51  ;;  %v7922_v51 = vld [vmem:[%s8102_s25 + $0xd30] sm:$0xff]  }
 0x1af   : > { %v6995_v60 = vpop.f32.mrb[20].mxu1  ;;  %v6975_v55 = vadd.f32 %v6974_v58, %v6973_v56  ;;  %v6976_v61 = vpop.f32.mrb[22].mxu0  ;;  %7276 = vmatpush3.bf16.msra.mxu0 %v7886_v52  ;;  %v7923_v56 = vld [vmem:[%s8102_s25 + $0xdb0] sm:$0xff]  }
 0x1b0   : > { %v6996_v1 = vpop.f32.mrb[21].mxu1  ;;  %v6977_v2 = vpop.f32.mrb[23].mxu0  ;;  %7277 = vmatprep.subr.bf16.mxu0 %v7888_v54 }
 0x1b1   : > { %v5254_v5 = vadd.f32 %v6975_v55, %v8572_v25  ;;  %v6997_v6 = vadd.f32 %v6996_v1, %v6995_v60  ;;  %v6998_v7 = vpop.f32.mrb[22].mxu1  ;;  %7298 = vmatpush3.bf16.msra.mxu1 %v7887_v53  ;;  %v7900_v25 = vld [vmem:[%s8102_s25 + $0xd48] sm:$0xff]   ;;  %v7927_v2 = vld [vmem:[%s8102_s25 + $0xdb8] sm:$0xff]  }
 0x1b2   : > { %v6999_v9 = vpop.f32.mrb[23].mxu1  ;;  %7299 = vmatprep.subr.bf16.mxu1 %v7889_v57  ;;  %v7924_v57 = vld [vmem:[%s8102_s25 + $0xd78] sm:$0xff]   ;;  %v7932_v7 = vld [vmem:[%s8102_s25 + $0xe80] sm:$0xff]  }
 0x1b3   : > { %v8614_v13 = vadd.f32 %v6997_v6, %v5254_v5  ;;  %7278 = vmatpush3.bf16.msra.mxu0 %v7890_v59  ;;  %v7930_v5 = vld [vmem:[%s8102_s25 + $0xec0] sm:$0xff]   ;;  %v7933_v9 = vld [vmem:[%s8102_s25 + $0xe48] sm:$0xff]  }
 0x1b4   : > { %7279 = vmatprep.subr.bf16.mxu0 %v7892_v63  ;;  %v7931_v6 = vld [vmem:[%s8102_s25 + $0xe00] sm:$0xff]  }
 0x1b5   : > { %7300 = vmatpush3.bf16.msra.mxu1 %v7891_v62  ;;  %v7925_v62 = vld [vmem:[%s8102_s25 + $0xdf8] sm:$0xff]  }
 0x1b6   : > { %7301 = vmatprep.subr.bf16.mxu1 %v7893_v8  ;;  %v1631_v8 = vcombine.high %v1615_v3, %v1615_v3 }
 0x1b7   : > { %7280 = vmatpush3.bf16.msra.mxu0 %v7894_v10  ;;  %v7934_v10 = vld [vmem:[%s8102_s25 + $0xec8] sm:$0xff]  }
 0x1b8   : > { %7309 = vmatprep.subr.bf16.mxu0 %v7896_v17  ;;  %v7941_v17 = vld [vmem:[%s8102_s25 + $0xe58] sm:$0xff]  }
 0x1b9   : > { %7302 = vmatpush3.bf16.msra.mxu1 %v7895_v14  ;;  %v7938_v14 = vld [vmem:[%s8102_s25 + $0xed0] sm:$0xff]  }
 0x1ba   : > { %5812 = vmatmul.mubr.bf16.vlgmr.msra.gmra.mrb[48].mxu0 %v1608_v16  ;;  %7331 = vmatprep.subr.bf16.mxu1 %v7897_v19  ;;  %v7940_v16 = vld [vmem:[%s8102_s25 + $0xe90] sm:$0xff]   ;;  %v7943_v19 = vld [vmem:[%s8102_s25 + $0xe18] sm:$0xff]  }
 0x1bb   : > { %7310 = vmatpush3.bf16.msra.mxu0 %v7898_v21  ;;  %5891 = vmatprep.mubr.bf16.mxu0 %v1629_v22  ;;  %v7945_v21 = vld [vmem:[%s8102_s25 + $0xe60] sm:$0xff]  }
 0x1bc   : > { %5852 = vmatmul.mubr.bf16.vlgmr.msra.gmra.mrb[48].mxu1 %v1630_v24  ;;  %7311 = vmatprep.subr.bf16.mxu0 %v7900_v25  ;;  %v7946_v22 = vld [vmem:[%s8102_s25 + $0xee0] sm:$0xff]   ;;  %v7949_v25 = vld [vmem:[%s8102_s25 + $0xe68] sm:$0xff]  }
 0x1bd   : > { %7332 = vmatpush3.bf16.msra.mxu1 %v7899_v23  ;;  %5931 = vmatprep.mubr.bf16.mxu1 %v1633_v27  ;;  %v7947_v23 = vld [vmem:[%s8102_s25 + $0xe20] sm:$0xff]   ;;  %v7951_v27 = vld [vmem:[%s8102_s25 + $0xe28] sm:$0xff]  }
 0x1be   : > { %7333 = vmatprep.subr.bf16.mxu1 %v7901_v26  ;;  %v7948_v24 = vld [vmem:[%s8102_s25 + $0xea0] sm:$0xff]   ;;  %v7950_v26 = vld [vmem:[%s8102_s25 + $0xee8] sm:$0xff]  }
 0x1bf   : > { %7312 = vmatpush3.bf16.msra.mxu0 %v7902_v28  ;;  %v7952_v28 = vld [vmem:[%s8102_s25 + $0xea8] sm:$0xff]  }
 0x1c0   : > { %7313 = vmatprep.subr.bf16.mxu0 %v7904_v30 }
 0x1c1   : > { %7334 = vmatpush3.bf16.msra.mxu1 %v7903_v29  ;;  %v7953_v29 = vld [vmem:[%s8102_s25 + $0xe70] sm:$0xff]  }
 0x1c2   : > { %7335 = vmatprep.subr.bf16.mxu1 %v7905_v31  ;;  %v7954_v31 = vld [vmem:[%s8102_s25 + $0xef0] sm:$0xff]  }
 0x1c3   : > { %7314 = vmatpush3.bf16.msra.mxu0 %v7906_v32 }
 0x1c4   : > { %7315 = vmatprep.subr.bf16.mxu0 %v7908_v34 }
 0x1c5   : > { %7336 = vmatpush3.bf16.msra.mxu1 %v7907_v33  ;;  %v7955_v33 = vld [vmem:[%s8102_s25 + $0xe30] sm:$0xff]  }
 0x1c6   : > { %7337 = vmatprep.subr.bf16.mxu1 %v7909_v35 }
 0x1c7   : > { %7316 = vmatpush3.bf16.msra.mxu0 %v7910_v36 }
 0x1c8   : > { %7317 = vmatprep.subr.bf16.mxu0 %v7912_v38  ;;  %v7957_v38 = vld [vmem:[%s8102_s25 + $0xe78] sm:$0xff]  }
 0x1c9   : > { %7338 = vmatpush3.bf16.msra.mxu1 %v7911_v37  ;;  %v7956_v37 = vld [vmem:[%s8102_s25 + $0xeb0] sm:$0xff]  }
 0x1ca   : > { %7339 = vmatprep.subr.bf16.mxu1 %v7913_v39 }
 0x1cb   : > { %7318 = vmatpush3.bf16.msra.mxu0 %v7914_v40 }
 0x1cc   : > { %7319 = vmatprep.subr.bf16.mxu0 %v7916_v43 }
 0x1cd   : > { %7340 = vmatpush3.bf16.msra.mxu1 %v7915_v41  ;;  %v7017_v48 = vpop.f32.mrb[24].mxu0 }
 0x1ce   : > { %v7018_v50 = vpop.f32.mrb[25].mxu0  ;;  %7341 = vmatprep.subr.bf16.mxu1 %v7917_v44 }
 0x1cf   : > { %v7039_v52 = vpop.f32.mrb[24].mxu1  ;;  %v7019_v53 = vadd.f32 %v7018_v50, %v7017_v48  ;;  %v7020_v54 = vpop.f32.mrb[26].mxu0  ;;  %7320 = vmatpush3.bf16.msra.mxu0 %v7918_v45  ;;  %v258_v45 = vld [vmem:[%s8097_s21 + $0x38] sm:$0xff] }
 0x1d0   : > { %v7040_v58 = vpop.f32.mrb[25].mxu1  ;;  %v7021_v59 = vpop.f32.mrb[27].mxu0  ;;  %7321 = vmatprep.subr.bf16.mxu0 %v7920_v47  ;;  %v7958_v47 = vld [vmem:[%s8102_s25 + $0xef8] sm:$0xff]   ;;  %v1641_v48 = vrot.slane %v258_v45, %v8140_v42  ;;  %v7961_v54 = vld [vmem:[%s8102_s25 + $0xf40] sm:$0xff]  }
 0x1d1   : > { %v5334_v60 = vadd.f32 %v7019_v53, %v8614_v13  ;;  %v7041_v55 = vadd.f32 %v7040_v58, %v7039_v52  ;;  %v7042_v61 = vpop.f32.mrb[26].mxu1  ;;  %7342 = vmatpush3.bf16.msra.mxu1 %v7919_v46  ;;  %v7937_v13 = vld [vmem:[%s8102_s25 + $0xe50] sm:$0xff]   ;;  %v7962_v59 = vld [vmem:[%s8102_s25 + $0xfc0] sm:$0xff]  }
 0x1d2   : > { %v7043_v63 = vpop.f32.mrb[27].mxu1  ;;  %7343 = vmatprep.subr.bf16.mxu1 %v7921_v49  ;;  %v1634_v49 = vcombine.high %v258_v45, %v258_v45  ;;  %v1649_v52 = vcombine.high %v1641_v48, %v1641_v48  ;;  %v1657_v53 = vrot.slane %v1641_v48, %v8140_v42 }
 0x1d3   : > { %v8654_v1 = vadd.f32 %v7041_v55, %v5334_v60  ;;  %7322 = vmatpush3.bf16.msra.mxu0 %v7922_v51  ;;  %v7959_v51 = vld [vmem:[%s8102_s25 + $0xe38] sm:$0xff]   ;;  %v7963_v55 = vld [vmem:[%s8102_s25 + $0xf00] sm:$0xff]   ;;  %v7965_v63 = vld [vmem:[%s8102_s25 + $0xf48] sm:$0xff]  }
 0x1d4   : > { %7323 = vmatprep.subr.bf16.mxu0 %v7924_v57  ;;  %v7960_v57 = vld [vmem:[%s8102_s25 + $0xeb8] sm:$0xff]   ;;  %v1671_v58 = vrot.slane %v1649_v52, %v8140_v42 }
 0x1d5   : > { %7344 = vmatpush3.bf16.msra.mxu1 %v7923_v56  ;;  %v8698_v56 = vrot.slane %v1634_v49, %v8140_v42 }
 0x1d6   : > { %7345 = vmatprep.subr.bf16.mxu1 %v7925_v62  ;;  %v1681_v61 = vcombine.high %v1671_v58, %v1671_v58  ;;  %v1679_v62 = vcombine.high %v1657_v53, %v1657_v53 }
 0x1d7   : > { %7324 = vmatpush3.bf16.msra.mxu0 %v7926_v0  ;;  %v1650_v60 = vcombine.high %v8698_v56, %v8698_v56 }
 0x1d8   : > { %7353 = vmatprep.subr.bf16.mxu0 %v7929_v4  ;;  %v7967_v4 = vld [vmem:[%s8102_s25 + $0xf08] sm:$0xff]  }
 0x1d9   : > { %7346 = vmatpush3.bf16.msra.mxu1 %v7927_v2  ;;  %v1678_v0 = vrot.slane %v1650_v60, %v8140_v42  ;;  %v7966_v2 = vld [vmem:[%s8102_s25 + $0xfc8] sm:$0xff]  }
 0x1da   : > { %5892 = vmatmul.mubr.bf16.vlgmr.msra.gmra.mrb[52].mxu0 %v1615_v3  ;;  %7375 = vmatprep.subr.bf16.mxu1 %v7930_v5  ;;  %v7969_v5 = vld [vmem:[%s8102_s25 + $0xf50] sm:$0xff]  }
 0x1db   : > { %7354 = vmatpush3.bf16.msra.mxu0 %v7931_v6  ;;  %5971 = vmatprep.mubr.bf16.mxu0 %v1671_v58  ;;  %v1682_v3 = vcombine.high %v1678_v0, %v1678_v0  ;;  %v7968_v6 = vld [vmem:[%s8102_s25 + $0xf88] sm:$0xff]  }
 0x1dc   : > { %5932 = vmatmul.mubr.bf16.vlgmr.msra.gmra.mrb[52].mxu1 %v1631_v8  ;;  %7355 = vmatprep.subr.bf16.mxu0 %v7933_v9  ;;  %v7971_v8 = vld [vmem:[%s8102_s25 + $0xf10] sm:$0xff]   ;;  %v7973_v9 = vld [vmem:[%s8102_s25 + $0xf58] sm:$0xff]  }
 0x1dd   : > { %7376 = vmatpush3.bf16.msra.mxu1 %v7932_v7  ;;  %6011 = vmatprep.mubr.bf16.mxu1 %v1681_v61  ;;  %v7970_v7 = vld [vmem:[%s8102_s25 + $0xfd0] sm:$0xff]  }
 0x1de   : > { %7377 = vmatprep.subr.bf16.mxu1 %v7934_v10  ;;  %v7972_v10 = vld [vmem:[%s8102_s25 + $0xf90] sm:$0xff]  }
 0x1df   : > { %7356 = vmatpush3.bf16.msra.mxu0 %v7935_v11  ;;  %v7974_v11 = vld [vmem:[%s8102_s25 + $0xfd8] sm:$0xff]  }
 0x1e0   : > { %7357 = vmatprep.subr.bf16.mxu0 %v7937_v13  ;;  %v7977_v13 = vld [vmem:[%s8102_s25 + $0xf60] sm:$0xff]  }
 0x1e1   : > { %7378 = vmatpush3.bf16.msra.mxu1 %v7936_v12  ;;  %v7975_v12 = vld [vmem:[%s8102_s25 + $0xf18] sm:$0xff]  }
 0x1e2   : > { %7379 = vmatprep.subr.bf16.mxu1 %v7938_v14  ;;  %v7976_v14 = vld [vmem:[%s8102_s25 + $0xf98] sm:$0xff]  }
 0x1e3   : > { %7358 = vmatpush3.bf16.msra.mxu0 %v7939_v15  ;;  %v7978_v15 = vld [vmem:[%s8102_s25 + $0xfe0] sm:$0xff]  }
 0x1e4   : > { %7359 = vmatprep.subr.bf16.mxu0 %v7941_v17  ;;  %v7981_v17 = vld [vmem:[%s8102_s25 + $0xf68] sm:$0xff]  }
 0x1e5   : > { %7380 = vmatpush3.bf16.msra.mxu1 %v7940_v16  ;;  %v7979_v16 = vld [vmem:[%s8102_s25 + $0xf20] sm:$0xff]  }
 0x1e6   : > { %7381 = vmatprep.subr.bf16.mxu1 %v7942_v18  ;;  %v7980_v18 = vld [vmem:[%s8102_s25 + $0xfa0] sm:$0xff]  }
 0x1e7   : > { %7360 = vmatpush3.bf16.msra.mxu0 %v7943_v19  ;;  %v7982_v19 = vld [vmem:[%s8102_s25 + $0xfe8] sm:$0xff]  }
 0x1e8   : > { %7361 = vmatprep.subr.bf16.mxu0 %v7945_v21  ;;  %v7985_v21 = vld [vmem:[%s8102_s25 + $0xf70] sm:$0xff]  }
 0x1e9   : > { %7382 = vmatpush3.bf16.msra.mxu1 %v7944_v20  ;;  %v7983_v20 = vld [vmem:[%s8102_s25 + $0xf28] sm:$0xff]  }
 0x1ea   : > { %7383 = vmatprep.subr.bf16.mxu1 %v7946_v22 }
 0x1eb   : > { %7362 = vmatpush3.bf16.msra.mxu0 %v7947_v23  ;;  %v7984_v23 = vld [vmem:[%s8102_s25 + $0xfa8] sm:$0xff]  }
 0x1ec   : > { %7363 = vmatprep.subr.bf16.mxu0 %v7949_v25  ;;  %v7986_v25 = vld [vmem:[%s8102_s25 + $0xff0] sm:$0xff]  }
 0x1ed   : > { %7384 = vmatpush3.bf16.msra.mxu1 %v7948_v24  ;;  %v7061_v30 = vpop.f32.mrb[28].mxu0 }
 0x1ee   : > { %v7062_v32 = vpop.f32.mrb[29].mxu0  ;;  %7385 = vmatprep.subr.bf16.mxu1 %v7950_v26 }
 0x1ef   : > { %v7083_v34 = vpop.f32.mrb[28].mxu1  ;;  %v7063_v35 = vadd.f32 %v7062_v32, %v7061_v30  ;;  %v7064_v36 = vpop.f32.mrb[30].mxu0  ;;  %7364 = vmatpush3.bf16.msra.mxu0 %v7951_v27  ;;  %v7989_v30 = vld [vmem:[%s8102_s25 + $0xf78] sm:$0xff]  }
 0x1f0   : > { %v7084_v39 = vpop.f32.mrb[29].mxu1  ;;  %v7065_v40 = vpop.f32.mrb[31].mxu0  ;;  %7365 = vmatprep.subr.bf16.mxu0 %v7953_v29  ;;  %v7987_v29 = vld [vmem:[%s8102_s25 + $0xf30] sm:$0xff]  }
 0x1f1   : > { %v5414_v41 = vadd.f32 %v7063_v35, %v8654_v1  ;;  %v7085_v43 = vadd.f32 %v7084_v39, %v7083_v34  ;;  %v7086_v44 = vpop.f32.mrb[30].mxu1  ;;  %7386 = vmatpush3.bf16.msra.mxu1 %v7952_v28  ;;  %v7964_v1 = vld [vmem:[%s8102_s25 + $0xf80] sm:$0xff]   ;;  %v7988_v36 = vld [vmem:[%s8102_s25 + $0xfb0] sm:$0xff]   ;;  %v7991_v40 = vld [vmem:[%s8102_s25 + $0xf38] sm:$0xff]  }
 0x1f2   : > { %v7087_v46 = vpop.f32.mrb[31].mxu1  ;;  %7387 = vmatprep.subr.bf16.mxu1 %v7954_v31 }
 0x1f3   : > { %v8692_v50 = vadd.f32 %v7085_v43, %v5414_v41  ;;  %7366 = vmatpush3.bf16.msra.mxu0 %v7955_v33  ;;  %v1664_v41 = vrot.slane %v8698_v56, %v8140_v42  ;;  %v7992_v43 = vld [vmem:[%s8102_s25 + $0xfb8] sm:$0xff]  }
 0x1f4   : > { %7367 = vmatprep.subr.bf16.mxu0 %v7957_v38  ;;  %v7990_v38 = vld [vmem:[%s8102_s25 + $0xff8] sm:$0xff]  }
 0x1f5   : > { %7388 = vmatpush3.bf16.msra.mxu1 %v7956_v37  ;;  %v1680_v44 = vcombine.high %v1664_v41, %v1664_v41 }
 0x1f6   : > { %7389 = vmatprep.subr.bf16.mxu1 %v7958_v47 }
 0x1f7   : > { %7368 = vmatpush3.bf16.msra.mxu0 %v7959_v51 }
 0x1f8   : > { %7397 = vmatprep.subr.bf16.mxu0 %v7961_v54 }
 0x1f9   : > { %7390 = vmatpush3.bf16.msra.mxu1 %v7960_v57 }
 0x1fa   : > { %5972 = vmatmul.mubr.bf16.vlgmr.msra.gmra.mrb[56].mxu0 %v1657_v53  ;;  %7419 = vmatprep.subr.bf16.mxu1 %v7962_v59 }
 0x1fb   : > { %7398 = vmatpush3.bf16.msra.mxu0 %v7963_v55  ;;  %6051 = vmatprep.mubr.bf16.mxu0 %v1678_v0 }
 0x1fc   : > { %6012 = vmatmul.mubr.bf16.vlgmr.msra.gmra.mrb[56].mxu1 %v1679_v62  ;;  %7399 = vmatprep.subr.bf16.mxu0 %v7965_v63 }
 0x1fd   : > { %7420 = vmatpush3.bf16.msra.mxu1 %v7964_v1  ;;  %6091 = vmatprep.mubr.bf16.mxu1 %v1682_v3 }
 0x1fe   : > { %7421 = vmatprep.subr.bf16.mxu1 %v7966_v2 }
 0x1ff   : > { %7400 = vmatpush3.bf16.msra.mxu0 %v7967_v4 }
 0x200   : > { %7401 = vmatprep.subr.bf16.mxu0 %v7969_v5 }
 0x201   : > { %7422 = vmatpush3.bf16.msra.mxu1 %v7968_v6 }
 0x202   : > { %7423 = vmatprep.subr.bf16.mxu1 %v7970_v7 }
 0x203   : > { %7402 = vmatpush3.bf16.msra.mxu0 %v7971_v8 }
 0x204   : > { %7403 = vmatprep.subr.bf16.mxu0 %v7973_v9 }
 0x205   : > { %7424 = vmatpush3.bf16.msra.mxu1 %v7972_v10 }
 0x206   : > { %7425 = vmatprep.subr.bf16.mxu1 %v7974_v11 }
 0x207   : > { %7404 = vmatpush3.bf16.msra.mxu0 %v7975_v12 }
 0x208   : > { %7405 = vmatprep.subr.bf16.mxu0 %v7977_v13 }
 0x209   : > { %7426 = vmatpush3.bf16.msra.mxu1 %v7976_v14 }
 0x20a   : > { %7427 = vmatprep.subr.bf16.mxu1 %v7978_v15 }
 0x20b   : > { %7406 = vmatpush3.bf16.msra.mxu0 %v7979_v16 }
 0x20c   : > { %7407 = vmatprep.subr.bf16.mxu0 %v7981_v17 }
 0x20d   : > { %7428 = vmatpush3.bf16.msra.mxu1 %v7980_v18  ;;  %v7105_v22 = vpop.f32.mrb[32].mxu0 }
 0x20e   : > { %v7106_v24 = vpop.f32.mrb[33].mxu0  ;;  %7429 = vmatprep.subr.bf16.mxu1 %v7982_v19 }
 0x20f   : > { %v7127_v26 = vpop.f32.mrb[32].mxu1  ;;  %v7107_v27 = vadd.f32 %v7106_v24, %v7105_v22  ;;  %v7108_v28 = vpop.f32.mrb[34].mxu0  ;;  %7408 = vmatpush3.bf16.msra.mxu0 %v7983_v20 }
 0x210   : > { %v7128_v31 = vpop.f32.mrb[33].mxu1  ;;  %v7109_v32 = vpop.f32.mrb[35].mxu0  ;;  %7409 = vmatprep.subr.bf16.mxu0 %v7985_v21 }
 0x211   : > { %v5494_v33 = vadd.f32 %v7107_v27, %v8692_v50  ;;  %v7129_v34 = vadd.f32 %v7128_v31, %v7127_v26  ;;  %v7130_v35 = vpop.f32.mrb[34].mxu1  ;;  %7430 = vmatpush3.bf16.msra.mxu1 %v7984_v23 }
 0x212   : > { %v7131_v37 = vpop.f32.mrb[35].mxu1  ;;  %7431 = vmatprep.subr.bf16.mxu1 %v7986_v25 }
 0x213   : > { %v5534_v39 = vadd.f32 %v7129_v34, %v5494_v33  ;;  %7410 = vmatpush3.bf16.msra.mxu0 %v7987_v29 }
 0x214   : > { %7411 = vmatprep.subr.bf16.mxu0 %v7989_v30 }
 0x215   : > { %7432 = vmatpush3.bf16.msra.mxu1 %v7988_v36 }
 0x216   : > { %7433 = vmatprep.subr.bf16.mxu1 %v7990_v38 }
 0x217   : > { %7412 = vmatpush3.bf16.msra.mxu0 %v7991_v40 }
 0x219   : > { %7434 = vmatpush3.bf16.msra.mxu1 %v7992_v43 }
 0x21a   : > { %6052 = vmatmul.mubr.bf16.vlgmr.msra.gmra.mrb[60].mxu0 %v1664_v41 }
 0x21c   : > { %6092 = vmatmul.mubr.bf16.vlgmr.msra.gmra.mrb[60].mxu1 %v1680_v44 }
 0x22d   : > { %v7149_v45 = vpop.f32.mrb[36].mxu0 }
 0x22e   : > { %v7150_v46 = vpop.f32.mrb[37].mxu0 }
 0x22f   : > { %v7171_v47 = vpop.f32.mrb[36].mxu1  ;;  %v7151_v48 = vadd.f32 %v7150_v46, %v7149_v45  ;;  %v7152_v49 = vpop.f32.mrb[38].mxu0 }
 0x230   : > { %v7172_v50 = vpop.f32.mrb[37].mxu1  ;;  %v7153_v51 = vpop.f32.mrb[39].mxu0 }
 0x231   : > { %v5574_v52 = vadd.f32 %v7151_v48, %v5534_v39  ;;  %v7173_v53 = vadd.f32 %v7172_v50, %v7171_v47  ;;  %v7174_v54 = vpop.f32.mrb[38].mxu1 }
 0x232   : > { %v7175_v57 = vpop.f32.mrb[39].mxu1 }
 0x233   : > { %v5614_v42 = vadd.f32 %v7173_v53, %v5574_v52 }
 0x24d   : > { %v7193_v56 = vpop.f32.mrb[40].mxu0 }
 0x24e   : > { %v7194_v58 = vpop.f32.mrb[41].mxu0 }
 0x24f   : > { %v7215_v59 = vpop.f32.mrb[40].mxu1  ;;  %v7195_v60 = vadd.f32 %v7194_v58, %v7193_v56  ;;  %v7196_v55 = vpop.f32.mrb[42].mxu0 }
 0x250   : > { %v7216_v61 = vpop.f32.mrb[41].mxu1  ;;  %v7197_v62 = vpop.f32.mrb[43].mxu0 }
 0x251   : > { %v5654_v63 = vadd.f32 %v7195_v60, %v5614_v42  ;;  %v7217_v0 = vadd.f32 %v7216_v61, %v7215_v59  ;;  %v7218_v1 = vpop.f32.mrb[42].mxu1  ;;  %v250_v62 = vld [vmem:[#allocation2] sm:$0x3] }
 0x252   : > { %v7219_v2 = vpop.f32.mrb[43].mxu1 }
 0x253   : > { %v5694_v3 = vadd.f32 %v7217_v0, %v5654_v63 }
 0x26d   : > { %v7237_v4 = vpop.f32.mrb[44].mxu0 }
 0x26e   : > { %v7238_v5 = vpop.f32.mrb[45].mxu0 }
 0x26f   : > { %v7259_v6 = vpop.f32.mrb[44].mxu1  ;;  %v7239_v7 = vadd.f32 %v7238_v5, %v7237_v4  ;;  %v7240_v8 = vpop.f32.mrb[46].mxu0 }
 0x270   : > { %v7260_v9 = vpop.f32.mrb[45].mxu1  ;;  %v7241_v10 = vpop.f32.mrb[47].mxu0 }
 0x271   : > { %v5734_v11 = vadd.f32 %v7239_v7, %v5694_v3  ;;  %v7261_v12 = vadd.f32 %v7260_v9, %v7259_v6  ;;  %v7262_v13 = vpop.f32.mrb[46].mxu1  ;;  %v6732_v3 = vld [vmem:[%s8782_s2] ss:$0 sm:$0xff] (!%p6731_p7) }
 0x272   : > { %v7263_v14 = vpop.f32.mrb[47].mxu1 }
 0x273   : > { %v5774_v15 = vadd.f32 %v7261_v12, %v5734_v11 }
 0x28d   : > { %v7281_v16 = vpop.f32.mrb[48].mxu0 }
 0x28e   : > { %v7282_v17 = vpop.f32.mrb[49].mxu0 }
 0x28f   : > { %v7303_v18 = vpop.f32.mrb[48].mxu1  ;;  %v7283_v19 = vadd.f32 %v7282_v17, %v7281_v16  ;;  %v7284_v20 = vpop.f32.mrb[50].mxu0 }
 0x290   : > { %v7304_v21 = vpop.f32.mrb[49].mxu1  ;;  %v7285_v22 = vpop.f32.mrb[51].mxu0 }
 0x291   : > { %v5814_v23 = vadd.f32 %v7283_v19, %v5774_v15  ;;  %v7305_v24 = vadd.f32 %v7304_v21, %v7303_v18  ;;  %v7306_v25 = vpop.f32.mrb[50].mxu1 }
 0x292   : > { %v7307_v26 = vpop.f32.mrb[51].mxu1 }
 0x293   : > { %v5854_v27 = vadd.f32 %v7305_v24, %v5814_v23 }
 0x2ad   : > { %v7325_v28 = vpop.f32.mrb[52].mxu0 }
 0x2ae   : > { %v7326_v29 = vpop.f32.mrb[53].mxu0 }
 0x2af   : > { %v7347_v30 = vpop.f32.mrb[52].mxu1  ;;  %v7327_v31 = vadd.f32 %v7326_v29, %v7325_v28  ;;  %v7328_v32 = vpop.f32.mrb[54].mxu0 }
 0x2b0   : > { %v7348_v33 = vpop.f32.mrb[53].mxu1  ;;  %v7329_v34 = vpop.f32.mrb[55].mxu0 }
 0x2b1   : > { %v5894_v35 = vadd.f32 %v7327_v31, %v5854_v27  ;;  %v7349_v36 = vadd.f32 %v7348_v33, %v7347_v30  ;;  %v7350_v37 = vpop.f32.mrb[54].mxu1 }
 0x2b2   : > { %v7351_v38 = vpop.f32.mrb[55].mxu1 }
 0x2b3   : > { %v5934_v39 = vadd.f32 %v7349_v36, %v5894_v35 }
 0x2cd   : > { %v7369_v40 = vpop.f32.mrb[56].mxu0 }
 0x2ce   : > { %v7370_v41 = vpop.f32.mrb[57].mxu0 }
 0x2cf   : > { %v7391_v43 = vpop.f32.mrb[56].mxu1  ;;  %v7371_v44 = vadd.f32 %v7370_v41, %v7369_v40  ;;  %v7372_v45 = vpop.f32.mrb[58].mxu0 }
 0x2d0   : > { %v7392_v46 = vpop.f32.mrb[57].mxu1  ;;  %v7373_v47 = vpop.f32.mrb[59].mxu0 }
 0x2d1   : > { %v5974_v48 = vadd.f32 %v7371_v44, %v5934_v39  ;;  %v7393_v49 = vadd.f32 %v7392_v46, %v7391_v43  ;;  %v7394_v50 = vpop.f32.mrb[58].mxu1 }
 0x2d2   : > { %v7395_v51 = vpop.f32.mrb[59].mxu1 }
 0x2d3   : > { %v6014_v52 = vadd.f32 %v7393_v49, %v5974_v48 }
 0x2ed   : > { %v7413_v53 = vpop.f32.mrb[60].mxu0 }
 0x2ee   : > { %v7414_v54 = vpop.f32.mrb[61].mxu0 }
 0x2ef   : > { %v7435_v57 = vpop.f32.mrb[60].mxu1  ;;  %v7415_v42 = vadd.f32 %v7414_v54, %v7413_v53  ;;  %v7416_v56 = vpop.f32.mrb[62].mxu0 }
 0x2f0   : > { %v7436_v58 = vpop.f32.mrb[61].mxu1  ;;  %v7417_v59 = vpop.f32.mrb[63].mxu0 }
 0x2f1   : > { %v6054_v60 = vadd.f32 %v7415_v42, %v6014_v52  ;;  %v7437_v55 = vadd.f32 %v7436_v58, %v7435_v57  ;;  %v7438_v61 = vpop.f32.mrb[62].mxu1  ;;  %6105 = sbr.rel (%p6731_p7) target bundleno = 770 (0x302), region = 40 }
 0x2f2   : > { %v7439_v63 = vpop.f32.mrb[63].mxu1 }
 0x2f3   : > { %v6094_v0 = vadd.f32 %v7437_v55, %v6054_v60 }
 0x2f5   : > { %v6099_v1 = vadd.f32 %v6094_v0, %v250_v62 }
 0x2f7   : > { %6101 = vst.msk [vmem:[#allocation2] sm:$0x3] %vm6100_vm1, %v6099_v1 }
 0x2fe   : > { %v6106_v2 = vld [vmem:[#allocation2] sm:$0x3] }
 0x2ff   : > { %v6114_v4 = vadd.f32 %v6732_v3, %v6106_v2 }
 0x301   : > { %6115 = vst.msk [vmem:[#allocation3] sm:$0x3] %vm6100_vm1, %v6114_v4 }
 0x302 PF: > { %p8745_p8 = scmp.eq.s32.totalorder %s6210_s15, 2  ;;  %s8050_s29 = smov [#allocation3]  }
 0x303   : > { %s6126_s30 = sshll.u32 %s8050_s29, 4  ;;  %s6127_s30 = int_to_ptr.vmem [resolvable:$true] %s6126_s30 }
 0x304   : > { %s7994_s4 = scalar_lea.vmem %s6127_s30, 32  ;;  %p8001_p12 = scmp.lt.s32.totalorder %s6127_s30, %s6127_s30 }
 0x305   : > { %p7995_p9 = scmp.ne.s32.totalorder %s6127_s30, %s7994_s4  ;;  %p8002_p13 = scmp.lt.s32.totalorder %s7994_s4, %s7994_s4 }
 0x307   : > { %p7996_p10 = pnand %p7995_p9, %p8745_p8  ;;  %p8003_p0 = por %p8002_p13, %p8001_p12 }
 0x309   : > { %p7997_p11 = pneg %p7996_p10 }
 0x30b   : > { %p8004_p1 = pnand %p8003_p0, %p7997_p11 }
 0x30d   : > { %8007 = shalt.err (!%p8004_p1)
}
 0x30e   : > { %s8008_s7 = scalar_lea.hbm %s8783_s3, 32 }
 0x30f   : > { %p8009_p2 = scmp.ne.s32.totalorder %s8783_s3, %s8008_s7  ;;  %p8014_p5 = scmp.lt.u32.totalorder %s8008_s7, %s8783_s3 }
 0x311   : > { %p8010_p3 = pnand %p8009_p2, %p8745_p8 }
 0x313   : > { %p8011_p4 = pneg %p8010_p3 }
 0x315   : > { %p8016_p6 = pnand %p8014_p5, %p8011_p4 }
 0x317   : > { %8019 = shalt.err (!%p8016_p6)
}
 0x318   : > { %7442 = dma.vmem_to_hbm [thread:$0]  (%p8745_p8), %s6127_s30, 32, %s8783_s3, [#allocation4]  }
 0x319   : > { %8033 = dma.done.wait (%p8745_p8), [#allocation4], 32  }
 0x31a   : > { %8035 = vsyncadd (%p8745_p8), [#allocation4], 4294967264 }
 0x31b PF: > { %s14_s14 = sadd.s32 1, %s8046_s14   ;;  %s8785_s12 = smov %s8042_s13 }
 0x31c   : > { %p11_p7 = scmp.ge.s32.totalorder %s14_s14, 5   ;;  %s8786_s13 = smov %s8788_s16 }
 0x31e   :  { %13 = sbr.rel (!%p11_p7) target bundleno = 2 (0x2), region = 74 }
 0x325   :  { %6139 = vsyncpa [#allocation4], 1 }
 0x326   :  { %6141 = vsyncpa [#allocation4 + $0x1], 1 }

</bundles_post_ra>
